<compile_context>
chip_gen: v5e
topology: v5e:2x2
jax: 0.10.0
libtpu: 0.0.40
codegen_flags: <defaults>
</compile_context>

<pallas_src>
import math
import functools

import jax
import jax.numpy as jnp
from jax import lax
from jax.experimental import pallas as pl
from jax.experimental.pallas import tpu as pltpu


# ------------------------- in-kernel helper math --------------------------- #

def _softmax_rows(s):
    mx = jnp.max(s, axis=-1, keepdims=True)
    e = jnp.exp(s - mx)
    return e * pl.reciprocal(jnp.sum(e, axis=-1, keepdims=True), approx=True)


def _mha_heads(q, k, v, mask, H, Dh, scale):
    """q: [Tq, E], k/v: [Tk, E]; heads packed along the last dim (PyTorch MHA)."""
    outs = []
    for h in range(H):                               # static unroll, H small
        sl = slice(h * Dh, (h + 1) * Dh)
        qh, kh, vh = q[:, sl], k[:, sl], v[:, sl]
        s = jnp.dot(qh, kh.T, preferred_element_type=jnp.float32) * scale
        if mask is not None:
            s = s + mask
        p = _softmax_rows(s)
        outs.append(jnp.dot(p, vh, preferred_element_type=jnp.float32))
    return jnp.concatenate(outs, axis=-1)            # [Tq, E]


def _add_ln(x, y, g, b, eps=1e-5):
    z = x + y
    mu = jnp.mean(z, axis=-1, keepdims=True)
    var = jnp.mean((z - mu) ** 2, axis=-1, keepdims=True)
    return (z - mu) * lax.rsqrt(var + eps) * g + b


# ----------------------- fused decoder-layer kernel ------------------------ #

def _decoder_layer_kernel(*refs, E, H, has_tgt_mask, has_mem_mask):
    Dh = E // H
    scale = 1.0 / math.sqrt(Dh)

    it = iter(refs)
    x_ref = next(it)                                  # (1, T, E)
    mem_ref = next(it)                                # (1, S, E)
    tgt_mask = next(it)[...] if has_tgt_mask else None
    mem_mask = next(it)[...] if has_mem_mask else None
    (sa_in_w, sa_in_b, sa_o_w, sa_o_b, ln1_g, ln1_b,
     ca_q_w, ca_q_b, ca_kv_w, ca_kv_b, ca_o_w, ca_o_b, ln2_g, ln2_b,
     ff_w1, ff_b1, ff_w2, ff_b2, ln3_g, ln3_b,
     o_ref) = [next(it) for _ in range(21)]

    x = x_ref[0]                                      # [T, E]
    mem = mem_ref[0]                                  # [S, E]

    # ---- self-attention block (fused QKV) ----
    qkv = jnp.dot(x, sa_in_w[...], preferred_element_type=jnp.float32) + sa_in_b[...]
    ctx = _mha_heads(qkv[:, :E], qkv[:, E:2 * E], qkv[:, 2 * E:],
                     tgt_mask, H, Dh, scale)
    sa = jnp.dot(ctx, sa_o_w[...], preferred_element_type=jnp.float32) + sa_o_b[...]
    x = _add_ln(x, sa, ln1_g[...], ln1_b[...])

    # ---- cross-attention block (fused KV) ----
    q = jnp.dot(x, ca_q_w[...], preferred_element_type=jnp.float32) + ca_q_b[...]
    kv = jnp.dot(mem, ca_kv_w[...], preferred_element_type=jnp.float32) + ca_kv_b[...]
    ctx = _mha_heads(q, kv[:, :E], kv[:, E:], mem_mask, H, Dh, scale)
    ca = jnp.dot(ctx, ca_o_w[...], preferred_element_type=jnp.float32) + ca_o_b[...]
    x = _add_ln(x, ca, ln2_g[...], ln2_b[...])

    # ---- feed-forward block ----
    hdn = jnp.maximum(
        jnp.dot(x, ff_w1[...], preferred_element_type=jnp.float32) + ff_b1[...], 0.0)
    f = jnp.dot(hdn, ff_w2[...], preferred_element_type=jnp.float32) + ff_b2[...]
    o_ref[0] = _add_ln(x, f, ln3_g[...], ln3_b[...])


_LAYER_W_NAMES = ('sa_in_w', 'sa_in_b', 'sa_o_w', 'sa_o_b', 'ln1_g', 'ln1_b',
                  'ca_q_w', 'ca_q_b', 'ca_kv_w', 'ca_kv_b', 'ca_o_w', 'ca_o_b',
                  'ln2_g', 'ln2_b', 'ff_w1', 'ff_b1', 'ff_w2', 'ff_b2',
                  'ln3_g', 'ln3_b')


def decoder_layer(x_bf, mem_bf, lw, H, tgt_mask=None, memory_mask=None):
    """One fused nn.TransformerDecoderLayer. x_bf: [B,T,E], mem_bf: [B,S,E]."""
    B, T, E = x_bf.shape
    S = mem_bf.shape[1]

    def full_spec(a):
        nd = a.ndim
        return pl.BlockSpec(a.shape, lambda b, _n=nd: (0,) * _n)

    in_specs = [pl.BlockSpec((1, T, E), lambda b: (b, 0, 0)),
                pl.BlockSpec((1, S, E), lambda b: (b, 0, 0))]
    args = [x_bf, mem_bf]
    if tgt_mask is not None:
        in_specs.append(full_spec(tgt_mask)); args.append(tgt_mask)
    if memory_mask is not None:
        in_specs.append(full_spec(memory_mask)); args.append(memory_mask)
    for n in _LAYER_W_NAMES:
        in_specs.append(full_spec(lw[n])); args.append(lw[n])

    return pl.pallas_call(
        functools.partial(_decoder_layer_kernel, E=E, H=H,
                          has_tgt_mask=tgt_mask is not None,
                          has_mem_mask=memory_mask is not None),
        grid=(B,),
        in_specs=in_specs,
        out_specs=pl.BlockSpec((1, T, E), lambda b: (b, 0, 0)),
        out_shape=jax.ShapeDtypeStruct((B, T, E), jnp.float32),
        compiler_params=pltpu.CompilerParams(dimension_semantics=("parallel",)),
    )(*args)


# ----------------------- tiled linear (vocab proj) ------------------------- #

def _linear_kernel(x_ref, w_ref, b_ref, o_ref):
    o_ref[...] = (jnp.dot(x_ref[...], w_ref[...],
                          preferred_element_type=jnp.float32) + b_ref[...])


def linear(x, w_t, b2d, n_tile=512):
    """x: [M, K], w_t: [K, N] (pre-transposed), b2d: [1, N]. Tiles over N."""
    M, K = x.shape
    N = w_t.shape[1]
    if N % n_tile != 0:
        n_tile = N                     # small vocab: single full-array tile
    grid_n = N // n_tile
    return pl.pallas_call(
        _linear_kernel,
        grid=(grid_n,),
        in_specs=[pl.BlockSpec((M, K), lambda j: (0, 0)),
                  pl.BlockSpec((K, n_tile), lambda j: (0, j)),
                  pl.BlockSpec((1, n_tile), lambda j: (0, j))],
        out_specs=pl.BlockSpec((M, n_tile), lambda j: (0, j)),
        out_shape=jax.ShapeDtypeStruct((M, N), jnp.float32),
        compiler_params=pltpu.CompilerParams(dimension_semantics=("parallel",)),
    )(x, w_t, b2d)


# ------------------------------ model glue --------------------------------- #

def make_pe(max_len, E):
    pos = jnp.arange(max_len, dtype=jnp.float32)[:, None]
    div = jnp.exp(jnp.arange(0, E, 2, dtype=jnp.float32) * (-math.log(10000.0) / E))
    pe = jnp.zeros((max_len, E), jnp.float32)
    pe = pe.at[:, 0::2].set(jnp.sin(pos * div))
    pe = pe.at[:, 1::2].set(jnp.cos(pos * div))
    return pe                                          # [max_len, E]


def transformer_decoder(params, tgt, memory, tgt_mask=None, memory_mask=None,
                        *, E, H, L, pe):
    # TODO(synk): tgt_key_padding_mask / memory_key_padding_mask not implemented
    # (reference example uses None); dropout is identity (eval mode).
    T, B = tgt.shape
    x = params['emb'][tgt] * math.sqrt(E)              # [T, B, E] (gather = glue)
    # NOTE: reproduces the reference PositionalEncoding exactly: it slices
    # pe[:, :x.size(1)] where dim 1 of the seq-first input is the *batch* axis,
    # so positional codes are indexed by batch position and broadcast over T.
    x = x + pe[:B][None, :, :]
    # Internal batch-first layout (mathematically identical; per-batch grid).
    x = x.transpose(1, 0, 2)                           # [B, T, E]
    mem = memory.transpose(1, 0, 2)                    # [B, S, E]
    for li in range(L):
        x = decoder_layer(x, mem, params['layers'][li], H, tgt_mask, memory_mask)
    out = linear(x.reshape(B * T, E), params['fc_w_t'], params['fc_b'])
    return out.reshape(B, T, -1).transpose(1, 0, 2)    # [T, B, V]


# ---------------------------- deterministic init ---------------------------- #

def init_params(key, vocab, E, H, L, FF):
    p = {}
    keys = iter(jax.random.split(key, 64))

    def nrm(shape, scale=0.05):
        return scale * jax.random.normal(next(keys), shape, dtype=jnp.float32)

    p['emb'] = nrm((vocab, E))
    layers = []
    for _ in range(L):
        w_self_in = nrm((3 * E, E))       # PyTorch in_proj_weight layout
        w_self_out = nrm((E, E))
        w_cross_in = nrm((3 * E, E))
        w_cross_out = nrm((E, E))
        w_ff1 = nrm((FF, E))
        w_ff2 = nrm((E, FF))
        # Pre-transpose / pre-split once at init: no .T / jnp.split per forward.
        lw = {
            'sa_in_w': w_self_in.T,                         # [E, 3E]
            'sa_in_b': jnp.zeros((1, 3 * E), jnp.float32),
            'sa_o_w': w_self_out.T,                         # [E, E]
            'sa_o_b': jnp.zeros((1, E), jnp.float32),
            'ln1_g': jnp.ones((1, E), jnp.float32),
            'ln1_b': jnp.zeros((1, E), jnp.float32),
            'ca_q_w': w_cross_in[:E].T,                     # [E, E]
            'ca_q_b': jnp.zeros((1, E), jnp.float32),
            'ca_kv_w': w_cross_in[E:].T,                    # [E, 2E]
            'ca_kv_b': jnp.zeros((1, 2 * E), jnp.float32),
            'ca_o_w': w_cross_out.T,                        # [E, E]
            'ca_o_b': jnp.zeros((1, E), jnp.float32),
            'ln2_g': jnp.ones((1, E), jnp.float32),
            'ln2_b': jnp.zeros((1, E), jnp.float32),
            'ff_w1': w_ff1.T,                               # [E, FF]
            'ff_b1': jnp.zeros((1, FF), jnp.float32),
            'ff_w2': w_ff2.T,                               # [FF, E]
            'ff_b2': jnp.zeros((1, E), jnp.float32),
            'ln3_g': jnp.ones((1, E), jnp.float32),
            'ln3_b': jnp.zeros((1, E), jnp.float32),
        }
        layers.append(lw)
    p['layers'] = layers
    p['fc_w_t'] = nrm((vocab, E)).T                         # [E, V]
    p['fc_b'] = jnp.zeros((1, vocab), jnp.float32)
    return p


# ----------------------------------- main ----------------------------------- #

if __name__ == "__main__":
    VOCAB, E, H, L, FF = 64, 32, 4, 2, 64
    T, B, S, MAX_LEN = 8, 2, 8, 64

    key = jax.random.PRNGKey(0)
    kp, kt, km = jax.random.split(key, 3)

    params = init_params(kp, VOCAB, E, H, L, FF)
    pe = make_pe(MAX_LEN, E)

    tgt = jax.random.randint(kt, (T, B), 0, VOCAB, dtype=jnp.int32)      # [T, B]
    memory = jax.random.normal(km, (S, B, E), dtype=jnp.float32)         # [S, B, E]
    # causal target mask (additive, like generate_square_subsequent_mask)
    tgt_mask = jnp.where(jnp.triu(jnp.ones((T, T), bool), k=1),
                         -1e9, 0.0).astype(jnp.float32)

    fwd = jax.jit(functools.partial(transformer_decoder, E=E, H=H, L=L, pe=pe))
    out = fwd(params, tgt, memory, tgt_mask, None)
    out = jax.block_until_ready(out)
    assert out.shape == (T, B, VOCAB), out.shape
    assert bool(jnp.all(jnp.isfinite(out)))
    print("KERNEL_OK")
</pallas_src>

<mosaic_0001>
module attributes {stable_mosaic.version = 11 : i64} {
  func.func @_linear_kernel(%arg0: i32, %arg1: memref<16x32xf32, #tpu.memory_space<vmem>>, %arg2: memref<32x64xf32, #tpu.memory_space<vmem>>, %arg3: memref<1x64xf32, #tpu.memory_space<vmem>>, %arg4: memref<16x64xf32, #tpu.memory_space<vmem>>) attributes {dimension_semantics = [#tpu.dimension_semantics<parallel>], iteration_bounds = array<i64: 1>, scalar_prefetch = 0 : i64, scratch_operands = 0 : i64, tpu.core_type = #tpu.core_type<tc>, window_params = [{pipeline_mode = #tpu.pipeline_mode<synchronous>, transform_indices = @transform_0, window_bounds = array<i64: 16, 32>}, {transform_indices = @transform_1, window_bounds = array<i64: 32, 64>}, {transform_indices = @transform_2, window_bounds = array<i64: 1, 64>}, {transform_indices = @transform_3, window_bounds = array<i64: 16, 64>}]} {
    %c0 = arith.constant 0 : index
    %c0_0 = arith.constant 0 : index
    %0 = vector.load %arg1[%c0, %c0_0] : memref<16x32xf32, #tpu.memory_space<vmem>>, vector<16x32xf32>
    %c0_1 = arith.constant 0 : index
    %c0_2 = arith.constant 0 : index
    %1 = vector.load %arg2[%c0_1, %c0_2] : memref<32x64xf32, #tpu.memory_space<vmem>>, vector<32x64xf32>
    %cst = arith.constant dense<0.000000e+00> : vector<16x64xf32>
    %2 = tpu.matmul %0, %1, %cst {dimension_numbers = #tpu.dot_dimension_numbers<[1], [0], [0], [1], [0, 0, 1, 1], [], []>} : vector<16x32xf32>, vector<32x64xf32>, vector<16x64xf32> -> vector<16x64xf32>
    %c0_3 = arith.constant 0 : index
    %c0_4 = arith.constant 0 : index
    %3 = vector.load %arg3[%c0_3, %c0_4] : memref<1x64xf32, #tpu.memory_space<vmem>>, vector<1x64xf32>
    %4 = vector.broadcast %3 : vector<1x64xf32> to vector<16x64xf32>
    %5 = arith.addf %2, %4 : vector<16x64xf32>
    %c0_5 = arith.constant 0 : index
    %c0_6 = arith.constant 0 : index
    %6 = vector.load %arg4[%c0_5, %c0_6] : memref<16x64xf32, #tpu.memory_space<vmem>>, vector<16x64xf32>
    tpu.vector_store %arg4[%c0_5, %c0_6], %5 {strides = array<i32>} : memref<16x64xf32, #tpu.memory_space<vmem>>, vector<16x64xf32>,
    return
  }
  func.func @transform_0(%arg0: i32) -> (i32, i32) {
    %c0_i32 = arith.constant 0 : i32
    %c0_i32_0 = arith.constant 0 : i32
    %c0_i32_1 = arith.constant 0 : i32
    return %c0_i32, %c0_i32_0 : i32, i32
  }
  func.func @transform_1(%arg0: i32) -> (i32, i32) {
    %c0_i32 = arith.constant 0 : i32
    %c0_i32_0 = arith.constant 0 : i32
    return %c0_i32, %arg0 : i32, i32
  }
  func.func @transform_2(%arg0: i32) -> (i32, i32) {
    %c0_i32 = arith.constant 0 : i32
    %c0_i32_0 = arith.constant 0 : i32
    return %c0_i32, %arg0 : i32, i32
  }
  func.func @transform_3(%arg0: i32) -> (i32, i32) {
    %c0_i32 = arith.constant 0 : i32
    %c0_i32_0 = arith.constant 0 : i32
    return %c0_i32, %arg0 : i32, i32
  }
}

module attributes {stable_mosaic.version = 11 : i64} {
  func.func @_decoder_layer_kernel(%arg0: i32, %arg1: memref<1x8x32xf32, #tpu.memory_space<vmem>>, %arg2: memref<1x8x32xf32, #tpu.memory_space<vmem>>, %arg3: memref<8x8xf32, #tpu.memory_space<vmem>>, %arg4: memref<32x96xf32, #tpu.memory_space<vmem>>, %arg5: memref<1x96xf32, #tpu.memory_space<vmem>>, %arg6: memref<32x32xf32, #tpu.memory_space<vmem>>, %arg7: memref<1x32xf32, #tpu.memory_space<vmem>>, %arg8: memref<1x32xf32, #tpu.memory_space<vmem>>, %arg9: memref<1x32xf32, #tpu.memory_space<vmem>>, %arg10: memref<32x32xf32, #tpu.memory_space<vmem>>, %arg11: memref<1x32xf32, #tpu.memory_space<vmem>>, %arg12: memref<32x64xf32, #tpu.memory_space<vmem>>, %arg13: memref<1x64xf32, #tpu.memory_space<vmem>>, %arg14: memref<32x32xf32, #tpu.memory_space<vmem>>, %arg15: memref<1x32xf32, #tpu.memory_space<vmem>>, %arg16: memref<1x32xf32, #tpu.memory_space<vmem>>, %arg17: memref<1x32xf32, #tpu.memory_space<vmem>>, %arg18: memref<32x64xf32, #tpu.memory_space<vmem>>, %arg19: memref<1x64xf32, #tpu.memory_space<vmem>>, %arg20: memref<64x32xf32, #tpu.memory_space<vmem>>, %arg21: memref<1x32xf32, #tpu.memory_space<vmem>>, %arg22: memref<1x32xf32, #tpu.memory_space<vmem>>, %arg23: memref<1x32xf32, #tpu.memory_space<vmem>>, %arg24: memref<1x8x32xf32, #tpu.memory_space<vmem>>) attributes {dimension_semantics = [#tpu.dimension_semantics<parallel>], iteration_bounds = array<i64: 2>, scalar_prefetch = 0 : i64, scratch_operands = 0 : i64, tpu.core_type = #tpu.core_type<tc>, window_params = [{transform_indices = @transform_0, window_bounds = array<i64: 1, 8, 32>}, {transform_indices = @transform_1, window_bounds = array<i64: 1, 8, 32>}, {pipeline_mode = #tpu.pipeline_mode<synchronous>, transform_indices = @transform_2, window_bounds = array<i64: 8, 8>}, {pipeline_mode = #tpu.pipeline_mode<synchronous>, transform_indices = @transform_3, window_bounds = array<i64: 32, 96>}, {pipeline_mode = #tpu.pipeline_mode<synchronous>, transform_indices = @transform_4, window_bounds = array<i64: 1, 96>}, {pipeline_mode = #tpu.pipeline_mode<synchronous>, transform_indices = @transform_5, window_bounds = array<i64: 32, 32>}, {pipeline_mode = #tpu.pipeline_mode<synchronous>, transform_indices = @transform_6, window_bounds = array<i64: 1, 32>}, {pipeline_mode = #tpu.pipeline_mode<synchronous>, transform_indices = @transform_7, window_bounds = array<i64: 1, 32>}, {pipeline_mode = #tpu.pipeline_mode<synchronous>, transform_indices = @transform_8, window_bounds = array<i64: 1, 32>}, {pipeline_mode = #tpu.pipeline_mode<synchronous>, transform_indices = @transform_9, window_bounds = array<i64: 32, 32>}, {pipeline_mode = #tpu.pipeline_mode<synchronous>, transform_indices = @transform_10, window_bounds = array<i64: 1, 32>}, {pipeline_mode = #tpu.pipeline_mode<synchronous>, transform_indices = @transform_11, window_bounds = array<i64: 32, 64>}, {pipeline_mode = #tpu.pipeline_mode<synchronous>, transform_indices = @transform_12, window_bounds = array<i64: 1, 64>}, {pipeline_mode = #tpu.pipeline_mode<synchronous>, transform_indices = @transform_13, window_bounds = array<i64: 32, 32>}, {pipeline_mode = #tpu.pipeline_mode<synchronous>, transform_indices = @transform_14, window_bounds = array<i64: 1, 32>}, {pipeline_mode = #tpu.pipeline_mode<synchronous>, transform_indices = @transform_15, window_bounds = array<i64: 1, 32>}, {pipeline_mode = #tpu.pipeline_mode<synchronous>, transform_indices = @transform_16, window_bounds = array<i64: 1, 32>}, {pipeline_mode = #tpu.pipeline_mode<synchronous>, transform_indices = @transform_17, window_bounds = array<i64: 32, 64>}, {pipeline_mode = #tpu.pipeline_mode<synchronous>, transform_indices = @transform_18, window_bounds = array<i64: 1, 64>}, {pipeline_mode = #tpu.pipeline_mode<synchronous>, transform_indices = @transform_19, window_bounds = array<i64: 64, 32>}, {pipeline_mode = #tpu.pipeline_mode<synchronous>, transform_indices = @transform_20, window_bounds = array<i64: 1, 32>}, {pipeline_mode = #tpu.pipeline_mode<synchronous>, transform_indices = @transform_21, window_bounds = array<i64: 1, 32>}, {pipeline_mode = #tpu.pipeline_mode<synchronous>, transform_indices = @transform_22, window_bounds = array<i64: 1, 32>}, {transform_indices = @transform_23, window_bounds = array<i64: 1, 8, 32>}]} {
    %c0 = arith.constant 0 : index
    %c0_0 = arith.constant 0 : index
    %0 = vector.load %arg3[%c0, %c0_0] : memref<8x8xf32, #tpu.memory_space<vmem>>, vector<8x8xf32>
    %c0_1 = arith.constant 0 : index
    %c0_2 = arith.constant 0 : index
    %c0_3 = arith.constant 0 : index
    %1 = vector.load %arg1[%c0_1, %c0_2, %c0_3] : memref<1x8x32xf32, #tpu.memory_space<vmem>>, vector<1x8x32xf32>
    %2 = vector.shape_cast %1 : vector<1x8x32xf32> to vector<8x32xf32>
    %c0_4 = arith.constant 0 : index
    %c0_5 = arith.constant 0 : index
    %c0_6 = arith.constant 0 : index
    %3 = vector.load %arg2[%c0_4, %c0_5, %c0_6] : memref<1x8x32xf32, #tpu.memory_space<vmem>>, vector<1x8x32xf32>
    %4 = vector.shape_cast %3 : vector<1x8x32xf32> to vector<8x32xf32>
    %c0_7 = arith.constant 0 : index
    %c0_8 = arith.constant 0 : index
    %5 = vector.load %arg4[%c0_7, %c0_8] : memref<32x96xf32, #tpu.memory_space<vmem>>, vector<32x96xf32>
    %cst = arith.constant dense<0.000000e+00> : vector<8x96xf32>
    %6 = tpu.matmul %2, %5, %cst {dimension_numbers = #tpu.dot_dimension_numbers<[1], [0], [0], [1], [0, 0, 1, 1], [], []>} : vector<8x32xf32>, vector<32x96xf32>, vector<8x96xf32> -> vector<8x96xf32>
    %c0_9 = arith.constant 0 : index
    %c0_10 = arith.constant 0 : index
    %7 = vector.load %arg5[%c0_9, %c0_10] : memref<1x96xf32, #tpu.memory_space<vmem>>, vector<1x96xf32>
    %8 = vector.broadcast %7 : vector<1x96xf32> to vector<8x96xf32>
    %9 = arith.addf %6, %8 : vector<8x96xf32>
    %10 = vector.extract_strided_slice %9 {offsets = [0, 0], sizes = [8, 32], strides = [1, 1]} : vector<8x96xf32> to vector<8x32xf32>
    %11 = vector.extract_strided_slice %9 {offsets = [0, 32], sizes = [8, 32], strides = [1, 1]} : vector<8x96xf32> to vector<8x32xf32>
    %12 = vector.extract_strided_slice %9 {offsets = [0, 64], sizes = [8, 32], strides = [1, 1]} : vector<8x96xf32> to vector<8x32xf32>
    %13 = vector.extract_strided_slice %10 {offsets = [0, 0], sizes = [8, 8], strides = [1, 1]} : vector<8x32xf32> to vector<8x8xf32>
    %14 = vector.extract_strided_slice %11 {offsets = [0, 0], sizes = [8, 8], strides = [1, 1]} : vector<8x32xf32> to vector<8x8xf32>
    %15 = vector.extract_strided_slice %12 {offsets = [0, 0], sizes = [8, 8], strides = [1, 1]} : vector<8x32xf32> to vector<8x8xf32>
    %16 = tpu.transpose %14, [1, 0] : vector<8x8xf32> -> vector<8x8xf32>
    %cst_11 = arith.constant dense<0.000000e+00> : vector<8x8xf32>
    %17 = tpu.matmul %13, %16, %cst_11 {dimension_numbers = #tpu.dot_dimension_numbers<[1], [0], [0], [1], [0, 0, 1, 1], [], []>} : vector<8x8xf32>, vector<8x8xf32>, vector<8x8xf32> -> vector<8x8xf32>
    %cst_12 = arith.constant 0.353553385 : f32
    %18 = vector.broadcast %cst_12 : f32 to vector<8x8xf32>
    %19 = arith.mulf %17, %18 : vector<8x8xf32>
    %20 = arith.addf %19, %0 : vector<8x8xf32>
    %cst_13 = arith.constant dense<0xFF800000> : vector<8xf32>
    %21 = vector.multi_reduction <maximumf>, %20, %cst_13 [1] : vector<8x8xf32> to vector<8xf32>
    %22 = vector.shape_cast %21 : vector<8xf32> to vector<8x1xf32>
    %23 = vector.broadcast %22 : vector<8x1xf32> to vector<8x8xf32>
    %24 = arith.subf %20, %23 : vector<8x8xf32>
    %25 = math.exp %24 : vector<8x8xf32>
    %cst_14 = arith.constant dense<0.000000e+00> : vector<8xf32>
    %26 = vector.multi_reduction <add>, %25, %cst_14 [1] : vector<8x8xf32> to vector<8xf32>
    %27 = vector.shape_cast %26 : vector<8xf32> to vector<8x1xf32>
    %28 = tpu.reciprocal %27 {approx = true} : vector<8x1xf32> -> vector<8x1xf32>
    %29 = vector.broadcast %28 : vector<8x1xf32> to vector<8x8xf32>
    %30 = arith.mulf %25, %29 : vector<8x8xf32>
    %cst_15 = arith.constant dense<0.000000e+00> : vector<8x8xf32>
    %31 = tpu.matmul %30, %15, %cst_15 {dimension_numbers = #tpu.dot_dimension_numbers<[1], [0], [0], [1], [0, 0, 1, 1], [], []>} : vector<8x8xf32>, vector<8x8xf32>, vector<8x8xf32> -> vector<8x8xf32>
    %32 = vector.extract_strided_slice %10 {offsets = [0, 8], sizes = [8, 8], strides = [1, 1]} : vector<8x32xf32> to vector<8x8xf32>
    %33 = vector.extract_strided_slice %11 {offsets = [0, 8], sizes = [8, 8], strides = [1, 1]} : vector<8x32xf32> to vector<8x8xf32>
    %34 = vector.extract_strided_slice %12 {offsets = [0, 8], sizes = [8, 8], strides = [1, 1]} : vector<8x32xf32> to vector<8x8xf32>
    %35 = tpu.transpose %33, [1, 0] : vector<8x8xf32> -> vector<8x8xf32>
    %cst_16 = arith.constant dense<0.000000e+00> : vector<8x8xf32>
    %36 = tpu.matmul %32, %35, %cst_16 {dimension_numbers = #tpu.dot_dimension_numbers<[1], [0], [0], [1], [0, 0, 1, 1], [], []>} : vector<8x8xf32>, vector<8x8xf32>, vector<8x8xf32> -> vector<8x8xf32>
    %cst_17 = arith.constant 0.353553385 : f32
    %37 = vector.broadcast %cst_17 : f32 to vector<8x8xf32>
    %38 = arith.mulf %36, %37 : vector<8x8xf32>
    %39 = arith.addf %38, %0 : vector<8x8xf32>
    %cst_18 = arith.constant dense<0xFF800000> : vector<8xf32>
    %40 = vector.multi_reduction <maximumf>, %39, %cst_18 [1] : vector<8x8xf32> to vector<8xf32>
    %41 = vector.shape_cast %40 : vector<8xf32> to vector<8x1xf32>
    %42 = vector.broadcast %41 : vector<8x1xf32> to vector<8x8xf32>
    %43 = arith.subf %39, %42 : vector<8x8xf32>
    %44 = math.exp %43 : vector<8x8xf32>
    %cst_19 = arith.constant dense<0.000000e+00> : vector<8xf32>
    %45 = vector.multi_reduction <add>, %44, %cst_19 [1] : vector<8x8xf32> to vector<8xf32>
    %46 = vector.shape_cast %45 : vector<8xf32> to vector<8x1xf32>
    %47 = tpu.reciprocal %46 {approx = true} : vector<8x1xf32> -> vector<8x1xf32>
    %48 = vector.broadcast %47 : vector<8x1xf32> to vector<8x8xf32>
    %49 = arith.mulf %44, %48 : vector<8x8xf32>
    %cst_20 = arith.constant dense<0.000000e+00> : vector<8x8xf32>
    %50 = tpu.matmul %49, %34, %cst_20 {dimension_numbers = #tpu.dot_dimension_numbers<[1], [0], [0], [1], [0, 0, 1, 1], [], []>} : vector<8x8xf32>, vector<8x8xf32>, vector<8x8xf32> -> vector<8x8xf32>
    %51 = vector.extract_strided_slice %10 {offsets = [0, 16], sizes = [8, 8], strides = [1, 1]} : vector<8x32xf32> to vector<8x8xf32>
    %52 = vector.extract_strided_slice %11 {offsets = [0, 16], sizes = [8, 8], strides = [1, 1]} : vector<8x32xf32> to vector<8x8xf32>
    %53 = vector.extract_strided_slice %12 {offsets = [0, 16], sizes = [8, 8], strides = [1, 1]} : vector<8x32xf32> to vector<8x8xf32>
    %54 = tpu.transpose %52, [1, 0] : vector<8x8xf32> -> vector<8x8xf32>
    %cst_21 = arith.constant dense<0.000000e+00> : vector<8x8xf32>
    %55 = tpu.matmul %51, %54, %cst_21 {dimension_numbers = #tpu.dot_dimension_numbers<[1], [0], [0], [1], [0, 0, 1, 1], [], []>} : vector<8x8xf32>, vector<8x8xf32>, vector<8x8xf32> -> vector<8x8xf32>
    %cst_22 = arith.constant 0.353553385 : f32
    %56 = vector.broadcast %cst_22 : f32 to vector<8x8xf32>
    %57 = arith.mulf %55, %56 : vector<8x8xf32>
    %58 = arith.addf %57, %0 : vector<8x8xf32>
    %cst_23 = arith.constant dense<0xFF800000> : vector<8xf32>
    %59 = vector.multi_reduction <maximumf>, %58, %cst_23 [1] : vector<8x8xf32> to vector<8xf32>
    %60 = vector.shape_cast %59 : vector<8xf32> to vector<8x1xf32>
    %61 = vector.broadcast %60 : vector<8x1xf32> to vector<8x8xf32>
    %62 = arith.subf %58, %61 : vector<8x8xf32>
    %63 = math.exp %62 : vector<8x8xf32>
    %cst_24 = arith.constant dense<0.000000e+00> : vector<8xf32>
    %64 = vector.multi_reduction <add>, %63, %cst_24 [1] : vector<8x8xf32> to vector<8xf32>
    %65 = vector.shape_cast %64 : vector<8xf32> to vector<8x1xf32>
    %66 = tpu.reciprocal %65 {approx = true} : vector<8x1xf32> -> vector<8x1xf32>
    %67 = vector.broadcast %66 : vector<8x1xf32> to vector<8x8xf32>
    %68 = arith.mulf %63, %67 : vector<8x8xf32>
    %cst_25 = arith.constant dense<0.000000e+00> : vector<8x8xf32>
    %69 = tpu.matmul %68, %53, %cst_25 {dimension_numbers = #tpu.dot_dimension_numbers<[1], [0], [0], [1], [0, 0, 1, 1], [], []>} : vector<8x8xf32>, vector<8x8xf32>, vector<8x8xf32> -> vector<8x8xf32>
    %70 = vector.extract_strided_slice %10 {offsets = [0, 24], sizes = [8, 8], strides = [1, 1]} : vector<8x32xf32> to vector<8x8xf32>
    %71 = vector.extract_strided_slice %11 {offsets = [0, 24], sizes = [8, 8], strides = [1, 1]} : vector<8x32xf32> to vector<8x8xf32>
    %72 = vector.extract_strided_slice %12 {offsets = [0, 24], sizes = [8, 8], strides = [1, 1]} : vector<8x32xf32> to vector<8x8xf32>
    %73 = tpu.transpose %71, [1, 0] : vector<8x8xf32> -> vector<8x8xf32>
    %cst_26 = arith.constant dense<0.000000e+00> : vector<8x8xf32>
    %74 = tpu.matmul %70, %73, %cst_26 {dimension_numbers = #tpu.dot_dimension_numbers<[1], [0], [0], [1], [0, 0, 1, 1], [], []>} : vector<8x8xf32>, vector<8x8xf32>, vector<8x8xf32> -> vector<8x8xf32>
    %cst_27 = arith.constant 0.353553385 : f32
    %75 = vector.broadcast %cst_27 : f32 to vector<8x8xf32>
    %76 = arith.mulf %74, %75 : vector<8x8xf32>
    %77 = arith.addf %76, %0 : vector<8x8xf32>
    %cst_28 = arith.constant dense<0xFF800000> : vector<8xf32>
    %78 = vector.multi_reduction <maximumf>, %77, %cst_28 [1] : vector<8x8xf32> to vector<8xf32>
    %79 = vector.shape_cast %78 : vector<8xf32> to vector<8x1xf32>
    %80 = vector.broadcast %79 : vector<8x1xf32> to vector<8x8xf32>
    %81 = arith.subf %77, %80 : vector<8x8xf32>
    %82 = math.exp %81 : vector<8x8xf32>
    %cst_29 = arith.constant dense<0.000000e+00> : vector<8xf32>
    %83 = vector.multi_reduction <add>, %82, %cst_29 [1] : vector<8x8xf32> to vector<8xf32>
    %84 = vector.shape_cast %83 : vector<8xf32> to vector<8x1xf32>
    %85 = tpu.reciprocal %84 {approx = true} : vector<8x1xf32> -> vector<8x1xf32>
    %86 = vector.broadcast %85 : vector<8x1xf32> to vector<8x8xf32>
    %87 = arith.mulf %82, %86 : vector<8x8xf32>
    %cst_30 = arith.constant dense<0.000000e+00> : vector<8x8xf32>
    %88 = tpu.matmul %87, %72, %cst_30 {dimension_numbers = #tpu.dot_dimension_numbers<[1], [0], [0], [1], [0, 0, 1, 1], [], []>} : vector<8x8xf32>, vector<8x8xf32>, vector<8x8xf32> -> vector<8x8xf32>
    %89 = tpu.concatenate %31, %50, %69, %88 in 1 : vector<8x8xf32>, vector<8x8xf32>, vector<8x8xf32>, vector<8x8xf32> -> vector<8x32xf32>
    %c0_31 = arith.constant 0 : index
    %c0_32 = arith.constant 0 : index
    %90 = vector.load %arg6[%c0_31, %c0_32] : memref<32x32xf32, #tpu.memory_space<vmem>>, vector<32x32xf32>
    %cst_33 = arith.constant dense<0.000000e+00> : vector<8x32xf32>
    %91 = tpu.matmul %89, %90, %cst_33 {dimension_numbers = #tpu.dot_dimension_numbers<[1], [0], [0], [1], [0, 0, 1, 1], [], []>} : vector<8x32xf32>, vector<32x32xf32>, vector<8x32xf32> -> vector<8x32xf32>
    %c0_34 = arith.constant 0 : index
    %c0_35 = arith.constant 0 : index
    %92 = vector.load %arg7[%c0_34, %c0_35] : memref<1x32xf32, #tpu.memory_space<vmem>>, vector<1x32xf32>
    %93 = vector.broadcast %92 : vector<1x32xf32> to vector<8x32xf32>
    %94 = arith.addf %91, %93 : vector<8x32xf32>
    %c0_36 = arith.constant 0 : index
    %c0_37 = arith.constant 0 : index
    %95 = vector.load %arg8[%c0_36, %c0_37] : memref<1x32xf32, #tpu.memory_space<vmem>>, vector<1x32xf32>
    %c0_38 = arith.constant 0 : index
    %c0_39 = arith.constant 0 : index
    %96 = vector.load %arg9[%c0_38, %c0_39] : memref<1x32xf32, #tpu.memory_space<vmem>>, vector<1x32xf32>
    %97 = arith.addf %2, %94 : vector<8x32xf32>
    %cst_40 = arith.constant dense<0.000000e+00> : vector<8xf32>
    %98 = vector.multi_reduction <add>, %97, %cst_40 [1] : vector<8x32xf32> to vector<8xf32>
    %99 = vector.shape_cast %98 : vector<8xf32> to vector<8x1xf32>
    %cst_41 = arith.constant 3.200000e+01 : f32
    %100 = vector.broadcast %cst_41 : f32 to vector<8x1xf32>
    %101 = arith.divf %99, %100 : vector<8x1xf32>
    %102 = vector.broadcast %101 : vector<8x1xf32> to vector<8x32xf32>
    %103 = arith.subf %97, %102 : vector<8x32xf32>
    %104 = arith.mulf %103, %103 : vector<8x32xf32>
    %cst_42 = arith.constant dense<0.000000e+00> : vector<8xf32>
    %105 = vector.multi_reduction <add>, %104, %cst_42 [1] : vector<8x32xf32> to vector<8xf32>
    %106 = vector.shape_cast %105 : vector<8xf32> to vector<8x1xf32>
    %cst_43 = arith.constant 3.200000e+01 : f32
    %107 = vector.broadcast %cst_43 : f32 to vector<8x1xf32>
    %108 = arith.divf %106, %107 : vector<8x1xf32>
    %109 = vector.broadcast %101 : vector<8x1xf32> to vector<8x32xf32>
    %110 = arith.subf %97, %109 : vector<8x32xf32>
    %cst_44 = arith.constant 9.99999974E-6 : f32
    %111 = vector.broadcast %cst_44 : f32 to vector<8x1xf32>
    %112 = arith.addf %108, %111 : vector<8x1xf32>
    %113 = math.rsqrt %112 : vector<8x1xf32>
    %114 = vector.broadcast %113 : vector<8x1xf32> to vector<8x32xf32>
    %115 = arith.mulf %110, %114 : vector<8x32xf32>
    %116 = vector.broadcast %95 : vector<1x32xf32> to vector<8x32xf32>
    %117 = arith.mulf %115, %116 : vector<8x32xf32>
    %118 = vector.broadcast %96 : vector<1x32xf32> to vector<8x32xf32>
    %119 = arith.addf %117, %118 : vector<8x32xf32>
    %c0_45 = arith.constant 0 : index
    %c0_46 = arith.constant 0 : index
    %120 = vector.load %arg10[%c0_45, %c0_46] : memref<32x32xf32, #tpu.memory_space<vmem>>, vector<32x32xf32>
    %cst_47 = arith.constant dense<0.000000e+00> : vector<8x32xf32>
    %121 = tpu.matmul %119, %120, %cst_47 {dimension_numbers = #tpu.dot_dimension_numbers<[1], [0], [0], [1], [0, 0, 1, 1], [], []>} : vector<8x32xf32>, vector<32x32xf32>, vector<8x32xf32> -> vector<8x32xf32>
    %c0_48 = arith.constant 0 : index
    %c0_49 = arith.constant 0 : index
    %122 = vector.load %arg11[%c0_48, %c0_49] : memref<1x32xf32, #tpu.memory_space<vmem>>, vector<1x32xf32>
    %123 = vector.broadcast %122 : vector<1x32xf32> to vector<8x32xf32>
    %124 = arith.addf %121, %123 : vector<8x32xf32>
    %c0_50 = arith.constant 0 : index
    %c0_51 = arith.constant 0 : index
    %125 = vector.load %arg12[%c0_50, %c0_51] : memref<32x64xf32, #tpu.memory_space<vmem>>, vector<32x64xf32>
    %cst_52 = arith.constant dense<0.000000e+00> : vector<8x64xf32>
    %126 = tpu.matmul %4, %125, %cst_52 {dimension_numbers = #tpu.dot_dimension_numbers<[1], [0], [0], [1], [0, 0, 1, 1], [], []>} : vector<8x32xf32>, vector<32x64xf32>, vector<8x64xf32> -> vector<8x64xf32>
    %c0_53 = arith.constant 0 : index
    %c0_54 = arith.constant 0 : index
    %127 = vector.load %arg13[%c0_53, %c0_54] : memref<1x64xf32, #tpu.memory_space<vmem>>, vector<1x64xf32>
    %128 = vector.broadcast %127 : vector<1x64xf32> to vector<8x64xf32>
    %129 = arith.addf %126, %128 : vector<8x64xf32>
    %130 = vector.extract_strided_slice %129 {offsets = [0, 0], sizes = [8, 32], strides = [1, 1]} : vector<8x64xf32> to vector<8x32xf32>
    %131 = vector.extract_strided_slice %129 {offsets = [0, 32], sizes = [8, 32], strides = [1, 1]} : vector<8x64xf32> to vector<8x32xf32>
    %132 = vector.extract_strided_slice %124 {offsets = [0, 0], sizes = [8, 8], strides = [1, 1]} : vector<8x32xf32> to vector<8x8xf32>
    %133 = vector.extract_strided_slice %130 {offsets = [0, 0], sizes = [8, 8], strides = [1, 1]} : vector<8x32xf32> to vector<8x8xf32>
    %134 = vector.extract_strided_slice %131 {offsets = [0, 0], sizes = [8, 8], strides = [1, 1]} : vector<8x32xf32> to vector<8x8xf32>
    %135 = tpu.transpose %133, [1, 0] : vector<8x8xf32> -> vector<8x8xf32>
    %cst_55 = arith.constant dense<0.000000e+00> : vector<8x8xf32>
    %136 = tpu.matmul %132, %135, %cst_55 {dimension_numbers = #tpu.dot_dimension_numbers<[1], [0], [0], [1], [0, 0, 1, 1], [], []>} : vector<8x8xf32>, vector<8x8xf32>, vector<8x8xf32> -> vector<8x8xf32>
    %cst_56 = arith.constant 0.353553385 : f32
    %137 = vector.broadcast %cst_56 : f32 to vector<8x8xf32>
    %138 = arith.mulf %136, %137 : vector<8x8xf32>
    %cst_57 = arith.constant dense<0xFF800000> : vector<8xf32>
    %139 = vector.multi_reduction <maximumf>, %138, %cst_57 [1] : vector<8x8xf32> to vector<8xf32>
    %140 = vector.shape_cast %139 : vector<8xf32> to vector<8x1xf32>
    %141 = vector.broadcast %140 : vector<8x1xf32> to vector<8x8xf32>
    %142 = arith.subf %138, %141 : vector<8x8xf32>
    %143 = math.exp %142 : vector<8x8xf32>
    %cst_58 = arith.constant dense<0.000000e+00> : vector<8xf32>
    %144 = vector.multi_reduction <add>, %143, %cst_58 [1] : vector<8x8xf32> to vector<8xf32>
    %145 = vector.shape_cast %144 : vector<8xf32> to vector<8x1xf32>
    %146 = tpu.reciprocal %145 {approx = true} : vector<8x1xf32> -> vector<8x1xf32>
    %147 = vector.broadcast %146 : vector<8x1xf32> to vector<8x8xf32>
    %148 = arith.mulf %143, %147 : vector<8x8xf32>
    %cst_59 = arith.constant dense<0.000000e+00> : vector<8x8xf32>
    %149 = tpu.matmul %148, %134, %cst_59 {dimension_numbers = #tpu.dot_dimension_numbers<[1], [0], [0], [1], [0, 0, 1, 1], [], []>} : vector<8x8xf32>, vector<8x8xf32>, vector<8x8xf32> -> vector<8x8xf32>
    %150 = vector.extract_strided_slice %124 {offsets = [0, 8], sizes = [8, 8], strides = [1, 1]} : vector<8x32xf32> to vector<8x8xf32>
    %151 = vector.extract_strided_slice %130 {offsets = [0, 8], sizes = [8, 8], strides = [1, 1]} : vector<8x32xf32> to vector<8x8xf32>
    %152 = vector.extract_strided_slice %131 {offsets = [0, 8], sizes = [8, 8], strides = [1, 1]} : vector<8x32xf32> to vector<8x8xf32>
    %153 = tpu.transpose %151, [1, 0] : vector<8x8xf32> -> vector<8x8xf32>
    %cst_60 = arith.constant dense<0.000000e+00> : vector<8x8xf32>
    %154 = tpu.matmul %150, %153, %cst_60 {dimension_numbers = #tpu.dot_dimension_numbers<[1], [0], [0], [1], [0, 0, 1, 1], [], []>} : vector<8x8xf32>, vector<8x8xf32>, vector<8x8xf32> -> vector<8x8xf32>
    %cst_61 = arith.constant 0.353553385 : f32
    %155 = vector.broadcast %cst_61 : f32 to vector<8x8xf32>
    %156 = arith.mulf %154, %155 : vector<8x8xf32>
    %cst_62 = arith.constant dense<0xFF800000> : vector<8xf32>
    %157 = vector.multi_reduction <maximumf>, %156, %cst_62 [1] : vector<8x8xf32> to vector<8xf32>
    %158 = vector.shape_cast %157 : vector<8xf32> to vector<8x1xf32>
    %159 = vector.broadcast %158 : vector<8x1xf32> to vector<8x8xf32>
    %160 = arith.subf %156, %159 : vector<8x8xf32>
    %161 = math.exp %160 : vector<8x8xf32>
    %cst_63 = arith.constant dense<0.000000e+00> : vector<8xf32>
    %162 = vector.multi_reduction <add>, %161, %cst_63 [1] : vector<8x8xf32> to vector<8xf32>
    %163 = vector.shape_cast %162 : vector<8xf32> to vector<8x1xf32>
    %164 = tpu.reciprocal %163 {approx = true} : vector<8x1xf32> -> vector<8x1xf32>
    %165 = vector.broadcast %164 : vector<8x1xf32> to vector<8x8xf32>
    %166 = arith.mulf %161, %165 : vector<8x8xf32>
    %cst_64 = arith.constant dense<0.000000e+00> : vector<8x8xf32>
    %167 = tpu.matmul %166, %152, %cst_64 {dimension_numbers = #tpu.dot_dimension_numbers<[1], [0], [0], [1], [0, 0, 1, 1], [], []>} : vector<8x8xf32>, vector<8x8xf32>, vector<8x8xf32> -> vector<8x8xf32>
    %168 = vector.extract_strided_slice %124 {offsets = [0, 16], sizes = [8, 8], strides = [1, 1]} : vector<8x32xf32> to vector<8x8xf32>
    %169 = vector.extract_strided_slice %130 {offsets = [0, 16], sizes = [8, 8], strides = [1, 1]} : vector<8x32xf32> to vector<8x8xf32>
    %170 = vector.extract_strided_slice %131 {offsets = [0, 16], sizes = [8, 8], strides = [1, 1]} : vector<8x32xf32> to vector<8x8xf32>
    %171 = tpu.transpose %169, [1, 0] : vector<8x8xf32> -> vector<8x8xf32>
    %cst_65 = arith.constant dense<0.000000e+00> : vector<8x8xf32>
    %172 = tpu.matmul %168, %171, %cst_65 {dimension_numbers = #tpu.dot_dimension_numbers<[1], [0], [0], [1], [0, 0, 1, 1], [], []>} : vector<8x8xf32>, vector<8x8xf32>, vector<8x8xf32> -> vector<8x8xf32>
    %cst_66 = arith.constant 0.353553385 : f32
    %173 = vector.broadcast %cst_66 : f32 to vector<8x8xf32>
    %174 = arith.mulf %172, %173 : vector<8x8xf32>
    %cst_67 = arith.constant dense<0xFF800000> : vector<8xf32>
    %175 = vector.multi_reduction <maximumf>, %174, %cst_67 [1] : vector<8x8xf32> to vector<8xf32>
    %176 = vector.shape_cast %175 : vector<8xf32> to vector<8x1xf32>
    %177 = vector.broadcast %176 : vector<8x1xf32> to vector<8x8xf32>
    %178 = arith.subf %174, %177 : vector<8x8xf32>
    %179 = math.exp %178 : vector<8x8xf32>
    %cst_68 = arith.constant dense<0.000000e+00> : vector<8xf32>
    %180 = vector.multi_reduction <add>, %179, %cst_68 [1] : vector<8x8xf32> to vector<8xf32>
    %181 = vector.shape_cast %180 : vector<8xf32> to vector<8x1xf32>
    %182 = tpu.reciprocal %181 {approx = true} : vector<8x1xf32> -> vector<8x1xf32>
    %183 = vector.broadcast %182 : vector<8x1xf32> to vector<8x8xf32>
    %184 = arith.mulf %179, %183 : vector<8x8xf32>
    %cst_69 = arith.constant dense<0.000000e+00> : vector<8x8xf32>
    %185 = tpu.matmul %184, %170, %cst_69 {dimension_numbers = #tpu.dot_dimension_numbers<[1], [0], [0], [1], [0, 0, 1, 1], [], []>} : vector<8x8xf32>, vector<8x8xf32>, vector<8x8xf32> -> vector<8x8xf32>
    %186 = vector.extract_strided_slice %124 {offsets = [0, 24], sizes = [8, 8], strides = [1, 1]} : vector<8x32xf32> to vector<8x8xf32>
    %187 = vector.extract_strided_slice %130 {offsets = [0, 24], sizes = [8, 8], strides = [1, 1]} : vector<8x32xf32> to vector<8x8xf32>
    %188 = vector.extract_strided_slice %131 {offsets = [0, 24], sizes = [8, 8], strides = [1, 1]} : vector<8x32xf32> to vector<8x8xf32>
    %189 = tpu.transpose %187, [1, 0] : vector<8x8xf32> -> vector<8x8xf32>
    %cst_70 = arith.constant dense<0.000000e+00> : vector<8x8xf32>
    %190 = tpu.matmul %186, %189, %cst_70 {dimension_numbers = #tpu.dot_dimension_numbers<[1], [0], [0], [1], [0, 0, 1, 1], [], []>} : vector<8x8xf32>, vector<8x8xf32>, vector<8x8xf32> -> vector<8x8xf32>
    %cst_71 = arith.constant 0.353553385 : f32
    %191 = vector.broadcast %cst_71 : f32 to vector<8x8xf32>
    %192 = arith.mulf %190, %191 : vector<8x8xf32>
    %cst_72 = arith.constant dense<0xFF800000> : vector<8xf32>
    %193 = vector.multi_reduction <maximumf>, %192, %cst_72 [1] : vector<8x8xf32> to vector<8xf32>
    %194 = vector.shape_cast %193 : vector<8xf32> to vector<8x1xf32>
    %195 = vector.broadcast %194 : vector<8x1xf32> to vector<8x8xf32>
    %196 = arith.subf %192, %195 : vector<8x8xf32>
    %197 = math.exp %196 : vector<8x8xf32>
    %cst_73 = arith.constant dense<0.000000e+00> : vector<8xf32>
    %198 = vector.multi_reduction <add>, %197, %cst_73 [1] : vector<8x8xf32> to vector<8xf32>
    %199 = vector.shape_cast %198 : vector<8xf32> to vector<8x1xf32>
    %200 = tpu.reciprocal %199 {approx = true} : vector<8x1xf32> -> vector<8x1xf32>
    %201 = vector.broadcast %200 : vector<8x1xf32> to vector<8x8xf32>
    %202 = arith.mulf %197, %201 : vector<8x8xf32>
    %cst_74 = arith.constant dense<0.000000e+00> : vector<8x8xf32>
    %203 = tpu.matmul %202, %188, %cst_74 {dimension_numbers = #tpu.dot_dimension_numbers<[1], [0], [0], [1], [0, 0, 1, 1], [], []>} : vector<8x8xf32>, vector<8x8xf32>, vector<8x8xf32> -> vector<8x8xf32>
    %204 = tpu.concatenate %149, %167, %185, %203 in 1 : vector<8x8xf32>, vector<8x8xf32>, vector<8x8xf32>, vector<8x8xf32> -> vector<8x32xf32>
    %c0_75 = arith.constant 0 : index
    %c0_76 = arith.constant 0 : index
    %205 = vector.load %arg14[%c0_75, %c0_76] : memref<32x32xf32, #tpu.memory_space<vmem>>, vector<32x32xf32>
    %cst_77 = arith.constant dense<0.000000e+00> : vector<8x32xf32>
    %206 = tpu.matmul %204, %205, %cst_77 {dimension_numbers = #tpu.dot_dimension_numbers<[1], [0], [0], [1], [0, 0, 1, 1], [], []>} : vector<8x32xf32>, vector<32x32xf32>, vector<8x32xf32> -> vector<8x32xf32>
    %c0_78 = arith.constant 0 : index
    %c0_79 = arith.constant 0 : index
    %207 = vector.load %arg15[%c0_78, %c0_79] : memref<1x32xf32, #tpu.memory_space<vmem>>, vector<1x32xf32>
    %208 = vector.broadcast %207 : vector<1x32xf32> to vector<8x32xf32>
    %209 = arith.addf %206, %208 : vector<8x32xf32>
    %c0_80 = arith.constant 0 : index
    %c0_81 = arith.constant 0 : index
    %210 = vector.load %arg16[%c0_80, %c0_81] : memref<1x32xf32, #tpu.memory_space<vmem>>, vector<1x32xf32>
    %c0_82 = arith.constant 0 : index
    %c0_83 = arith.constant 0 : index
    %211 = vector.load %arg17[%c0_82, %c0_83] : memref<1x32xf32, #tpu.memory_space<vmem>>, vector<1x32xf32>
    %212 = arith.addf %119, %209 : vector<8x32xf32>
    %cst_84 = arith.constant dense<0.000000e+00> : vector<8xf32>
    %213 = vector.multi_reduction <add>, %212, %cst_84 [1] : vector<8x32xf32> to vector<8xf32>
    %214 = vector.shape_cast %213 : vector<8xf32> to vector<8x1xf32>
    %cst_85 = arith.constant 3.200000e+01 : f32
    %215 = vector.broadcast %cst_85 : f32 to vector<8x1xf32>
    %216 = arith.divf %214, %215 : vector<8x1xf32>
    %217 = vector.broadcast %216 : vector<8x1xf32> to vector<8x32xf32>
    %218 = arith.subf %212, %217 : vector<8x32xf32>
    %219 = arith.mulf %218, %218 : vector<8x32xf32>
    %cst_86 = arith.constant dense<0.000000e+00> : vector<8xf32>
    %220 = vector.multi_reduction <add>, %219, %cst_86 [1] : vector<8x32xf32> to vector<8xf32>
    %221 = vector.shape_cast %220 : vector<8xf32> to vector<8x1xf32>
    %cst_87 = arith.constant 3.200000e+01 : f32
    %222 = vector.broadcast %cst_87 : f32 to vector<8x1xf32>
    %223 = arith.divf %221, %222 : vector<8x1xf32>
    %224 = vector.broadcast %216 : vector<8x1xf32> to vector<8x32xf32>
    %225 = arith.subf %212, %224 : vector<8x32xf32>
    %cst_88 = arith.constant 9.99999974E-6 : f32
    %226 = vector.broadcast %cst_88 : f32 to vector<8x1xf32>
    %227 = arith.addf %223, %226 : vector<8x1xf32>
    %228 = math.rsqrt %227 : vector<8x1xf32>
    %229 = vector.broadcast %228 : vector<8x1xf32> to vector<8x32xf32>
    %230 = arith.mulf %225, %229 : vector<8x32xf32>
    %231 = vector.broadcast %210 : vector<1x32xf32> to vector<8x32xf32>
    %232 = arith.mulf %230, %231 : vector<8x32xf32>
    %233 = vector.broadcast %211 : vector<1x32xf32> to vector<8x32xf32>
    %234 = arith.addf %232, %233 : vector<8x32xf32>
    %c0_89 = arith.constant 0 : index
    %c0_90 = arith.constant 0 : index
    %235 = vector.load %arg18[%c0_89, %c0_90] : memref<32x64xf32, #tpu.memory_space<vmem>>, vector<32x64xf32>
    %cst_91 = arith.constant dense<0.000000e+00> : vector<8x64xf32>
    %236 = tpu.matmul %234, %235, %cst_91 {dimension_numbers = #tpu.dot_dimension_numbers<[1], [0], [0], [1], [0, 0, 1, 1], [], []>} : vector<8x32xf32>, vector<32x64xf32>, vector<8x64xf32> -> vector<8x64xf32>
    %c0_92 = arith.constant 0 : index
    %c0_93 = arith.constant 0 : index
    %237 = vector.load %arg19[%c0_92, %c0_93] : memref<1x64xf32, #tpu.memory_space<vmem>>, vector<1x64xf32>
    %238 = vector.broadcast %237 : vector<1x64xf32> to vector<8x64xf32>
    %239 = arith.addf %236, %238 : vector<8x64xf32>
    %cst_94 = arith.constant 0.000000e+00 : f32
    %240 = vector.broadcast %cst_94 : f32 to vector<8x64xf32>
    %241 = arith.maximumf %239, %240 : vector<8x64xf32>
    %c0_95 = arith.constant 0 : index
    %c0_96 = arith.constant 0 : index
    %242 = vector.load %arg20[%c0_95, %c0_96] : memref<64x32xf32, #tpu.memory_space<vmem>>, vector<64x32xf32>
    %cst_97 = arith.constant dense<0.000000e+00> : vector<8x32xf32>
    %243 = tpu.matmul %241, %242, %cst_97 {dimension_numbers = #tpu.dot_dimension_numbers<[1], [0], [0], [1], [0, 0, 1, 1], [], []>} : vector<8x64xf32>, vector<64x32xf32>, vector<8x32xf32> -> vector<8x32xf32>
    %c0_98 = arith.constant 0 : index
    %c0_99 = arith.constant 0 : index
    %244 = vector.load %arg21[%c0_98, %c0_99] : memref<1x32xf32, #tpu.memory_space<vmem>>, vector<1x32xf32>
    %245 = vector.broadcast %244 : vector<1x32xf32> to vector<8x32xf32>
    %246 = arith.addf %243, %245 : vector<8x32xf32>
    %c0_100 = arith.constant 0 : index
    %c0_101 = arith.constant 0 : index
    %247 = vector.load %arg22[%c0_100, %c0_101] : memref<1x32xf32, #tpu.memory_space<vmem>>, vector<1x32xf32>
    %c0_102 = arith.constant 0 : index
    %c0_103 = arith.constant 0 : index
    %248 = vector.load %arg23[%c0_102, %c0_103] : memref<1x32xf32, #tpu.memory_space<vmem>>, vector<1x32xf32>
    %249 = arith.addf %234, %246 : vector<8x32xf32>
    %cst_104 = arith.constant dense<0.000000e+00> : vector<8xf32>
    %250 = vector.multi_reduction <add>, %249, %cst_104 [1] : vector<8x32xf32> to vector<8xf32>
    %251 = vector.shape_cast %250 : vector<8xf32> to vector<8x1xf32>
    %cst_105 = arith.constant 3.200000e+01 : f32
    %252 = vector.broadcast %cst_105 : f32 to vector<8x1xf32>
    %253 = arith.divf %251, %252 : vector<8x1xf32>
    %254 = vector.broadcast %253 : vector<8x1xf32> to vector<8x32xf32>
    %255 = arith.subf %249, %254 : vector<8x32xf32>
    %256 = arith.mulf %255, %255 : vector<8x32xf32>
    %cst_106 = arith.constant dense<0.000000e+00> : vector<8xf32>
    %257 = vector.multi_reduction <add>, %256, %cst_106 [1] : vector<8x32xf32> to vector<8xf32>
    %258 = vector.shape_cast %257 : vector<8xf32> to vector<8x1xf32>
    %cst_107 = arith.constant 3.200000e+01 : f32
    %259 = vector.broadcast %cst_107 : f32 to vector<8x1xf32>
    %260 = arith.divf %258, %259 : vector<8x1xf32>
    %261 = vector.broadcast %253 : vector<8x1xf32> to vector<8x32xf32>
    %262 = arith.subf %249, %261 : vector<8x32xf32>
    %cst_108 = arith.constant 9.99999974E-6 : f32
    %263 = vector.broadcast %cst_108 : f32 to vector<8x1xf32>
    %264 = arith.addf %260, %263 : vector<8x1xf32>
    %265 = math.rsqrt %264 : vector<8x1xf32>
    %266 = vector.broadcast %265 : vector<8x1xf32> to vector<8x32xf32>
    %267 = arith.mulf %262, %266 : vector<8x32xf32>
    %268 = vector.broadcast %247 : vector<1x32xf32> to vector<8x32xf32>
    %269 = arith.mulf %267, %268 : vector<8x32xf32>
    %270 = vector.broadcast %248 : vector<1x32xf32> to vector<8x32xf32>
    %271 = arith.addf %269, %270 : vector<8x32xf32>
    %c0_109 = arith.constant 0 : index
    %c0_110 = arith.constant 0 : index
    %c0_111 = arith.constant 0 : index
    %272 = vector.load %arg24[%c0_109, %c0_110, %c0_111] : memref<1x8x32xf32, #tpu.memory_space<vmem>>, vector<1x8x32xf32>
    %273 = vector.shape_cast %272 : vector<1x8x32xf32> to vector<8x32xf32>
    %274 = vector.shape_cast %271 : vector<8x32xf32> to vector<1x8x32xf32>
    tpu.vector_store %arg24[%c0_109, %c0_110, %c0_111], %274 {strides = array<i32>} : memref<1x8x32xf32, #tpu.memory_space<vmem>>, vector<1x8x32xf32>,
    return
  }
  func.func @transform_0(%arg0: i32) -> (i32, i32, i32) {
    %c0_i32 = arith.constant 0 : i32
    %c0_i32_0 = arith.constant 0 : i32
    %c0_i32_1 = arith.constant 0 : i32
    return %arg0, %c0_i32, %c0_i32_0 : i32, i32, i32
  }
  func.func @transform_1(%arg0: i32) -> (i32, i32, i32) {
    %c0_i32 = arith.constant 0 : i32
    %c0_i32_0 = arith.constant 0 : i32
    %c0_i32_1 = arith.constant 0 : i32
    return %arg0, %c0_i32, %c0_i32_0 : i32, i32, i32
  }
  func.func @transform_2(%arg0: i32) -> (i32, i32) {
    %c0_i32 = arith.constant 0 : i32
    %c0_i32_0 = arith.constant 0 : i32
    %c0_i32_1 = arith.constant 0 : i32
    return %c0_i32, %c0_i32_0 : i32, i32
  }
  func.func @transform_3(%arg0: i32) -> (i32, i32) {
    %c0_i32 = arith.constant 0 : i32
    %c0_i32_0 = arith.constant 0 : i32
    %c0_i32_1 = arith.constant 0 : i32
    return %c0_i32, %c0_i32_0 : i32, i32
  }
  func.func @transform_4(%arg0: i32) -> (i32, i32) {
    %c0_i32 = arith.constant 0 : i32
    %c0_i32_0 = arith.constant 0 : i32
    %c0_i32_1 = arith.constant 0 : i32
    return %c0_i32, %c0_i32_0 : i32, i32
  }
  func.func @transform_5(%arg0: i32) -> (i32, i32) {
    %c0_i32 = arith.constant 0 : i32
    %c0_i32_0 = arith.constant 0 : i32
    %c0_i32_1 = arith.constant 0 : i32
    return %c0_i32, %c0_i32_0 : i32, i32
  }
  func.func @transform_6(%arg0: i32) -> (i32, i32) {
    %c0_i32 = arith.constant 0 : i32
    %c0_i32_0 = arith.constant 0 : i32
    %c0_i32_1 = arith.constant 0 : i32
    return %c0_i32, %c0_i32_0 : i32, i32
  }
  func.func @transform_7(%arg0: i32) -> (i32, i32) {
    %c0_i32 = arith.constant 0 : i32
    %c0_i32_0 = arith.constant 0 : i32
    %c0_i32_1 = arith.constant 0 : i32
    return %c0_i32, %c0_i32_0 : i32, i32
  }
  func.func @transform_8(%arg0: i32) -> (i32, i32) {
    %c0_i32 = arith.constant 0 : i32
    %c0_i32_0 = arith.constant 0 : i32
    %c0_i32_1 = arith.constant 0 : i32
    return %c0_i32, %c0_i32_0 : i32, i32
  }
  func.func @transform_9(%arg0: i32) -> (i32, i32) {
    %c0_i32 = arith.constant 0 : i32
    %c0_i32_0 = arith.constant 0 : i32
    %c0_i32_1 = arith.constant 0 : i32
    return %c0_i32, %c0_i32_0 : i32, i32
  }
  func.func @transform_10(%arg0: i32) -> (i32, i32) {
    %c0_i32 = arith.constant 0 : i32
    %c0_i32_0 = arith.constant 0 : i32
    %c0_i32_1 = arith.constant 0 : i32
    return %c0_i32, %c0_i32_0 : i32, i32
  }
  func.func @transform_11(%arg0: i32) -> (i32, i32) {
    %c0_i32 = arith.constant 0 : i32
    %c0_i32_0 = arith.constant 0 : i32
    %c0_i32_1 = arith.constant 0 : i32
    return %c0_i32, %c0_i32_0 : i32, i32
  }
  func.func @transform_12(%arg0: i32) -> (i32, i32) {
    %c0_i32 = arith.constant 0 : i32
    %c0_i32_0 = arith.constant 0 : i32
    %c0_i32_1 = arith.constant 0 : i32
    return %c0_i32, %c0_i32_0 : i32, i32
  }
  func.func @transform_13(%arg0: i32) -> (i32, i32) {
    %c0_i32 = arith.constant 0 : i32
    %c0_i32_0 = arith.constant 0 : i32
    %c0_i32_1 = arith.constant 0 : i32
    return %c0_i32, %c0_i32_0 : i32, i32
  }
  func.func @transform_14(%arg0: i32) -> (i32, i32) {
    %c0_i32 = arith.constant 0 : i32
    %c0_i32_0 = arith.constant 0 : i32
    %c0_i32_1 = arith.constant 0 : i32
    return %c0_i32, %c0_i32_0 : i32, i32
  }
  func.func @transform_15(%arg0: i32) -> (i32, i32) {
    %c0_i32 = arith.constant 0 : i32
    %c0_i32_0 = arith.constant 0 : i32
    %c0_i32_1 = arith.constant 0 : i32
    return %c0_i32, %c0_i32_0 : i32, i32
  }
  func.func @transform_16(%arg0: i32) -> (i32, i32) {
    %c0_i32 = arith.constant 0 : i32
    %c0_i32_0 = arith.constant 0 : i32
    %c0_i32_1 = arith.constant 0 : i32
    return %c0_i32, %c0_i32_0 : i32, i32
  }
  func.func @transform_17(%arg0: i32) -> (i32, i32) {
    %c0_i32 = arith.constant 0 : i32
    %c0_i32_0 = arith.constant 0 : i32
    %c0_i32_1 = arith.constant 0 : i32
    return %c0_i32, %c0_i32_0 : i32, i32
  }
  func.func @transform_18(%arg0: i32) -> (i32, i32) {
    %c0_i32 = arith.constant 0 : i32
    %c0_i32_0 = arith.constant 0 : i32
    %c0_i32_1 = arith.constant 0 : i32
    return %c0_i32, %c0_i32_0 : i32, i32
  }
  func.func @transform_19(%arg0: i32) -> (i32, i32) {
    %c0_i32 = arith.constant 0 : i32
    %c0_i32_0 = arith.constant 0 : i32
    %c0_i32_1 = arith.constant 0 : i32
    return %c0_i32, %c0_i32_0 : i32, i32
  }
  func.func @transform_20(%arg0: i32) -> (i32, i32) {
    %c0_i32 = arith.constant 0 : i32
    %c0_i32_0 = arith.constant 0 : i32
    %c0_i32_1 = arith.constant 0 : i32
    return %c0_i32, %c0_i32_0 : i32, i32
  }
  func.func @transform_21(%arg0: i32) -> (i32, i32) {
    %c0_i32 = arith.constant 0 : i32
    %c0_i32_0 = arith.constant 0 : i32
    %c0_i32_1 = arith.constant 0 : i32
    return %c0_i32, %c0_i32_0 : i32, i32
  }
  func.func @transform_22(%arg0: i32) -> (i32, i32) {
    %c0_i32 = arith.constant 0 : i32
    %c0_i32_0 = arith.constant 0 : i32
    %c0_i32_1 = arith.constant 0 : i32
    return %c0_i32, %c0_i32_0 : i32, i32
  }
  func.func @transform_23(%arg0: i32) -> (i32, i32, i32) {
    %c0_i32 = arith.constant 0 : i32
    %c0_i32_0 = arith.constant 0 : i32
    %c0_i32_1 = arith.constant 0 : i32
    return %arg0, %c0_i32, %c0_i32_0 : i32, i32, i32
  }
}

module attributes {stable_mosaic.version = 11 : i64} {
  func.func @_decoder_layer_kernel(%arg0: i32, %arg1: memref<1x8x32xf32, #tpu.memory_space<vmem>>, %arg2: memref<1x8x32xf32, #tpu.memory_space<vmem>>, %arg3: memref<8x8xf32, #tpu.memory_space<vmem>>, %arg4: memref<32x96xf32, #tpu.memory_space<vmem>>, %arg5: memref<1x96xf32, #tpu.memory_space<vmem>>, %arg6: memref<32x32xf32, #tpu.memory_space<vmem>>, %arg7: memref<1x32xf32, #tpu.memory_space<vmem>>, %arg8: memref<1x32xf32, #tpu.memory_space<vmem>>, %arg9: memref<1x32xf32, #tpu.memory_space<vmem>>, %arg10: memref<32x32xf32, #tpu.memory_space<vmem>>, %arg11: memref<1x32xf32, #tpu.memory_space<vmem>>, %arg12: memref<32x64xf32, #tpu.memory_space<vmem>>, %arg13: memref<1x64xf32, #tpu.memory_space<vmem>>, %arg14: memref<32x32xf32, #tpu.memory_space<vmem>>, %arg15: memref<1x32xf32, #tpu.memory_space<vmem>>, %arg16: memref<1x32xf32, #tpu.memory_space<vmem>>, %arg17: memref<1x32xf32, #tpu.memory_space<vmem>>, %arg18: memref<32x64xf32, #tpu.memory_space<vmem>>, %arg19: memref<1x64xf32, #tpu.memory_space<vmem>>, %arg20: memref<64x32xf32, #tpu.memory_space<vmem>>, %arg21: memref<1x32xf32, #tpu.memory_space<vmem>>, %arg22: memref<1x32xf32, #tpu.memory_space<vmem>>, %arg23: memref<1x32xf32, #tpu.memory_space<vmem>>, %arg24: memref<1x8x32xf32, #tpu.memory_space<vmem>>) attributes {dimension_semantics = [#tpu.dimension_semantics<parallel>], iteration_bounds = array<i64: 2>, scalar_prefetch = 0 : i64, scratch_operands = 0 : i64, tpu.core_type = #tpu.core_type<tc>, window_params = [{transform_indices = @transform_0, window_bounds = array<i64: 1, 8, 32>}, {transform_indices = @transform_1, window_bounds = array<i64: 1, 8, 32>}, {pipeline_mode = #tpu.pipeline_mode<synchronous>, transform_indices = @transform_2, window_bounds = array<i64: 8, 8>}, {pipeline_mode = #tpu.pipeline_mode<synchronous>, transform_indices = @transform_3, window_bounds = array<i64: 32, 96>}, {pipeline_mode = #tpu.pipeline_mode<synchronous>, transform_indices = @transform_4, window_bounds = array<i64: 1, 96>}, {pipeline_mode = #tpu.pipeline_mode<synchronous>, transform_indices = @transform_5, window_bounds = array<i64: 32, 32>}, {pipeline_mode = #tpu.pipeline_mode<synchronous>, transform_indices = @transform_6, window_bounds = array<i64: 1, 32>}, {pipeline_mode = #tpu.pipeline_mode<synchronous>, transform_indices = @transform_7, window_bounds = array<i64: 1, 32>}, {pipeline_mode = #tpu.pipeline_mode<synchronous>, transform_indices = @transform_8, window_bounds = array<i64: 1, 32>}, {pipeline_mode = #tpu.pipeline_mode<synchronous>, transform_indices = @transform_9, window_bounds = array<i64: 32, 32>}, {pipeline_mode = #tpu.pipeline_mode<synchronous>, transform_indices = @transform_10, window_bounds = array<i64: 1, 32>}, {pipeline_mode = #tpu.pipeline_mode<synchronous>, transform_indices = @transform_11, window_bounds = array<i64: 32, 64>}, {pipeline_mode = #tpu.pipeline_mode<synchronous>, transform_indices = @transform_12, window_bounds = array<i64: 1, 64>}, {pipeline_mode = #tpu.pipeline_mode<synchronous>, transform_indices = @transform_13, window_bounds = array<i64: 32, 32>}, {pipeline_mode = #tpu.pipeline_mode<synchronous>, transform_indices = @transform_14, window_bounds = array<i64: 1, 32>}, {pipeline_mode = #tpu.pipeline_mode<synchronous>, transform_indices = @transform_15, window_bounds = array<i64: 1, 32>}, {pipeline_mode = #tpu.pipeline_mode<synchronous>, transform_indices = @transform_16, window_bounds = array<i64: 1, 32>}, {pipeline_mode = #tpu.pipeline_mode<synchronous>, transform_indices = @transform_17, window_bounds = array<i64: 32, 64>}, {pipeline_mode = #tpu.pipeline_mode<synchronous>, transform_indices = @transform_18, window_bounds = array<i64: 1, 64>}, {pipeline_mode = #tpu.pipeline_mode<synchronous>, transform_indices = @transform_19, window_bounds = array<i64: 64, 32>}, {pipeline_mode = #tpu.pipeline_mode<synchronous>, transform_indices = @transform_20, window_bounds = array<i64: 1, 32>}, {pipeline_mode = #tpu.pipeline_mode<synchronous>, transform_indices = @transform_21, window_bounds = array<i64: 1, 32>}, {pipeline_mode = #tpu.pipeline_mode<synchronous>, transform_indices = @transform_22, window_bounds = array<i64: 1, 32>}, {transform_indices = @transform_23, window_bounds = array<i64: 1, 8, 32>}]} {
    %c0 = arith.constant 0 : index
    %c0_0 = arith.constant 0 : index
    %0 = vector.load %arg3[%c0, %c0_0] : memref<8x8xf32, #tpu.memory_space<vmem>>, vector<8x8xf32>
    %c0_1 = arith.constant 0 : index
    %c0_2 = arith.constant 0 : index
    %c0_3 = arith.constant 0 : index
    %1 = vector.load %arg1[%c0_1, %c0_2, %c0_3] : memref<1x8x32xf32, #tpu.memory_space<vmem>>, vector<1x8x32xf32>
    %2 = vector.shape_cast %1 : vector<1x8x32xf32> to vector<8x32xf32>
    %c0_4 = arith.constant 0 : index
    %c0_5 = arith.constant 0 : index
    %c0_6 = arith.constant 0 : index
    %3 = vector.load %arg2[%c0_4, %c0_5, %c0_6] : memref<1x8x32xf32, #tpu.memory_space<vmem>>, vector<1x8x32xf32>
    %4 = vector.shape_cast %3 : vector<1x8x32xf32> to vector<8x32xf32>
    %c0_7 = arith.constant 0 : index
    %c0_8 = arith.constant 0 : index
    %5 = vector.load %arg4[%c0_7, %c0_8] : memref<32x96xf32, #tpu.memory_space<vmem>>, vector<32x96xf32>
    %cst = arith.constant dense<0.000000e+00> : vector<8x96xf32>
    %6 = tpu.matmul %2, %5, %cst {dimension_numbers = #tpu.dot_dimension_numbers<[1], [0], [0], [1], [0, 0, 1, 1], [], []>} : vector<8x32xf32>, vector<32x96xf32>, vector<8x96xf32> -> vector<8x96xf32>
    %c0_9 = arith.constant 0 : index
    %c0_10 = arith.constant 0 : index
    %7 = vector.load %arg5[%c0_9, %c0_10] : memref<1x96xf32, #tpu.memory_space<vmem>>, vector<1x96xf32>
    %8 = vector.broadcast %7 : vector<1x96xf32> to vector<8x96xf32>
    %9 = arith.addf %6, %8 : vector<8x96xf32>
    %10 = vector.extract_strided_slice %9 {offsets = [0, 0], sizes = [8, 32], strides = [1, 1]} : vector<8x96xf32> to vector<8x32xf32>
    %11 = vector.extract_strided_slice %9 {offsets = [0, 32], sizes = [8, 32], strides = [1, 1]} : vector<8x96xf32> to vector<8x32xf32>
    %12 = vector.extract_strided_slice %9 {offsets = [0, 64], sizes = [8, 32], strides = [1, 1]} : vector<8x96xf32> to vector<8x32xf32>
    %13 = vector.extract_strided_slice %10 {offsets = [0, 0], sizes = [8, 8], strides = [1, 1]} : vector<8x32xf32> to vector<8x8xf32>
    %14 = vector.extract_strided_slice %11 {offsets = [0, 0], sizes = [8, 8], strides = [1, 1]} : vector<8x32xf32> to vector<8x8xf32>
    %15 = vector.extract_strided_slice %12 {offsets = [0, 0], sizes = [8, 8], strides = [1, 1]} : vector<8x32xf32> to vector<8x8xf32>
    %16 = tpu.transpose %14, [1, 0] : vector<8x8xf32> -> vector<8x8xf32>
    %cst_11 = arith.constant dense<0.000000e+00> : vector<8x8xf32>
    %17 = tpu.matmul %13, %16, %cst_11 {dimension_numbers = #tpu.dot_dimension_numbers<[1], [0], [0], [1], [0, 0, 1, 1], [], []>} : vector<8x8xf32>, vector<8x8xf32>, vector<8x8xf32> -> vector<8x8xf32>
    %cst_12 = arith.constant 0.353553385 : f32
    %18 = vector.broadcast %cst_12 : f32 to vector<8x8xf32>
    %19 = arith.mulf %17, %18 : vector<8x8xf32>
    %20 = arith.addf %19, %0 : vector<8x8xf32>
    %cst_13 = arith.constant dense<0xFF800000> : vector<8xf32>
    %21 = vector.multi_reduction <maximumf>, %20, %cst_13 [1] : vector<8x8xf32> to vector<8xf32>
    %22 = vector.shape_cast %21 : vector<8xf32> to vector<8x1xf32>
    %23 = vector.broadcast %22 : vector<8x1xf32> to vector<8x8xf32>
    %24 = arith.subf %20, %23 : vector<8x8xf32>
    %25 = math.exp %24 : vector<8x8xf32>
    %cst_14 = arith.constant dense<0.000000e+00> : vector<8xf32>
    %26 = vector.multi_reduction <add>, %25, %cst_14 [1] : vector<8x8xf32> to vector<8xf32>
    %27 = vector.shape_cast %26 : vector<8xf32> to vector<8x1xf32>
    %28 = tpu.reciprocal %27 {approx = true} : vector<8x1xf32> -> vector<8x1xf32>
    %29 = vector.broadcast %28 : vector<8x1xf32> to vector<8x8xf32>
    %30 = arith.mulf %25, %29 : vector<8x8xf32>
    %cst_15 = arith.constant dense<0.000000e+00> : vector<8x8xf32>
    %31 = tpu.matmul %30, %15, %cst_15 {dimension_numbers = #tpu.dot_dimension_numbers<[1], [0], [0], [1], [0, 0, 1, 1], [], []>} : vector<8x8xf32>, vector<8x8xf32>, vector<8x8xf32> -> vector<8x8xf32>
    %32 = vector.extract_strided_slice %10 {offsets = [0, 8], sizes = [8, 8], strides = [1, 1]} : vector<8x32xf32> to vector<8x8xf32>
    %33 = vector.extract_strided_slice %11 {offsets = [0, 8], sizes = [8, 8], strides = [1, 1]} : vector<8x32xf32> to vector<8x8xf32>
    %34 = vector.extract_strided_slice %12 {offsets = [0, 8], sizes = [8, 8], strides = [1, 1]} : vector<8x32xf32> to vector<8x8xf32>
    %35 = tpu.transpose %33, [1, 0] : vector<8x8xf32> -> vector<8x8xf32>
    %cst_16 = arith.constant dense<0.000000e+00> : vector<8x8xf32>
    %36 = tpu.matmul %32, %35, %cst_16 {dimension_numbers = #tpu.dot_dimension_numbers<[1], [0], [0], [1], [0, 0, 1, 1], [], []>} : vector<8x8xf32>, vector<8x8xf32>, vector<8x8xf32> -> vector<8x8xf32>
    %cst_17 = arith.constant 0.353553385 : f32
    %37 = vector.broadcast %cst_17 : f32 to vector<8x8xf32>
    %38 = arith.mulf %36, %37 : vector<8x8xf32>
    %39 = arith.addf %38, %0 : vector<8x8xf32>
    %cst_18 = arith.constant dense<0xFF800000> : vector<8xf32>
    %40 = vector.multi_reduction <maximumf>, %39, %cst_18 [1] : vector<8x8xf32> to vector<8xf32>
    %41 = vector.shape_cast %40 : vector<8xf32> to vector<8x1xf32>
    %42 = vector.broadcast %41 : vector<8x1xf32> to vector<8x8xf32>
    %43 = arith.subf %39, %42 : vector<8x8xf32>
    %44 = math.exp %43 : vector<8x8xf32>
    %cst_19 = arith.constant dense<0.000000e+00> : vector<8xf32>
    %45 = vector.multi_reduction <add>, %44, %cst_19 [1] : vector<8x8xf32> to vector<8xf32>
    %46 = vector.shape_cast %45 : vector<8xf32> to vector<8x1xf32>
    %47 = tpu.reciprocal %46 {approx = true} : vector<8x1xf32> -> vector<8x1xf32>
    %48 = vector.broadcast %47 : vector<8x1xf32> to vector<8x8xf32>
    %49 = arith.mulf %44, %48 : vector<8x8xf32>
    %cst_20 = arith.constant dense<0.000000e+00> : vector<8x8xf32>
    %50 = tpu.matmul %49, %34, %cst_20 {dimension_numbers = #tpu.dot_dimension_numbers<[1], [0], [0], [1], [0, 0, 1, 1], [], []>} : vector<8x8xf32>, vector<8x8xf32>, vector<8x8xf32> -> vector<8x8xf32>
    %51 = vector.extract_strided_slice %10 {offsets = [0, 16], sizes = [8, 8], strides = [1, 1]} : vector<8x32xf32> to vector<8x8xf32>
    %52 = vector.extract_strided_slice %11 {offsets = [0, 16], sizes = [8, 8], strides = [1, 1]} : vector<8x32xf32> to vector<8x8xf32>
    %53 = vector.extract_strided_slice %12 {offsets = [0, 16], sizes = [8, 8], strides = [1, 1]} : vector<8x32xf32> to vector<8x8xf32>
    %54 = tpu.transpose %52, [1, 0] : vector<8x8xf32> -> vector<8x8xf32>
    %cst_21 = arith.constant dense<0.000000e+00> : vector<8x8xf32>
    %55 = tpu.matmul %51, %54, %cst_21 {dimension_numbers = #tpu.dot_dimension_numbers<[1], [0], [0], [1], [0, 0, 1, 1], [], []>} : vector<8x8xf32>, vector<8x8xf32>, vector<8x8xf32> -> vector<8x8xf32>
    %cst_22 = arith.constant 0.353553385 : f32
    %56 = vector.broadcast %cst_22 : f32 to vector<8x8xf32>
    %57 = arith.mulf %55, %56 : vector<8x8xf32>
    %58 = arith.addf %57, %0 : vector<8x8xf32>
    %cst_23 = arith.constant dense<0xFF800000> : vector<8xf32>
    %59 = vector.multi_reduction <maximumf>, %58, %cst_23 [1] : vector<8x8xf32> to vector<8xf32>
    %60 = vector.shape_cast %59 : vector<8xf32> to vector<8x1xf32>
    %61 = vector.broadcast %60 : vector<8x1xf32> to vector<8x8xf32>
    %62 = arith.subf %58, %61 : vector<8x8xf32>
    %63 = math.exp %62 : vector<8x8xf32>
    %cst_24 = arith.constant dense<0.000000e+00> : vector<8xf32>
    %64 = vector.multi_reduction <add>, %63, %cst_24 [1] : vector<8x8xf32> to vector<8xf32>
    %65 = vector.shape_cast %64 : vector<8xf32> to vector<8x1xf32>
    %66 = tpu.reciprocal %65 {approx = true} : vector<8x1xf32> -> vector<8x1xf32>
    %67 = vector.broadcast %66 : vector<8x1xf32> to vector<8x8xf32>
    %68 = arith.mulf %63, %67 : vector<8x8xf32>
    %cst_25 = arith.constant dense<0.000000e+00> : vector<8x8xf32>
    %69 = tpu.matmul %68, %53, %cst_25 {dimension_numbers = #tpu.dot_dimension_numbers<[1], [0], [0], [1], [0, 0, 1, 1], [], []>} : vector<8x8xf32>, vector<8x8xf32>, vector<8x8xf32> -> vector<8x8xf32>
    %70 = vector.extract_strided_slice %10 {offsets = [0, 24], sizes = [8, 8], strides = [1, 1]} : vector<8x32xf32> to vector<8x8xf32>
    %71 = vector.extract_strided_slice %11 {offsets = [0, 24], sizes = [8, 8], strides = [1, 1]} : vector<8x32xf32> to vector<8x8xf32>
    %72 = vector.extract_strided_slice %12 {offsets = [0, 24], sizes = [8, 8], strides = [1, 1]} : vector<8x32xf32> to vector<8x8xf32>
    %73 = tpu.transpose %71, [1, 0] : vector<8x8xf32> -> vector<8x8xf32>
    %cst_26 = arith.constant dense<0.000000e+00> : vector<8x8xf32>
    %74 = tpu.matmul %70, %73, %cst_26 {dimension_numbers = #tpu.dot_dimension_numbers<[1], [0], [0], [1], [0, 0, 1, 1], [], []>} : vector<8x8xf32>, vector<8x8xf32>, vector<8x8xf32> -> vector<8x8xf32>
    %cst_27 = arith.constant 0.353553385 : f32
    %75 = vector.broadcast %cst_27 : f32 to vector<8x8xf32>
    %76 = arith.mulf %74, %75 : vector<8x8xf32>
    %77 = arith.addf %76, %0 : vector<8x8xf32>
    %cst_28 = arith.constant dense<0xFF800000> : vector<8xf32>
    %78 = vector.multi_reduction <maximumf>, %77, %cst_28 [1] : vector<8x8xf32> to vector<8xf32>
    %79 = vector.shape_cast %78 : vector<8xf32> to vector<8x1xf32>
    %80 = vector.broadcast %79 : vector<8x1xf32> to vector<8x8xf32>
    %81 = arith.subf %77, %80 : vector<8x8xf32>
    %82 = math.exp %81 : vector<8x8xf32>
    %cst_29 = arith.constant dense<0.000000e+00> : vector<8xf32>
    %83 = vector.multi_reduction <add>, %82, %cst_29 [1] : vector<8x8xf32> to vector<8xf32>
    %84 = vector.shape_cast %83 : vector<8xf32> to vector<8x1xf32>
    %85 = tpu.reciprocal %84 {approx = true} : vector<8x1xf32> -> vector<8x1xf32>
    %86 = vector.broadcast %85 : vector<8x1xf32> to vector<8x8xf32>
    %87 = arith.mulf %82, %86 : vector<8x8xf32>
    %cst_30 = arith.constant dense<0.000000e+00> : vector<8x8xf32>
    %88 = tpu.matmul %87, %72, %cst_30 {dimension_numbers = #tpu.dot_dimension_numbers<[1], [0], [0], [1], [0, 0, 1, 1], [], []>} : vector<8x8xf32>, vector<8x8xf32>, vector<8x8xf32> -> vector<8x8xf32>
    %89 = tpu.concatenate %31, %50, %69, %88 in 1 : vector<8x8xf32>, vector<8x8xf32>, vector<8x8xf32>, vector<8x8xf32> -> vector<8x32xf32>
    %c0_31 = arith.constant 0 : index
    %c0_32 = arith.constant 0 : index
    %90 = vector.load %arg6[%c0_31, %c0_32] : memref<32x32xf32, #tpu.memory_space<vmem>>, vector<32x32xf32>
    %cst_33 = arith.constant dense<0.000000e+00> : vector<8x32xf32>
    %91 = tpu.matmul %89, %90, %cst_33 {dimension_numbers = #tpu.dot_dimension_numbers<[1], [0], [0], [1], [0, 0, 1, 1], [], []>} : vector<8x32xf32>, vector<32x32xf32>, vector<8x32xf32> -> vector<8x32xf32>
    %c0_34 = arith.constant 0 : index
    %c0_35 = arith.constant 0 : index
    %92 = vector.load %arg7[%c0_34, %c0_35] : memref<1x32xf32, #tpu.memory_space<vmem>>, vector<1x32xf32>
    %93 = vector.broadcast %92 : vector<1x32xf32> to vector<8x32xf32>
    %94 = arith.addf %91, %93 : vector<8x32xf32>
    %c0_36 = arith.constant 0 : index
    %c0_37 = arith.constant 0 : index
    %95 = vector.load %arg8[%c0_36, %c0_37] : memref<1x32xf32, #tpu.memory_space<vmem>>, vector<1x32xf32>
    %c0_38 = arith.constant 0 : index
    %c0_39 = arith.constant 0 : index
    %96 = vector.load %arg9[%c0_38, %c0_39] : memref<1x32xf32, #tpu.memory_space<vmem>>, vector<1x32xf32>
    %97 = arith.addf %2, %94 : vector<8x32xf32>
    %cst_40 = arith.constant dense<0.000000e+00> : vector<8xf32>
    %98 = vector.multi_reduction <add>, %97, %cst_40 [1] : vector<8x32xf32> to vector<8xf32>
    %99 = vector.shape_cast %98 : vector<8xf32> to vector<8x1xf32>
    %cst_41 = arith.constant 3.200000e+01 : f32
    %100 = vector.broadcast %cst_41 : f32 to vector<8x1xf32>
    %101 = arith.divf %99, %100 : vector<8x1xf32>
    %102 = vector.broadcast %101 : vector<8x1xf32> to vector<8x32xf32>
    %103 = arith.subf %97, %102 : vector<8x32xf32>
    %104 = arith.mulf %103, %103 : vector<8x32xf32>
    %cst_42 = arith.constant dense<0.000000e+00> : vector<8xf32>
    %105 = vector.multi_reduction <add>, %104, %cst_42 [1] : vector<8x32xf32> to vector<8xf32>
    %106 = vector.shape_cast %105 : vector<8xf32> to vector<8x1xf32>
    %cst_43 = arith.constant 3.200000e+01 : f32
    %107 = vector.broadcast %cst_43 : f32 to vector<8x1xf32>
    %108 = arith.divf %106, %107 : vector<8x1xf32>
    %109 = vector.broadcast %101 : vector<8x1xf32> to vector<8x32xf32>
    %110 = arith.subf %97, %109 : vector<8x32xf32>
    %cst_44 = arith.constant 9.99999974E-6 : f32
    %111 = vector.broadcast %cst_44 : f32 to vector<8x1xf32>
    %112 = arith.addf %108, %111 : vector<8x1xf32>
    %113 = math.rsqrt %112 : vector<8x1xf32>
    %114 = vector.broadcast %113 : vector<8x1xf32> to vector<8x32xf32>
    %115 = arith.mulf %110, %114 : vector<8x32xf32>
    %116 = vector.broadcast %95 : vector<1x32xf32> to vector<8x32xf32>
    %117 = arith.mulf %115, %116 : vector<8x32xf32>
    %118 = vector.broadcast %96 : vector<1x32xf32> to vector<8x32xf32>
    %119 = arith.addf %117, %118 : vector<8x32xf32>
    %c0_45 = arith.constant 0 : index
    %c0_46 = arith.constant 0 : index
    %120 = vector.load %arg10[%c0_45, %c0_46] : memref<32x32xf32, #tpu.memory_space<vmem>>, vector<32x32xf32>
    %cst_47 = arith.constant dense<0.000000e+00> : vector<8x32xf32>
    %121 = tpu.matmul %119, %120, %cst_47 {dimension_numbers = #tpu.dot_dimension_numbers<[1], [0], [0], [1], [0, 0, 1, 1], [], []>} : vector<8x32xf32>, vector<32x32xf32>, vector<8x32xf32> -> vector<8x32xf32>
    %c0_48 = arith.constant 0 : index
    %c0_49 = arith.constant 0 : index
    %122 = vector.load %arg11[%c0_48, %c0_49] : memref<1x32xf32, #tpu.memory_space<vmem>>, vector<1x32xf32>
    %123 = vector.broadcast %122 : vector<1x32xf32> to vector<8x32xf32>
    %124 = arith.addf %121, %123 : vector<8x32xf32>
    %c0_50 = arith.constant 0 : index
    %c0_51 = arith.constant 0 : index
    %125 = vector.load %arg12[%c0_50, %c0_51] : memref<32x64xf32, #tpu.memory_space<vmem>>, vector<32x64xf32>
    %cst_52 = arith.constant dense<0.000000e+00> : vector<8x64xf32>
    %126 = tpu.matmul %4, %125, %cst_52 {dimension_numbers = #tpu.dot_dimension_numbers<[1], [0], [0], [1], [0, 0, 1, 1], [], []>} : vector<8x32xf32>, vector<32x64xf32>, vector<8x64xf32> -> vector<8x64xf32>
    %c0_53 = arith.constant 0 : index
    %c0_54 = arith.constant 0 : index
    %127 = vector.load %arg13[%c0_53, %c0_54] : memref<1x64xf32, #tpu.memory_space<vmem>>, vector<1x64xf32>
    %128 = vector.broadcast %127 : vector<1x64xf32> to vector<8x64xf32>
    %129 = arith.addf %126, %128 : vector<8x64xf32>
    %130 = vector.extract_strided_slice %129 {offsets = [0, 0], sizes = [8, 32], strides = [1, 1]} : vector<8x64xf32> to vector<8x32xf32>
    %131 = vector.extract_strided_slice %129 {offsets = [0, 32], sizes = [8, 32], strides = [1, 1]} : vector<8x64xf32> to vector<8x32xf32>
    %132 = vector.extract_strided_slice %124 {offsets = [0, 0], sizes = [8, 8], strides = [1, 1]} : vector<8x32xf32> to vector<8x8xf32>
    %133 = vector.extract_strided_slice %130 {offsets = [0, 0], sizes = [8, 8], strides = [1, 1]} : vector<8x32xf32> to vector<8x8xf32>
    %134 = vector.extract_strided_slice %131 {offsets = [0, 0], sizes = [8, 8], strides = [1, 1]} : vector<8x32xf32> to vector<8x8xf32>
    %135 = tpu.transpose %133, [1, 0] : vector<8x8xf32> -> vector<8x8xf32>
    %cst_55 = arith.constant dense<0.000000e+00> : vector<8x8xf32>
    %136 = tpu.matmul %132, %135, %cst_55 {dimension_numbers = #tpu.dot_dimension_numbers<[1], [0], [0], [1], [0, 0, 1, 1], [], []>} : vector<8x8xf32>, vector<8x8xf32>, vector<8x8xf32> -> vector<8x8xf32>
    %cst_56 = arith.constant 0.353553385 : f32
    %137 = vector.broadcast %cst_56 : f32 to vector<8x8xf32>
    %138 = arith.mulf %136, %137 : vector<8x8xf32>
    %cst_57 = arith.constant dense<0xFF800000> : vector<8xf32>
    %139 = vector.multi_reduction <maximumf>, %138, %cst_57 [1] : vector<8x8xf32> to vector<8xf32>
    %140 = vector.shape_cast %139 : vector<8xf32> to vector<8x1xf32>
    %141 = vector.broadcast %140 : vector<8x1xf32> to vector<8x8xf32>
    %142 = arith.subf %138, %141 : vector<8x8xf32>
    %143 = math.exp %142 : vector<8x8xf32>
    %cst_58 = arith.constant dense<0.000000e+00> : vector<8xf32>
    %144 = vector.multi_reduction <add>, %143, %cst_58 [1] : vector<8x8xf32> to vector<8xf32>
    %145 = vector.shape_cast %144 : vector<8xf32> to vector<8x1xf32>
    %146 = tpu.reciprocal %145 {approx = true} : vector<8x1xf32> -> vector<8x1xf32>
    %147 = vector.broadcast %146 : vector<8x1xf32> to vector<8x8xf32>
    %148 = arith.mulf %143, %147 : vector<8x8xf32>
    %cst_59 = arith.constant dense<0.000000e+00> : vector<8x8xf32>
    %149 = tpu.matmul %148, %134, %cst_59 {dimension_numbers = #tpu.dot_dimension_numbers<[1], [0], [0], [1], [0, 0, 1, 1], [], []>} : vector<8x8xf32>, vector<8x8xf32>, vector<8x8xf32> -> vector<8x8xf32>
    %150 = vector.extract_strided_slice %124 {offsets = [0, 8], sizes = [8, 8], strides = [1, 1]} : vector<8x32xf32> to vector<8x8xf32>
    %151 = vector.extract_strided_slice %130 {offsets = [0, 8], sizes = [8, 8], strides = [1, 1]} : vector<8x32xf32> to vector<8x8xf32>
    %152 = vector.extract_strided_slice %131 {offsets = [0, 8], sizes = [8, 8], strides = [1, 1]} : vector<8x32xf32> to vector<8x8xf32>
    %153 = tpu.transpose %151, [1, 0] : vector<8x8xf32> -> vector<8x8xf32>
    %cst_60 = arith.constant dense<0.000000e+00> : vector<8x8xf32>
    %154 = tpu.matmul %150, %153, %cst_60 {dimension_numbers = #tpu.dot_dimension_numbers<[1], [0], [0], [1], [0, 0, 1, 1], [], []>} : vector<8x8xf32>, vector<8x8xf32>, vector<8x8xf32> -> vector<8x8xf32>
    %cst_61 = arith.constant 0.353553385 : f32
    %155 = vector.broadcast %cst_61 : f32 to vector<8x8xf32>
    %156 = arith.mulf %154, %155 : vector<8x8xf32>
    %cst_62 = arith.constant dense<0xFF800000> : vector<8xf32>
    %157 = vector.multi_reduction <maximumf>, %156, %cst_62 [1] : vector<8x8xf32> to vector<8xf32>
    %158 = vector.shape_cast %157 : vector<8xf32> to vector<8x1xf32>
    %159 = vector.broadcast %158 : vector<8x1xf32> to vector<8x8xf32>
    %160 = arith.subf %156, %159 : vector<8x8xf32>
    %161 = math.exp %160 : vector<8x8xf32>
    %cst_63 = arith.constant dense<0.000000e+00> : vector<8xf32>
    %162 = vector.multi_reduction <add>, %161, %cst_63 [1] : vector<8x8xf32> to vector<8xf32>
    %163 = vector.shape_cast %162 : vector<8xf32> to vector<8x1xf32>
    %164 = tpu.reciprocal %163 {approx = true} : vector<8x1xf32> -> vector<8x1xf32>
    %165 = vector.broadcast %164 : vector<8x1xf32> to vector<8x8xf32>
    %166 = arith.mulf %161, %165 : vector<8x8xf32>
    %cst_64 = arith.constant dense<0.000000e+00> : vector<8x8xf32>
    %167 = tpu.matmul %166, %152, %cst_64 {dimension_numbers = #tpu.dot_dimension_numbers<[1], [0], [0], [1], [0, 0, 1, 1], [], []>} : vector<8x8xf32>, vector<8x8xf32>, vector<8x8xf32> -> vector<8x8xf32>
    %168 = vector.extract_strided_slice %124 {offsets = [0, 16], sizes = [8, 8], strides = [1, 1]} : vector<8x32xf32> to vector<8x8xf32>
    %169 = vector.extract_strided_slice %130 {offsets = [0, 16], sizes = [8, 8], strides = [1, 1]} : vector<8x32xf32> to vector<8x8xf32>
    %170 = vector.extract_strided_slice %131 {offsets = [0, 16], sizes = [8, 8], strides = [1, 1]} : vector<8x32xf32> to vector<8x8xf32>
    %171 = tpu.transpose %169, [1, 0] : vector<8x8xf32> -> vector<8x8xf32>
    %cst_65 = arith.constant dense<0.000000e+00> : vector<8x8xf32>
    %172 = tpu.matmul %168, %171, %cst_65 {dimension_numbers = #tpu.dot_dimension_numbers<[1], [0], [0], [1], [0, 0, 1, 1], [], []>} : vector<8x8xf32>, vector<8x8xf32>, vector<8x8xf32> -> vector<8x8xf32>
    %cst_66 = arith.constant 0.353553385 : f32
    %173 = vector.broadcast %cst_66 : f32 to vector<8x8xf32>
    %174 = arith.mulf %172, %173 : vector<8x8xf32>
    %cst_67 = arith.constant dense<0xFF800000> : vector<8xf32>
    %175 = vector.multi_reduction <maximumf>, %174, %cst_67 [1] : vector<8x8xf32> to vector<8xf32>
    %176 = vector.shape_cast %175 : vector<8xf32> to vector<8x1xf32>
    %177 = vector.broadcast %176 : vector<8x1xf32> to vector<8x8xf32>
    %178 = arith.subf %174, %177 : vector<8x8xf32>
    %179 = math.exp %178 : vector<8x8xf32>
    %cst_68 = arith.constant dense<0.000000e+00> : vector<8xf32>
    %180 = vector.multi_reduction <add>, %179, %cst_68 [1] : vector<8x8xf32> to vector<8xf32>
    %181 = vector.shape_cast %180 : vector<8xf32> to vector<8x1xf32>
    %182 = tpu.reciprocal %181 {approx = true} : vector<8x1xf32> -> vector<8x1xf32>
    %183 = vector.broadcast %182 : vector<8x1xf32> to vector<8x8xf32>
    %184 = arith.mulf %179, %183 : vector<8x8xf32>
    %cst_69 = arith.constant dense<0.000000e+00> : vector<8x8xf32>
    %185 = tpu.matmul %184, %170, %cst_69 {dimension_numbers = #tpu.dot_dimension_numbers<[1], [0], [0], [1], [0, 0, 1, 1], [], []>} : vector<8x8xf32>, vector<8x8xf32>, vector<8x8xf32> -> vector<8x8xf32>
    %186 = vector.extract_strided_slice %124 {offsets = [0, 24], sizes = [8, 8], strides = [1, 1]} : vector<8x32xf32> to vector<8x8xf32>
    %187 = vector.extract_strided_slice %130 {offsets = [0, 24], sizes = [8, 8], strides = [1, 1]} : vector<8x32xf32> to vector<8x8xf32>
    %188 = vector.extract_strided_slice %131 {offsets = [0, 24], sizes = [8, 8], strides = [1, 1]} : vector<8x32xf32> to vector<8x8xf32>
    %189 = tpu.transpose %187, [1, 0] : vector<8x8xf32> -> vector<8x8xf32>
    %cst_70 = arith.constant dense<0.000000e+00> : vector<8x8xf32>
    %190 = tpu.matmul %186, %189, %cst_70 {dimension_numbers = #tpu.dot_dimension_numbers<[1], [0], [0], [1], [0, 0, 1, 1], [], []>} : vector<8x8xf32>, vector<8x8xf32>, vector<8x8xf32> -> vector<8x8xf32>
    %cst_71 = arith.constant 0.353553385 : f32
    %191 = vector.broadcast %cst_71 : f32 to vector<8x8xf32>
    %192 = arith.mulf %190, %191 : vector<8x8xf32>
    %cst_72 = arith.constant dense<0xFF800000> : vector<8xf32>
    %193 = vector.multi_reduction <maximumf>, %192, %cst_72 [1] : vector<8x8xf32> to vector<8xf32>
    %194 = vector.shape_cast %193 : vector<8xf32> to vector<8x1xf32>
    %195 = vector.broadcast %194 : vector<8x1xf32> to vector<8x8xf32>
    %196 = arith.subf %192, %195 : vector<8x8xf32>
    %197 = math.exp %196 : vector<8x8xf32>
    %cst_73 = arith.constant dense<0.000000e+00> : vector<8xf32>
    %198 = vector.multi_reduction <add>, %197, %cst_73 [1] : vector<8x8xf32> to vector<8xf32>
    %199 = vector.shape_cast %198 : vector<8xf32> to vector<8x1xf32>
    %200 = tpu.reciprocal %199 {approx = true} : vector<8x1xf32> -> vector<8x1xf32>
    %201 = vector.broadcast %200 : vector<8x1xf32> to vector<8x8xf32>
    %202 = arith.mulf %197, %201 : vector<8x8xf32>
    %cst_74 = arith.constant dense<0.000000e+00> : vector<8x8xf32>
    %203 = tpu.matmul %202, %188, %cst_74 {dimension_numbers = #tpu.dot_dimension_numbers<[1], [0], [0], [1], [0, 0, 1, 1], [], []>} : vector<8x8xf32>, vector<8x8xf32>, vector<8x8xf32> -> vector<8x8xf32>
    %204 = tpu.concatenate %149, %167, %185, %203 in 1 : vector<8x8xf32>, vector<8x8xf32>, vector<8x8xf32>, vector<8x8xf32> -> vector<8x32xf32>
    %c0_75 = arith.constant 0 : index
    %c0_76 = arith.constant 0 : index
    %205 = vector.load %arg14[%c0_75, %c0_76] : memref<32x32xf32, #tpu.memory_space<vmem>>, vector<32x32xf32>
    %cst_77 = arith.constant dense<0.000000e+00> : vector<8x32xf32>
    %206 = tpu.matmul %204, %205, %cst_77 {dimension_numbers = #tpu.dot_dimension_numbers<[1], [0], [0], [1], [0, 0, 1, 1], [], []>} : vector<8x32xf32>, vector<32x32xf32>, vector<8x32xf32> -> vector<8x32xf32>
    %c0_78 = arith.constant 0 : index
    %c0_79 = arith.constant 0 : index
    %207 = vector.load %arg15[%c0_78, %c0_79] : memref<1x32xf32, #tpu.memory_space<vmem>>, vector<1x32xf32>
    %208 = vector.broadcast %207 : vector<1x32xf32> to vector<8x32xf32>
    %209 = arith.addf %206, %208 : vector<8x32xf32>
    %c0_80 = arith.constant 0 : index
    %c0_81 = arith.constant 0 : index
    %210 = vector.load %arg16[%c0_80, %c0_81] : memref<1x32xf32, #tpu.memory_space<vmem>>, vector<1x32xf32>
    %c0_82 = arith.constant 0 : index
    %c0_83 = arith.constant 0 : index
    %211 = vector.load %arg17[%c0_82, %c0_83] : memref<1x32xf32, #tpu.memory_space<vmem>>, vector<1x32xf32>
    %212 = arith.addf %119, %209 : vector<8x32xf32>
    %cst_84 = arith.constant dense<0.000000e+00> : vector<8xf32>
    %213 = vector.multi_reduction <add>, %212, %cst_84 [1] : vector<8x32xf32> to vector<8xf32>
    %214 = vector.shape_cast %213 : vector<8xf32> to vector<8x1xf32>
    %cst_85 = arith.constant 3.200000e+01 : f32
    %215 = vector.broadcast %cst_85 : f32 to vector<8x1xf32>
    %216 = arith.divf %214, %215 : vector<8x1xf32>
    %217 = vector.broadcast %216 : vector<8x1xf32> to vector<8x32xf32>
    %218 = arith.subf %212, %217 : vector<8x32xf32>
    %219 = arith.mulf %218, %218 : vector<8x32xf32>
    %cst_86 = arith.constant dense<0.000000e+00> : vector<8xf32>
    %220 = vector.multi_reduction <add>, %219, %cst_86 [1] : vector<8x32xf32> to vector<8xf32>
    %221 = vector.shape_cast %220 : vector<8xf32> to vector<8x1xf32>
    %cst_87 = arith.constant 3.200000e+01 : f32
    %222 = vector.broadcast %cst_87 : f32 to vector<8x1xf32>
    %223 = arith.divf %221, %222 : vector<8x1xf32>
    %224 = vector.broadcast %216 : vector<8x1xf32> to vector<8x32xf32>
    %225 = arith.subf %212, %224 : vector<8x32xf32>
    %cst_88 = arith.constant 9.99999974E-6 : f32
    %226 = vector.broadcast %cst_88 : f32 to vector<8x1xf32>
    %227 = arith.addf %223, %226 : vector<8x1xf32>
    %228 = math.rsqrt %227 : vector<8x1xf32>
    %229 = vector.broadcast %228 : vector<8x1xf32> to vector<8x32xf32>
    %230 = arith.mulf %225, %229 : vector<8x32xf32>
    %231 = vector.broadcast %210 : vector<1x32xf32> to vector<8x32xf32>
    %232 = arith.mulf %230, %231 : vector<8x32xf32>
    %233 = vector.broadcast %211 : vector<1x32xf32> to vector<8x32xf32>
    %234 = arith.addf %232, %233 : vector<8x32xf32>
    %c0_89 = arith.constant 0 : index
    %c0_90 = arith.constant 0 : index
    %235 = vector.load %arg18[%c0_89, %c0_90] : memref<32x64xf32, #tpu.memory_space<vmem>>, vector<32x64xf32>
    %cst_91 = arith.constant dense<0.000000e+00> : vector<8x64xf32>
    %236 = tpu.matmul %234, %235, %cst_91 {dimension_numbers = #tpu.dot_dimension_numbers<[1], [0], [0], [1], [0, 0, 1, 1], [], []>} : vector<8x32xf32>, vector<32x64xf32>, vector<8x64xf32> -> vector<8x64xf32>
    %c0_92 = arith.constant 0 : index
    %c0_93 = arith.constant 0 : index
    %237 = vector.load %arg19[%c0_92, %c0_93] : memref<1x64xf32, #tpu.memory_space<vmem>>, vector<1x64xf32>
    %238 = vector.broadcast %237 : vector<1x64xf32> to vector<8x64xf32>
    %239 = arith.addf %236, %238 : vector<8x64xf32>
    %cst_94 = arith.constant 0.000000e+00 : f32
    %240 = vector.broadcast %cst_94 : f32 to vector<8x64xf32>
    %241 = arith.maximumf %239, %240 : vector<8x64xf32>
    %c0_95 = arith.constant 0 : index
    %c0_96 = arith.constant 0 : index
    %242 = vector.load %arg20[%c0_95, %c0_96] : memref<64x32xf32, #tpu.memory_space<vmem>>, vector<64x32xf32>
    %cst_97 = arith.constant dense<0.000000e+00> : vector<8x32xf32>
    %243 = tpu.matmul %241, %242, %cst_97 {dimension_numbers = #tpu.dot_dimension_numbers<[1], [0], [0], [1], [0, 0, 1, 1], [], []>} : vector<8x64xf32>, vector<64x32xf32>, vector<8x32xf32> -> vector<8x32xf32>
    %c0_98 = arith.constant 0 : index
    %c0_99 = arith.constant 0 : index
    %244 = vector.load %arg21[%c0_98, %c0_99] : memref<1x32xf32, #tpu.memory_space<vmem>>, vector<1x32xf32>
    %245 = vector.broadcast %244 : vector<1x32xf32> to vector<8x32xf32>
    %246 = arith.addf %243, %245 : vector<8x32xf32>
    %c0_100 = arith.constant 0 : index
    %c0_101 = arith.constant 0 : index
    %247 = vector.load %arg22[%c0_100, %c0_101] : memref<1x32xf32, #tpu.memory_space<vmem>>, vector<1x32xf32>
    %c0_102 = arith.constant 0 : index
    %c0_103 = arith.constant 0 : index
    %248 = vector.load %arg23[%c0_102, %c0_103] : memref<1x32xf32, #tpu.memory_space<vmem>>, vector<1x32xf32>
    %249 = arith.addf %234, %246 : vector<8x32xf32>
    %cst_104 = arith.constant dense<0.000000e+00> : vector<8xf32>
    %250 = vector.multi_reduction <add>, %249, %cst_104 [1] : vector<8x32xf32> to vector<8xf32>
    %251 = vector.shape_cast %250 : vector<8xf32> to vector<8x1xf32>
    %cst_105 = arith.constant 3.200000e+01 : f32
    %252 = vector.broadcast %cst_105 : f32 to vector<8x1xf32>
    %253 = arith.divf %251, %252 : vector<8x1xf32>
    %254 = vector.broadcast %253 : vector<8x1xf32> to vector<8x32xf32>
    %255 = arith.subf %249, %254 : vector<8x32xf32>
    %256 = arith.mulf %255, %255 : vector<8x32xf32>
    %cst_106 = arith.constant dense<0.000000e+00> : vector<8xf32>
    %257 = vector.multi_reduction <add>, %256, %cst_106 [1] : vector<8x32xf32> to vector<8xf32>
    %258 = vector.shape_cast %257 : vector<8xf32> to vector<8x1xf32>
    %cst_107 = arith.constant 3.200000e+01 : f32
    %259 = vector.broadcast %cst_107 : f32 to vector<8x1xf32>
    %260 = arith.divf %258, %259 : vector<8x1xf32>
    %261 = vector.broadcast %253 : vector<8x1xf32> to vector<8x32xf32>
    %262 = arith.subf %249, %261 : vector<8x32xf32>
    %cst_108 = arith.constant 9.99999974E-6 : f32
    %263 = vector.broadcast %cst_108 : f32 to vector<8x1xf32>
    %264 = arith.addf %260, %263 : vector<8x1xf32>
    %265 = math.rsqrt %264 : vector<8x1xf32>
    %266 = vector.broadcast %265 : vector<8x1xf32> to vector<8x32xf32>
    %267 = arith.mulf %262, %266 : vector<8x32xf32>
    %268 = vector.broadcast %247 : vector<1x32xf32> to vector<8x32xf32>
    %269 = arith.mulf %267, %268 : vector<8x32xf32>
    %270 = vector.broadcast %248 : vector<1x32xf32> to vector<8x32xf32>
    %271 = arith.addf %269, %270 : vector<8x32xf32>
    %c0_109 = arith.constant 0 : index
    %c0_110 = arith.constant 0 : index
    %c0_111 = arith.constant 0 : index
    %272 = vector.load %arg24[%c0_109, %c0_110, %c0_111] : memref<1x8x32xf32, #tpu.memory_space<vmem>>, vector<1x8x32xf32>
    %273 = vector.shape_cast %272 : vector<1x8x32xf32> to vector<8x32xf32>
    %274 = vector.shape_cast %271 : vector<8x32xf32> to vector<1x8x32xf32>
    tpu.vector_store %arg24[%c0_109, %c0_110, %c0_111], %274 {strides = array<i32>} : memref<1x8x32xf32, #tpu.memory_space<vmem>>, vector<1x8x32xf32>,
    return
  }
  func.func @transform_0(%arg0: i32) -> (i32, i32, i32) {
    %c0_i32 = arith.constant 0 : i32
    %c0_i32_0 = arith.constant 0 : i32
    %c0_i32_1 = arith.constant 0 : i32
    return %arg0, %c0_i32, %c0_i32_0 : i32, i32, i32
  }
  func.func @transform_1(%arg0: i32) -> (i32, i32, i32) {
    %c0_i32 = arith.constant 0 : i32
    %c0_i32_0 = arith.constant 0 : i32
    %c0_i32_1 = arith.constant 0 : i32
    return %arg0, %c0_i32, %c0_i32_0 : i32, i32, i32
  }
  func.func @transform_2(%arg0: i32) -> (i32, i32) {
    %c0_i32 = arith.constant 0 : i32
    %c0_i32_0 = arith.constant 0 : i32
    %c0_i32_1 = arith.constant 0 : i32
    return %c0_i32, %c0_i32_0 : i32, i32
  }
  func.func @transform_3(%arg0: i32) -> (i32, i32) {
    %c0_i32 = arith.constant 0 : i32
    %c0_i32_0 = arith.constant 0 : i32
    %c0_i32_1 = arith.constant 0 : i32
    return %c0_i32, %c0_i32_0 : i32, i32
  }
  func.func @transform_4(%arg0: i32) -> (i32, i32) {
    %c0_i32 = arith.constant 0 : i32
    %c0_i32_0 = arith.constant 0 : i32
    %c0_i32_1 = arith.constant 0 : i32
    return %c0_i32, %c0_i32_0 : i32, i32
  }
  func.func @transform_5(%arg0: i32) -> (i32, i32) {
    %c0_i32 = arith.constant 0 : i32
    %c0_i32_0 = arith.constant 0 : i32
    %c0_i32_1 = arith.constant 0 : i32
    return %c0_i32, %c0_i32_0 : i32, i32
  }
  func.func @transform_6(%arg0: i32) -> (i32, i32) {
    %c0_i32 = arith.constant 0 : i32
    %c0_i32_0 = arith.constant 0 : i32
    %c0_i32_1 = arith.constant 0 : i32
    return %c0_i32, %c0_i32_0 : i32, i32
  }
  func.func @transform_7(%arg0: i32) -> (i32, i32) {
    %c0_i32 = arith.constant 0 : i32
    %c0_i32_0 = arith.constant 0 : i32
    %c0_i32_1 = arith.constant 0 : i32
    return %c0_i32, %c0_i32_0 : i32, i32
  }
  func.func @transform_8(%arg0: i32) -> (i32, i32) {
    %c0_i32 = arith.constant 0 : i32
    %c0_i32_0 = arith.constant 0 : i32
    %c0_i32_1 = arith.constant 0 : i32
    return %c0_i32, %c0_i32_0 : i32, i32
  }
  func.func @transform_9(%arg0: i32) -> (i32, i32) {
    %c0_i32 = arith.constant 0 : i32
    %c0_i32_0 = arith.constant 0 : i32
    %c0_i32_1 = arith.constant 0 : i32
    return %c0_i32, %c0_i32_0 : i32, i32
  }
  func.func @transform_10(%arg0: i32) -> (i32, i32) {
    %c0_i32 = arith.constant 0 : i32
    %c0_i32_0 = arith.constant 0 : i32
    %c0_i32_1 = arith.constant 0 : i32
    return %c0_i32, %c0_i32_0 : i32, i32
  }
  func.func @transform_11(%arg0: i32) -> (i32, i32) {
    %c0_i32 = arith.constant 0 : i32
    %c0_i32_0 = arith.constant 0 : i32
    %c0_i32_1 = arith.constant 0 : i32
    return %c0_i32, %c0_i32_0 : i32, i32
  }
  func.func @transform_12(%arg0: i32) -> (i32, i32) {
    %c0_i32 = arith.constant 0 : i32
    %c0_i32_0 = arith.constant 0 : i32
    %c0_i32_1 = arith.constant 0 : i32
    return %c0_i32, %c0_i32_0 : i32, i32
  }
  func.func @transform_13(%arg0: i32) -> (i32, i32) {
    %c0_i32 = arith.constant 0 : i32
    %c0_i32_0 = arith.constant 0 : i32
    %c0_i32_1 = arith.constant 0 : i32
    return %c0_i32, %c0_i32_0 : i32, i32
  }
  func.func @transform_14(%arg0: i32) -> (i32, i32) {
    %c0_i32 = arith.constant 0 : i32
    %c0_i32_0 = arith.constant 0 : i32
    %c0_i32_1 = arith.constant 0 : i32
    return %c0_i32, %c0_i32_0 : i32, i32
  }
  func.func @transform_15(%arg0: i32) -> (i32, i32) {
    %c0_i32 = arith.constant 0 : i32
    %c0_i32_0 = arith.constant 0 : i32
    %c0_i32_1 = arith.constant 0 : i32
    return %c0_i32, %c0_i32_0 : i32, i32
  }
  func.func @transform_16(%arg0: i32) -> (i32, i32) {
    %c0_i32 = arith.constant 0 : i32
    %c0_i32_0 = arith.constant 0 : i32
    %c0_i32_1 = arith.constant 0 : i32
    return %c0_i32, %c0_i32_0 : i32, i32
  }
  func.func @transform_17(%arg0: i32) -> (i32, i32) {
    %c0_i32 = arith.constant 0 : i32
    %c0_i32_0 = arith.constant 0 : i32
    %c0_i32_1 = arith.constant 0 : i32
    return %c0_i32, %c0_i32_0 : i32, i32
  }
  func.func @transform_18(%arg0: i32) -> (i32, i32) {
    %c0_i32 = arith.constant 0 : i32
    %c0_i32_0 = arith.constant 0 : i32
    %c0_i32_1 = arith.constant 0 : i32
    return %c0_i32, %c0_i32_0 : i32, i32
  }
  func.func @transform_19(%arg0: i32) -> (i32, i32) {
    %c0_i32 = arith.constant 0 : i32
    %c0_i32_0 = arith.constant 0 : i32
    %c0_i32_1 = arith.constant 0 : i32
    return %c0_i32, %c0_i32_0 : i32, i32
  }
  func.func @transform_20(%arg0: i32) -> (i32, i32) {
    %c0_i32 = arith.constant 0 : i32
    %c0_i32_0 = arith.constant 0 : i32
    %c0_i32_1 = arith.constant 0 : i32
    return %c0_i32, %c0_i32_0 : i32, i32
  }
  func.func @transform_21(%arg0: i32) -> (i32, i32) {
    %c0_i32 = arith.constant 0 : i32
    %c0_i32_0 = arith.constant 0 : i32
    %c0_i32_1 = arith.constant 0 : i32
    return %c0_i32, %c0_i32_0 : i32, i32
  }
  func.func @transform_22(%arg0: i32) -> (i32, i32) {
    %c0_i32 = arith.constant 0 : i32
    %c0_i32_0 = arith.constant 0 : i32
    %c0_i32_1 = arith.constant 0 : i32
    return %c0_i32, %c0_i32_0 : i32, i32
  }
  func.func @transform_23(%arg0: i32) -> (i32, i32, i32) {
    %c0_i32 = arith.constant 0 : i32
    %c0_i32_0 = arith.constant 0 : i32
    %c0_i32_1 = arith.constant 0 : i32
    return %arg0, %c0_i32, %c0_i32_0 : i32, i32, i32
  }
}

</mosaic_0001>

<bundles_post_ra>
// kernel: transformer_decoder.5
= control target key start
LH: loop header
LB: loop body
LE: loop exit
PB: predicated region body
PF: predicated region fallthrough
CT: control target
= control target key end

     0   :  { %vm24_vm0 = vcmask 261120   ;;  %vm54_vm1 = vcmask 523264   ;;  %s115_s1 = inlined_call_operand.vmem [shape: f32[32,64], index: 1, kind: input, shape index: {}]   ;;  %s116_s2 = inlined_call_operand.vmem [shape: f32[1,64], index: 2, kind: input, shape index: {}]   ;;  %s117_s0 = inlined_call_operand.vmem [shape: f32[16,32], index: 0, kind: input, shape index: {}]   ;;  %s118_s3 = inlined_call_operand.vmem [shape: f32[16,64], index: 3, kind: output, shape index: {}]  }
   0x1   :  { %v19_v0 = vld [vmem:[%s115_s1 + $0x18] sm:$0xff]  ;;  %v18_v1 = vld [vmem:[%s115_s1 + $0x10] sm:$0xff]  ;;  %v17_v2 = vld [vmem:[%s115_s1 + $0x8] sm:$0xff] }
   0x2   :  { %43 = vmatpush.msra.mxu0 %v19_v0  ;;  %63 = vmatpush.msra.mxu1 %v19_v0  ;;  %v16_v3 = vld [vmem:[%s115_s1] sm:$0xff]  ;;  %v15_v5 = vld [vmem:[%s117_s0 + $0x8] sm:$0xff] }
   0x3   :  { %v14_v4 = vld [vmem:[%s117_s0] sm:$0xff] }
   0x4   :  { %44 = vmatpush.msra.mxu0 %v18_v1  ;;  %64 = vmatpush.msra.mxu1 %v18_v1  ;;  %v67_v6 = vld [vmem:[%s116_s2] ss:$0 sm:$0xff] }
   0x6   :  { %45 = vmatpush.msra.mxu0 %v17_v2  ;;  %65 = vmatpush.msra.mxu1 %v17_v2 }
   0x8   :  { %46 = vmatpush.msra.mxu0 %v16_v3  ;;  %66 = vmatpush.msra.mxu1 %v16_v3 }
   0x9   :  { %61 = vmatmul.msk.f32.vlgmr.msra.gmra.mxu0 %vm24_vm0, %v14_v4  ;;  %62 = vmatmul.msk.f32.vlgmr.msra.gmra.mxu1 %vm24_vm0, %v15_v5 }
  0x86   :  { %v48_v7 = vpop.f32.mrf.mxu0  ;;  %v51_v8 = vpop.f32.mrf.mxu1 }
  0x87   :  { %v49_v9 = vadd.f32 %v67_v6, %v48_v7  ;;  %v52_v10 = vadd.f32 %v67_v6, %v51_v8 }
  0x89   :  { %55 = vst.msk [vmem:[%s118_s3] sm:$0xff] %vm54_vm1, %v49_v9 }
  0x8a   :  { %56 = vst.msk [vmem:[%s118_s3 + $0x8] sm:$0xff] %vm54_vm1, %v52_v10 }

// kernel: transformer_decoder.3
= control target key start
LH: loop header
LB: loop body
LE: loop exit
PB: predicated region body
PF: predicated region fallthrough
CT: control target
= control target key end

     0   :  { %s2229_s0 = inlined_call_operand.vmem [shape: f32[2,8,32], index: 0, kind: input, shape index: {}]   ;;  %s2230_s1 = inlined_call_operand.vmem [shape: f32[2,8,32], index: 1, kind: input, shape index: {}]   ;;  %s2231_s2 = inlined_call_operand.vmem [shape: f32[8,8], index: 2, kind: input, shape index: {}]   ;;  %s2232_s3 = inlined_call_operand.vmem [shape: f32[32,96], index: 3, kind: input, shape index: {}]   ;;  %s2233_s4 = inlined_call_operand.vmem [shape: f32[1,96], index: 4, kind: input, shape index: {}]   ;;  %s2234_s5 = inlined_call_operand.vmem [shape: f32[32,32], index: 5, kind: input, shape index: {}]   ;;  %s2235_s6 = inlined_call_operand.vmem [shape: f32[1,32], index: 6, kind: input, shape index: {}]   ;;  %s2236_s7 = inlined_call_operand.vmem [shape: f32[1,32], index: 7, kind: input, shape index: {}]   ;;  %s2237_s8 = inlined_call_operand.vmem [shape: f32[1,32], index: 8, kind: input, shape index: {}]   ;;  %s2238_s9 = inlined_call_operand.vmem [shape: f32[32,32], index: 9, kind: input, shape index: {}]   ;;  %s2239_s10 = inlined_call_operand.vmem [shape: f32[1,32], index: 10, kind: input, shape index: {}]   ;;  %s2240_s11 = inlined_call_operand.vmem [shape: f32[32,64], index: 11, kind: input, shape index: {}]   ;;  %s2241_s12 = inlined_call_operand.vmem [shape: f32[1,64], index: 12, kind: input, shape index: {}]   ;;  %s2242_s13 = inlined_call_operand.vmem [shape: f32[32,32], index: 13, kind: input, shape index: {}]   ;;  %s2243_s14 = inlined_call_operand.vmem [shape: f32[1,32], index: 14, kind: input, shape index: {}]   ;;  %s2244_s15 = inlined_call_operand.vmem [shape: f32[1,32], index: 15, kind: input, shape index: {}]   ;;  %s2245_s16 = inlined_call_operand.vmem [shape: f32[1,32], index: 16, kind: input, shape index: {}]   ;;  %s2246_s17 = inlined_call_operand.vmem [shape: f32[32,64], index: 17, kind: input, shape index: {}]   ;;  %s2247_s18 = inlined_call_operand.vmem [shape: f32[1,64], index: 18, kind: input, shape index: {}]   ;;  %s2248_s19 = inlined_call_operand.vmem [shape: f32[64,32], index: 19, kind: input, shape index: {}]   ;;  %s2249_s20 = inlined_call_operand.vmem [shape: f32[1,32], index: 20, kind: input, shape index: {}]   ;;  %s2250_s21 = inlined_call_operand.vmem [shape: f32[1,32], index: 21, kind: input, shape index: {}]   ;;  %s2251_s22 = inlined_call_operand.vmem [shape: f32[1,32], index: 22, kind: input, shape index: {}]   ;;  %s2252_s23 = inlined_call_operand.vmem [shape: f32[2,8,32], index: 23, kind: output, shape index: {}]  }
   0x1   :  { %2269 = sst [smem:[#allocation2_spill]] %s2229_s0 }
   0x2   :  { %2270 = sst [smem:[#allocation3_spill]] %s2230_s1 }
   0x3   :  { %2271 = sst [smem:[#allocation4_spill]] %s2231_s2 }
   0x4   :  { %2272 = sst [smem:[#allocation5_spill]] %s2232_s3 }
   0x5   :  { %2273 = sst [smem:[#allocation6_spill]] %s2233_s4  ;;  %s1944_s4 = smov 0  }
   0x6   :  { %2274 = sst [smem:[#allocation7_spill]] %s2234_s5 }
   0x7   :  { %2275 = sst [smem:[#allocation8_spill]] %s2235_s6 }
   0x8   :  { %2276 = sst [smem:[#allocation9_spill]] %s2236_s7 }
   0x9 LB: > { %s1684_s30 = sadd.s32 4294967295, %s1807_s4   ;;  %p1688_p0 = scmp.ge.s32.totalorder %s1807_s4, 1  ;;  %s1807_s4 = sphi %s1944_s4, %s33_s4  }
   0xa   : > { %p645_p1 = scmp.lt.s32.totalorder %s1807_s4, 3 }
   0xc   : > { %p646_p2 = pnand %p1688_p0, %p645_p1 }
   0xd   : > { %s2277_s5 = sld [smem:[#allocation5_spill]] (!%p646_p2)  ;;  %p711_p3 = scmp.lt.s32.totalorder (!%p646_p2), %s1684_s30, 1 }
   0xe   : > { %649 = sbr.rel (%p646_p2) target bundleno = 3190 (0xc76), region = 112  ;;  %s2278_s0 = sld [smem:[#allocation2_spill]] (!%p646_p2) }
   0xf   : > { %s2279_s26 = sld [smem:[#allocation6_spill]] (!%p646_p2)  ;;  %s2266_s2 = smov (!%p646_p2), 120  }
  0x10   : > { %s2257_s6 = smov (!%p646_p2), 96   ;;  %s2264_s27 = smov (!%p646_p2), 112  }
  0x11   : > { %s2258_s7 = smov (!%p646_p2), 80   ;;  %s2255_s29 = smov (!%p646_p2), 88  }
  0x12   : > { %s2259_s3 = smov (!%p646_p2), 104   ;;  %s2280_s25 = sld [smem:[#allocation4_spill]] (!%p646_p2) }
  0x13   : > { %v729_v0 = vld [vmem:[%s2277_s5 + $0x18] sm:$0xff]  ;;  %v728_v1 = vld [vmem:[%s2277_s5 + $0x10] sm:$0xff]  ;;  %v727_v2 = vld [vmem:[%s2277_s5 + $0x8] sm:$0xff]  ;;  %s2296_s30 = smov (!%p711_p3, %s1684_s30), 1  ;;  %vm734_vm0 = vcmask 261120   ;;  %vm761_vm1 = vcmask 64512  }
  0x14   : > { %750 = vmatpush.msra.mxu0 %v729_v0  ;;  %v726_v3 = vld [vmem:[%s2277_s5] sm:$0xff]  ;;  %s1964_s28 = sshll.u32 %s2296_s30, 3  ;;  %s2256_s30 = smov 72   ;;  %vm1039_vm2 = vcmask 130048   ;;  %vm1041_vm3 = vcmask 195584   ;;  %vm1561_vm11 = vcmask 523264  }
  0x15   : > { %s714_s24 = scalar_lea.vmem %s2278_s0, %s1964_s28  ;;  %v1748_v5 = vld [vmem:[%s2279_s26] ss:$0 sm:$0xff]  ;;  %s1816_s1 = smov 64  }
  0x16   : > { %751 = vmatpush.msra.mxu0 %v728_v1  ;;  %v1970_v4 = vld [vmem:[%s714_s24] sm:$0xff]  ;;  %s1817_s26 = smov 40   ;;  %s1818_s0 = smov 56  }
  0x17   : > { %s1819_s24 = smov 48   ;;  %s2286_s5 = smov 104  }
  0x18   : > { %752 = vmatpush.msra.mxu0 %v727_v2  ;;  %v723_v16 = vld [vmem:[%s2280_s25] sm:$0xff]  ;;  %s2262_s25 = smov 16  }
  0x1a   : > { %753 = vmatpush.msra.mxu0 %v726_v3 }
  0x1b   : > { %1692 = vmatmul.msk.f32.vlgmr.msra.gmra.mxu0 %vm734_vm0, %v1970_v4 }
  0x98   : > { %v755_v6 = vpop.f32.mrf.mxu0 }
  0x99   : > { %v1977_v7 = vadd.f32 %v1748_v5, %v755_v6 }
  0x9b   : > { %961 = vrot.lane.b32.xlu2 %v1977_v7, %s2256_s30  ;;  %825 = vrot.lane.b32.xlu1 %v1977_v7, %s2266_s2  ;;  %s2289_s30 = smov 96   ;;  %s2293_s2 = smov 8  }
  0x9c   : > { %759 = vrot.lane.b32.xlu0 %v1977_v7, %s2257_s6  ;;  %s2284_s6 = smov 120  }
  0xa3   : > { %892 = vrot.lane.b32.xlu2 %v1977_v7, %s2264_s27  ;;  %894 = vrot.lane.b32.xlu1 %v1977_v7, %s2258_s7  ;;  %s2282_s7 = sld [smem:[#allocation8_spill]] }
  0xa4   : > { %827 = vrot.lane.b32.xlu0 %v1977_v7, %s2255_s29  ;;  %s2281_s29 = sld [smem:[#allocation7_spill]] }
  0xac   : > { %959 = vrot.lane.b32.xlu0 %v1977_v7, %s2259_s3 }
  0xf5   : > { %v962_v10 = vpop.permute.xlu2 %961 }
  0xfd   : > { %v893_v13 = vpop.permute.xlu2 %892 }
 0x10d   : > { %v826_v8 = vpop.permute.xlu1 %825 }
 0x10e   : > { %v760_v9 = vpop.permute.xlu0 %759 }
 0x10f   : > { %1693 = vmatpush.xpose.msk.msra.mxu1 %vm761_vm1, %v760_v9  ;;  %v1046_v9 = vld [vmem:[%s2281_s29 + $0x18] sm:$0xff] }
 0x112   : > { %1694 = vmatmul.msk.f32.vlgmr.msra.gmra.mxu1 %vm761_vm1, %v1977_v7 }
 0x115   : > { %v895_v11 = vpop.permute.xlu1 %894 }
 0x116   : > { %v828_v12 = vpop.permute.xlu0 %827  ;;  %1699 = vmatpush.xpose.msk.msrb.mxu1 %vm761_vm1, %v895_v11  ;;  %v1044_v11 = vld [vmem:[%s2281_s29 + $0x8] sm:$0xff] }
 0x117   : > { %1696 = vmatpush.xpose.msk.msrb.mxu0 %vm761_vm1, %v828_v12  ;;  %v1043_v12 = vld [vmem:[%s2281_s29] sm:$0xff] }
 0x11a   : > { %1697 = vmatmul.msk.f32.vlgmr.msrb.gmra.mxu0 %vm761_vm1, %v826_v8  ;;  %1700 = vmatmul.msk.f32.vlgmr.msrb.gmra.mxu1 %vm761_vm1, %v893_v13 }
 0x11b   : > { %1702 = vmatpush.xpose.msk.msra.mxu0 %vm761_vm1, %v962_v10  ;;  %v1045_v10 = vld [vmem:[%s2281_s29 + $0x10] sm:$0xff]  ;;  %1066 = vmatpush.msra.mxu1 %v1046_v9 }
 0x11d   : > { %1067 = vmatpush.msra.mxu1 %v1045_v10 }
 0x11e   : > { %v960_v14 = vpop.permute.xlu0 %959 }
 0x11f   : > { %1068 = vmatpush.msra.mxu1 %v1044_v11 }
 0x121   : > { %1069 = vmatpush.msra.mxu1 %v1043_v12 }
 0x122   : > { %1703 = vmatmul.msk.f32.vlgmr.msra.gmra.mxu0 %vm761_vm1, %v960_v14 }
 0x18f   : > { %v783_v15 = vpop.f32.mrf.mxu1 }
 0x190   : > { %v786_v17 = vmul.f32 0.35355338, %v783_v15 }
 0x192   : > { %v787_v18 = vadd.f32 %v786_v17, %v723_v16 }
 0x194   : > { %v788_v19 = vsel %vm761_vm1, %v787_v18, -inf }
 0x195   : > { %789 = vmax.xlane.f32.xlu1 %v788_v19  ;;  %v1749_v19 = vld [vmem:[%s2282_s7] ss:$0 sm:$0xff]  ;;  %s2285_s7 = smov 112  }
 0x197   : > { %v850_v20 = vpop.f32.mrf.mxu0  ;;  %v917_v21 = vpop.f32.mrf.mxu1 }
 0x198   : > { %v853_v22 = vmul.f32 0.35355338, %v850_v20  ;;  %v920_v23 = vmul.f32 0.35355338, %v917_v21 }
 0x19a   : > { %v921_v24 = vadd.f32 %v920_v23, %v723_v16  ;;  %v854_v25 = vadd.f32 %v853_v22, %v723_v16 }
 0x19c   : > { %v922_v26 = vsel %vm761_vm1, %v921_v24, -inf  ;;  %v855_v27 = vsel %vm761_vm1, %v854_v25, -inf }
 0x19d   : > { %923 = vmax.xlane.f32.xlu0 %v922_v26  ;;  %856 = vmax.xlane.f32.xlu2 %v855_v27  ;;  %v1147_v26 = vld [vmem:[%s2240_s11 + $0x10] sm:$0xff]  ;;  %v1146_v27 = vld [vmem:[%s2240_s11 + $0x8] sm:$0xff] }
 0x19f   : > { %v984_v28 = vpop.f32.mrf.mxu0 }
 0x1a0   : > { %v987_v29 = vmul.f32 0.35355338, %v984_v28  ;;  %v1145_v28 = vld [vmem:[%s2240_s11] sm:$0xff] }
 0x1a2   : > { %v988_v30 = vadd.f32 %v987_v29, %v723_v16 }
 0x1a4   : > { %v989_v31 = vsel %vm761_vm1, %v988_v30, -inf }
 0x1a5   : > { %990 = vmax.xlane.f32.xlu2 %v989_v31 }
 0x1b1   : > { %799 = vrot.lane.b32.xlu0 %v1977_v7, %s1816_s1  ;;  %s2261_s1 = smov 8  }
 0x1b9   : > { %1000 = vrot.lane.b32.xlu0 %v1977_v7, %s1817_s26  ;;  %s2263_s26 = smov 24  }
 0x208   : > { %v790_v32 = vpop.xlane.xlu1 %789 }
 0x209   : > { %v791_v33 = vsub.f32 %v787_v18, %v790_v32 }
 0x20b   : > { %v792_v34 = vmul.f32 1.442695, %v791_v33 }
 0x20d   : > { %1761 = vpow2.f32 %v792_v34 }
 0x210   : > { %v857_v35 = vpop.xlane.xlu2 %856  ;;  %v924_v36 = vpop.xlane.xlu0 %923 }
 0x211   : > { %v858_v37 = vsub.f32 %v854_v25, %v857_v35  ;;  %v925_v38 = vsub.f32 %v921_v24, %v924_v36  ;;  %v1823_v24 = vmov 32.0   ;;  %v1148_v25 = vld [vmem:[%s2240_s11 + $0x18] sm:$0xff] }
 0x212   : > { %1168 = vmatpush.msrb.mxu0 %v1148_v25 }
 0x213   : > { %v1762_v39 = vpop.eup %1761  ;;  %v859_v40 = vmul.f32 1.442695, %v858_v37  ;;  %v926_v41 = vmul.f32 1.442695, %v925_v38 }
 0x214   : > { %v794_v42 = vsel %vm761_vm1, %v1762_v39, 0.0  ;;  %1169 = vmatpush.msrb.mxu0 %v1147_v26 }
 0x215   : > { %1763 = vpow2.f32 %v859_v40  ;;  %795 = vadd.xlane.f32.xlu1 %v794_v42  ;;  %v1117_v40 = vld [vmem:[%s2238_s9 + $0x18] sm:$0xff]  ;;  %v1115_v42 = vld [vmem:[%s2238_s9 + $0x8] sm:$0xff] }
 0x216   : > { %1765 = vpow2.f32 %v926_v41  ;;  %1170 = vmatpush.msrb.mxu0 %v1146_v27  ;;  %v1116_v41 = vld [vmem:[%s2238_s9 + $0x10] sm:$0xff] }
 0x218   : > { %v991_v43 = vpop.xlane.xlu2 %990  ;;  %1171 = vmatpush.msrb.mxu0 %v1145_v28 }
 0x219   : > { %v992_v44 = vsub.f32 %v988_v30, %v991_v43  ;;  %v1114_v43 = vld [vmem:[%s2238_s9] sm:$0xff] }
 0x21b   : > { %v1764_v45 = vpop.eup %1763  ;;  %v993_v46 = vmul.f32 1.442695, %v992_v44  ;;  %v1752_v44 = vld [vmem:[%s2241_s12] ss:$0 sm:$0xff] }
 0x21c   : > { %v1766_v47 = vpop.eup %1765  ;;  %v861_v48 = vsel %vm761_vm1, %v1764_v45, 0.0 }
 0x21d   : > { %1767 = vpow2.f32 %v993_v46  ;;  %862 = vadd.xlane.f32.xlu2 %v861_v48  ;;  %v928_v49 = vsel %vm761_vm1, %v1766_v47, 0.0 }
 0x21e   : > { %929 = vadd.xlane.f32.xlu1 %v928_v49 }
 0x223   : > { %v1768_v50 = vpop.eup %1767  ;;  %v800_v51 = vpop.permute.xlu0 %799 }
 0x224   : > { %820 = vmatpush.msra.mxu2 %v800_v51  ;;  %v995_v52 = vsel %vm761_vm1, %v1768_v50, 0.0 }
 0x225   : > { %996 = vadd.xlane.f32.xlu2 %v995_v52 }
 0x22b   : > { %v1001_v1 = vpop.permute.xlu0 %1000 }
 0x237   : > { %866 = vrot.lane.b32.xlu1 %v1977_v7, %s1818_s0 }
 0x23d   : > { %933 = vrot.lane.b32.xlu2 %v1977_v7, %s1819_s24  ;;  %s2288_s24 = smov 80  }
 0x288   : > { %v796_v53 = vpop.xlane.xlu1 %795 }
 0x289   : > { %1769 = vrcp.f32 %v796_v53 }
 0x28f   : > { %v1770_v54 = vpop.eup %1769 }
 0x290   : > { %v863_v55 = vpop.xlane.xlu2 %862  ;;  %v798_v56 = vmul.f32 %v1770_v54, %v1762_v39 }
 0x291   : > { %v930_v57 = vpop.xlane.xlu1 %929 }
 0x292   : > { %1695 = vmatmul.msk.f32.vlgmr.msra.gmra.mxu2 %vm761_vm1, %v798_v56  ;;  %1771 = vrcp.f32 %v930_v57 }
 0x293   : > { %1773 = vrcp.f32 %v863_v55 }
 0x298   : > { %v997_v58 = vpop.xlane.xlu2 %996  ;;  %v1772_v59 = vpop.eup %1771 }
 0x299   : > { %v932_v61 = vmul.f32 %v1772_v59, %v1766_v47  ;;  %v1774_v62 = vpop.eup %1773  ;;  %1775 = vrcp.f32 %v997_v58  ;;  %v1751_v59 = vld [vmem:[%s2237_s8] ss:$0 sm:$0xff] }
 0x29a   : > { %v865_v0 = vmul.f32 %v1774_v62, %v1764_v45  ;;  %1777 = vrcp.f32 %v1823_v24 }
 0x29f   : > { %v1776_v2 = vpop.eup %1775 }
 0x2a0   : > { %v934_v60 = vpop.permute.xlu2 %933  ;;  %v999_v3 = vmul.f32 %v1776_v2, %v1768_v50 }
 0x2a1   : > { %954 = vmatpush.msra.mxu3 %v934_v60 }
 0x2a2   : > { %1701 = vmatmul.msk.f32.vlgmr.msra.gmra.mxu3 %vm761_vm1, %v932_v61 }
 0x2a3   : > { %1137 = vmatpush.msrb.mxu3 %v1117_v40 }
 0x2a5   : > { %1138 = vmatpush.msrb.mxu3 %v1116_v41 }
 0x2a7   : > { %1139 = vmatpush.msrb.mxu3 %v1115_v42 }
 0x2a9   : > { %v867_v63 = vpop.permute.xlu1 %866  ;;  %1140 = vmatpush.msrb.mxu3 %v1114_v43 }
 0x2aa   : > { %887 = vmatpush.msrb.mxu2 %v867_v63 }
 0x2ab   : > { %1698 = vmatmul.msk.f32.vlgmr.msrb.gmra.mxu2 %vm761_vm1, %v865_v0  ;;  %v1753_v0 = vld [vmem:[%s2239_s10] ss:$0 sm:$0xff] }
 0x2ac   : > { %1021 = vmatpush.msra.mxu2 %v1001_v1 }
 0x2b3   : > { %1704 = vmatmul.msk.f32.vlgmr.msra.gmra.mxu2 %vm761_vm1, %v999_v3 }
 0x315   : > { %v822_v6 = vpop.f32.mrf.mxu2 }
 0x325   : > { %v956_v5 = vpop.f32.mrf.mxu3 }
 0x326   : > { %1031 = vrot.lane.b32.xlu1 %v956_v5, %s2262_s25 }
 0x32e   : > { %v889_v7 = vpop.f32.mrf.mxu2 }
 0x32f   : > { %1027 = vrot.lane.b32.xlu0 %v889_v7, %s2261_s1 }
 0x336   : > { %v1023_v8 = vpop.f32.mrf.mxu2 }
 0x337   : > { %1035 = vrot.lane.b32.xlu0 %v1023_v8, %s2263_s26  ;;  %s2283_s26 = sld [smem:[#allocation3_spill]] }
 0x33d   : > { %s718_s27 = scalar_lea.vmem %s2283_s26, %s1964_s28  ;;  %s2287_s26 = sld [smem:[#allocation9_spill]] }
 0x33e   : > { %v725_v29 = vld [vmem:[%s718_s27] sm:$0xff]  ;;  %s2294_s27 = smov 24  }
 0x33f   : > { %1707 = vmatmul.msk.f32.vlgmr.msrb.gmra.mxu0 %vm734_vm0, %v725_v29 }
 0x343   : > { %v1750_v56 = vld [vmem:[%s2287_s26] ss:$0 sm:$0xff]  ;;  %s722_s26 = scalar_lea.vmem %s2252_s23, %s1964_s28 }
 0x398   : > { %v1032_v15 = vpop.permute.xlu1 %1031 }
 0x3a1   : > { %v1028_v13 = vpop.permute.xlu0 %1027 }
 0x3a2   : > { %v1038_v14 = vsel %vm761_vm1, %v822_v6, %v1028_v13 }
 0x3a3   : > { %v1040_v16 = vsel %vm1039_vm2, %v1038_v14, %v1032_v15 }
 0x3a9   : > { %v1036_v17 = vpop.permute.xlu0 %1035 }
 0x3aa   : > { %v1042_v18 = vsel %vm1041_vm3, %v1040_v16, %v1036_v17 }
 0x3ab   : > { %1705 = vmatmul.msk.f32.vlgmr.msra.gmra.mxu1 %vm734_vm0, %v1042_v18 }
 0x3bc   : > { %v1173_v45 = vpop.f32.mrf.mxu0 }
 0x3bd   : > { %v2081_v46 = vadd.f32 %v1752_v44, %v1173_v45 }
 0x3bf   : > { %1242 = vrot.lane.b32.xlu0 %v2081_v46, %s2284_s6  ;;  %1708 = vmatpush.xpose.msk.msrb.mxu2 %vm761_vm1, %v2081_v46 }
 0x3c7   : > { %1308 = vrot.lane.b32.xlu0 %v2081_v46, %s2285_s7 }
 0x3cf   : > { %1374 = vrot.lane.b32.xlu0 %v2081_v46, %s2286_s5 }
 0x428   : > { %v1071_v20 = vpop.f32.mrf.mxu1 }
 0x429   : > { %v1072_v21 = vadd.f32 %v1749_v19, %v1071_v20 }
 0x42b   : > { %v1076_v22 = vadd.f32 %v1072_v21, %v1970_v4  ;;  %v1778_v4 = vpop.eup %1777 }
 0x42c   : > { %v1081_v30 = vmul.f32 32.0, %v1778_v4  ;;  %vm1085_vm4 = vweird.f32 %v1778_v4 }
 0x42d   : > { %v1077_v23 = vsel %vm734_vm0, %v1076_v22, 0.0 }
 0x42e   : > { %1078 = vadd.xlane.f32.xlu2 %v1077_v23  ;;  %v1082_v31 = vsub.f32 1.0, %v1081_v30 }
 0x430   : > { %v1083_v32 = vmul.f32 %v1778_v4, %v1082_v31 }
 0x431   : > { %v1243_v62 = vpop.permute.xlu0 %1242 }
 0x432   : > { %v1084_v33 = vadd.f32 %v1778_v4, %v1083_v32  ;;  %1711 = vmatpush.xpose.msk.msra.mxu3 %vm761_vm1, %v1243_v62  ;;  %v1455_v62 = vld [vmem:[%s2242_s13 + $0x10] sm:$0xff] }
 0x434   : > { %v2062_v34 = vsel %vm1085_vm4, %v1778_v4, %v1084_v33 }
 0x439   : > { %v1309_v63 = vpop.permute.xlu0 %1308 }
 0x43a   : > { %1714 = vmatpush.xpose.msk.msra.mxu2 %vm761_vm1, %v1309_v63  ;;  %v1454_v63 = vld [vmem:[%s2242_s13 + $0x8] sm:$0xff] }
 0x441   : > { %v1375_v3 = vpop.permute.xlu0 %1374 }
 0x4a1   : > { %v1079_v35 = vpop.xlane.xlu2 %1078 }
 0x4a2   : > { %v1087_v36 = vmul.f32 %v2062_v34, %v1079_v35 }
 0x4a4   : > { %v1088_v37 = vsub.f32 %v1076_v22, %v1087_v36 }
 0x4a6   : > { %v1089_v38 = vmul.f32 %v1088_v37, %v1088_v37 }
 0x4a8   : > { %v1090_v39 = vsel %vm734_vm0, %v1089_v38, 0.0 }
 0x4a9   : > { %1091 = vadd.xlane.f32.xlu1 %v1090_v39 }
 0x51c   : > { %v1092_v47 = vpop.xlane.xlu1 %1091 }
 0x51d   : > { %v1093_v48 = vmul.f32 %v1092_v47, %v2062_v34 }
 0x51f   : > { %v1094_v49 = vadd.f32 1e-05, %v1093_v48 }
 0x521   : > { %1779 = vrsqrt.f32 %v1094_v49  ;;  %vm1101_vm6 = vweird.f32 %v1094_v49 }
 0x527   : > { %v1780_v50 = vpop.eup %1779 }
 0x528   : > { %v1096_v51 = vmul.f32 %v1780_v50, %v1094_v49  ;;  %vm1102_vm5 = vweird.f32 %v1780_v50 }
 0x529   : > { %vm1103_vm7 = vmor %vm1101_vm6, %vm1102_vm5 }
 0x52a   : > { %v1097_v52 = vmul.f32 %v1780_v50, %v1096_v51 }
 0x52c   : > { %v1098_v53 = vmul.f32 0.5, %v1097_v52 }
 0x52e   : > { %v1099_v54 = vsub.f32 1.5, %v1098_v53 }
 0x530   : > { %v1100_v55 = vmul.f32 %v1780_v50, %v1099_v54 }
 0x532   : > { %v1104_v57 = vsel %vm1103_vm7, %v1780_v50, %v1100_v55 }
 0x533   : > { %v1105_v58 = vmul.f32 %v1104_v57, %v1088_v37 }
 0x535   : > { %v1109_v60 = vmul.f32 %v1750_v56, %v1105_v58 }
 0x537   : > { %v2098_v61 = vadd.f32 %v1751_v59, %v1109_v60  ;;  %v1456_v60 = vld [vmem:[%s2242_s13 + $0x18] sm:$0xff] }
 0x539   : > { %1706 = vmatmul.msk.f32.vlgmr.msrb.gmra.mxu3 %vm734_vm0, %v2098_v61 }
 0x53a   : > { %1717 = vmatpush.xpose.msk.msrb.mxu3 %vm761_vm1, %v1375_v3 }
 0x5bc   : > { %v1142_v1 = vpop.f32.mrf.mxu3 }
 0x5bd   : > { %v1143_v2 = vadd.f32 %v1753_v0, %v1142_v1  ;;  %v1453_v0 = vld [vmem:[%s2242_s13] sm:$0xff] }
 0x5bf   : > { %1372 = vrot.lane.b32.xlu2 %v1143_v2, %s2286_s5  ;;  %1240 = vrot.lane.b32.xlu0 %v1143_v2, %s2284_s6  ;;  %s2290_s6 = smov 72   ;;  %s2292_s5 = smov 16  }
 0x5c0   : > { %1709 = vmatmul.msk.f32.vlgmr.msrb.gmra.mxu2 %vm761_vm1, %v1143_v2 }
 0x5c1   : > { %1476 = vmatpush.msrb.mxu2 %v1456_v60 }
 0x5c3   : > { %1477 = vmatpush.msrb.mxu2 %v1455_v62 }
 0x5c5   : > { %1478 = vmatpush.msrb.mxu2 %v1454_v63 }
 0x5c7   : > { %1306 = vrot.lane.b32.xlu0 %v1143_v2, %s2285_s7  ;;  %s2291_s7 = smov 88   ;;  %1479 = vmatpush.msrb.mxu2 %v1453_v0 }
 0x619   : > { %v1373_v6 = vpop.permute.xlu2 %1372 }
 0x631   : > { %v1241_v5 = vpop.permute.xlu0 %1240 }
 0x632   : > { %1712 = vmatmul.msk.f32.vlgmr.msra.gmra.mxu3 %vm761_vm1, %v1241_v5 }
 0x639   : > { %v1307_v7 = vpop.permute.xlu0 %1306 }
 0x63a   : > { %1715 = vmatmul.msk.f32.vlgmr.msra.gmra.mxu2 %vm761_vm1, %v1307_v7  ;;  %1718 = vmatmul.msk.f32.vlgmr.msrb.gmra.mxu3 %vm761_vm1, %v1373_v6 }
 0x643   : > { %v1199_v8 = vpop.f32.mrf.mxu2 }
 0x644   : > { %v1202_v9 = vmul.f32 0.35355338, %v1199_v8  ;;  %v1754_v8 = vld [vmem:[%s2243_s14] ss:$0 sm:$0xff] }
 0x646   : > { %v1203_v10 = vsel %vm761_vm1, %v1202_v9, -inf }
 0x647   : > { %1204 = vmax.xlane.f32.xlu1 %v1203_v10 }
 0x6b5   : > { %v1265_v11 = vpop.f32.mrf.mxu3 }
 0x6b6   : > { %v1268_v12 = vmul.f32 0.35355338, %v1265_v11 }
 0x6b8   : > { %v1269_v13 = vsel %vm761_vm1, %v1268_v12, -inf }
 0x6b9   : > { %1270 = vmax.xlane.f32.xlu0 %v1269_v13 }
 0x6ba   : > { %v1205_v14 = vpop.xlane.xlu1 %1204 }
 0x6bb   : > { %v1206_v15 = vsub.f32 %v1202_v9, %v1205_v14 }
 0x6bd   : > { %v1207_v16 = vmul.f32 1.442695, %v1206_v15  ;;  %v1331_v17 = vpop.f32.mrf.mxu2  ;;  %v1397_v20 = vpop.f32.mrf.mxu3 }
 0x6be   : > { %v1334_v18 = vmul.f32 0.35355338, %v1331_v17  ;;  %v1400_v21 = vmul.f32 0.35355338, %v1397_v20  ;;  %v1517_v20 = vld [vmem:[%s2246_s17] sm:$0xff] }
 0x6bf   : > { %1781 = vpow2.f32 %v1207_v16 }
 0x6c0   : > { %v1335_v19 = vsel %vm761_vm1, %v1334_v18, -inf  ;;  %v1401_v24 = vsel %vm761_vm1, %v1400_v21, -inf }
 0x6c1   : > { %1336 = vmax.xlane.f32.xlu1 %v1335_v19  ;;  %v1518_v19 = vld [vmem:[%s2246_s17 + $0x8] sm:$0xff] }
 0x6c5   : > { %v1782_v22 = vpop.eup %1781 }
 0x6c6   : > { %v1209_v23 = vsel %vm761_vm1, %v1782_v22, 0.0 }
 0x6c7   : > { %1210 = vadd.xlane.f32.xlu2 %v1209_v23  ;;  %v1554_v23 = vld [vmem:[%s2248_s19 + $0x28] sm:$0xff] }
 0x6c9   : > { %1402 = vmax.xlane.f32.xlu1 %v1401_v24 }
 0x6df   : > { %1346 = vrot.lane.b32.xlu2 %v2081_v46, %s2288_s24 }
 0x6e2   : > { %1214 = vrot.lane.b32.xlu1 %v2081_v46, %s2289_s30 }
 0x72c   : > { %v1271_v25 = vpop.xlane.xlu0 %1270 }
 0x72d   : > { %v1272_v26 = vsub.f32 %v1268_v12, %v1271_v25 }
 0x72f   : > { %v1273_v27 = vmul.f32 1.442695, %v1272_v26  ;;  %v1553_v26 = vld [vmem:[%s2248_s19 + $0x20] sm:$0xff] }
 0x731   : > { %1783 = vpow2.f32 %v1273_v27 }
 0x734   : > { %v1337_v4 = vpop.xlane.xlu1 %1336 }
 0x735   : > { %v1338_v28 = vsub.f32 %v1334_v18, %v1337_v4  ;;  %v1520_v18 = vld [vmem:[%s2246_s17 + $0x18] sm:$0xff] }
 0x736   : > { %v1552_v4 = vld [vmem:[%s2248_s19 + $0x18] sm:$0xff] }
 0x737   : > { %v1784_v29 = vpop.eup %1783  ;;  %v1339_v30 = vmul.f32 1.442695, %v1338_v28 }
 0x738   : > { %v1275_v31 = vsel %vm761_vm1, %v1784_v29, 0.0 }
 0x739   : > { %1785 = vpow2.f32 %v1339_v30  ;;  %1276 = vadd.xlane.f32.xlu1 %v1275_v31 }
 0x73a   : > { %v1211_v39 = vpop.xlane.xlu2 %1210 }
 0x73c   : > { %v1403_v32 = vpop.xlane.xlu1 %1402 }
 0x73d   : > { %v1404_v33 = vsub.f32 %v1400_v21, %v1403_v32  ;;  %v1556_v21 = vld [vmem:[%s2248_s19 + $0x38] sm:$0xff] }
 0x73e   : > { %1573 = vmatpush.msra.mxu3 %v1556_v21 }
 0x73f   : > { %v1786_v35 = vpop.eup %1785  ;;  %v1405_v36 = vmul.f32 1.442695, %v1404_v33 }
 0x740   : > { %v1341_v37 = vsel %vm761_vm1, %v1786_v35, 0.0 }
 0x741   : > { %1787 = vpow2.f32 %v1405_v36  ;;  %1342 = vadd.xlane.f32.xlu1 %v1341_v37 }
 0x742   : > { %1789 = vrcp.f32 %v1211_v39  ;;  %v1347_v44 = vpop.permute.xlu2 %1346 }
 0x747   : > { %v1788_v38 = vpop.eup %1787 }
 0x748   : > { %v1407_v40 = vsel %vm761_vm1, %v1788_v38, 0.0  ;;  %v1790_v41 = vpop.eup %1789 }
 0x749   : > { %1408 = vadd.xlane.f32.xlu0 %v1407_v40  ;;  %v1213_v42 = vmul.f32 %v1790_v41, %v1782_v22  ;;  %v1555_v22 = vld [vmem:[%s2248_s19 + $0x30] sm:$0xff] }
 0x74a   : > { %1574 = vmatpush.msra.mxu3 %v1555_v22  ;;  %v1551_v41 = vld [vmem:[%s2248_s19 + $0x10] sm:$0xff] }
 0x74c   : > { %1575 = vmatpush.msra.mxu3 %v1554_v23 }
 0x74e   : > { %1576 = vmatpush.msra.mxu3 %v1553_v26 }
 0x750   : > { %1577 = vmatpush.msra.mxu3 %v1552_v4 }
 0x752   : > { %1578 = vmatpush.msra.mxu3 %v1551_v41 }
 0x754   : > { %v1215_v43 = vpop.permute.xlu1 %1214 }
 0x755   : > { %1235 = vmatpush.msrb.mxu1 %v1215_v43  ;;  %v1549_v43 = vld [vmem:[%s2248_s19] sm:$0xff] }
 0x756   : > { %1710 = vmatmul.msk.f32.vlgmr.msrb.gmra.mxu1 %vm761_vm1, %v1213_v42  ;;  %v1550_v42 = vld [vmem:[%s2248_s19 + $0x8] sm:$0xff] }
 0x757   : > { %1367 = vmatpush.msra.mxu1 %v1347_v44  ;;  %1579 = vmatpush.msra.mxu3 %v1550_v42  ;;  %v1757_v44 = vld [vmem:[%s2247_s18] ss:$0 sm:$0xff] }
 0x759   : > { %1540 = vmatpush.msrb.mxu1 %v1520_v18  ;;  %1580 = vmatpush.msra.mxu3 %v1549_v43 }
 0x75a   : > { %1412 = vrot.lane.b32.xlu1 %v2081_v46, %s2290_s6 }
 0x75d   : > { %1280 = vrot.lane.b32.xlu0 %v2081_v46, %s2291_s7 }
 0x7ac   : > { %v1277_v45 = vpop.xlane.xlu1 %1276 }
 0x7b4   : > { %v1343_v47 = vpop.xlane.xlu1 %1342 }
 0x7b5   : > { %1791 = vrcp.f32 %v1343_v47 }
 0x7b6   : > { %1793 = vrcp.f32 %v1277_v45 }
 0x7bb   : > { %v1792_v48 = vpop.eup %1791 }
 0x7bc   : > { %v1345_v49 = vmul.f32 %v1792_v48, %v1786_v35  ;;  %v1409_v50 = vpop.xlane.xlu0 %1408  ;;  %v1794_v51 = vpop.eup %1793  ;;  %v1755_v35 = vld [vmem:[%s2244_s15] ss:$0 sm:$0xff] }
 0x7bd   : > { %1795 = vrcp.f32 %v1409_v50  ;;  %v1279_v52 = vmul.f32 %v1794_v51, %v1784_v29 }
 0x7be   : > { %1716 = vmatmul.msk.f32.vlgmr.msra.gmra.mxu1 %vm761_vm1, %v1345_v49  ;;  %v1758_v49 = vld [vmem:[%s2249_s20] ss:$0 sm:$0xff] }
 0x7c3   : > { %v1796_v55 = vpop.eup %1795 }
 0x7c4   : > { %v1411_v46 = vmul.f32 %v1796_v55, %v1788_v38  ;;  %v1756_v38 = vld [vmem:[%s2245_s16] ss:$0 sm:$0xff] }
 0x7cc   : > { %v1413_v54 = vpop.permute.xlu1 %1412 }
 0x7cf   : > { %v1281_v53 = vpop.permute.xlu0 %1280 }
 0x7d0   : > { %1301 = vmatpush.msra.mxu0 %v1281_v53 }
 0x7d1   : > { %1713 = vmatmul.msk.f32.vlgmr.msra.gmra.mxu0 %vm761_vm1, %v1279_v52 }
 0x7d2   : > { %1433 = vmatpush.msrb.mxu0 %v1413_v54 }
 0x7d3   : > { %v1237_v56 = vpop.f32.mrf.mxu1 }
 0x7d9   : > { %1719 = vmatmul.msk.f32.vlgmr.msrb.gmra.mxu0 %vm761_vm1, %v1411_v46 }
 0x83b   : > { %v1369_v57 = vpop.f32.mrf.mxu1 }
 0x83c   : > { %1443 = vrot.lane.b32.xlu1 %v1369_v57, %s2292_s5 }
 0x84e   : > { %v1303_v58 = vpop.f32.mrf.mxu0 }
 0x84f   : > { %1439 = vrot.lane.b32.xlu0 %v1303_v58, %s2293_s2 }
 0x856   : > { %v1435_v59 = vpop.f32.mrf.mxu0 }
 0x857   : > { %1447 = vrot.lane.b32.xlu0 %v1435_v59, %s2294_s27 }
 0x8ae   : > { %v1444_v3 = vpop.permute.xlu1 %1443 }
 0x8c1   : > { %v1440_v1 = vpop.permute.xlu0 %1439 }
 0x8c2   : > { %v1450_v2 = vsel %vm761_vm1, %v1237_v56, %v1440_v1 }
 0x8c3   : > { %v1451_v5 = vsel %vm1039_vm2, %v1450_v2, %v1444_v3 }
 0x8c9   : > { %v1448_v6 = vpop.permute.xlu0 %1447 }
 0x8ca   : > { %v1452_v7 = vsel %vm1041_vm3, %v1451_v5, %v1448_v6  ;;  %v1759_v5 = vld [vmem:[%s2250_s21] ss:$0 sm:$0xff] }
 0x8cb   : > { %1720 = vmatmul.msk.f32.vlgmr.msrb.gmra.mxu2 %vm734_vm0, %v1452_v7 }
 0x94e   : > { %v1481_v9 = vpop.f32.mrf.mxu2 }
 0x94f   : > { %v1482_v10 = vadd.f32 %v1754_v8, %v1481_v9 }
 0x951   : > { %v1486_v11 = vadd.f32 %v1482_v10, %v2098_v61  ;;  %v1519_v61 = vld [vmem:[%s2246_s17 + $0x10] sm:$0xff] }
 0x952   : > { %1541 = vmatpush.msrb.mxu1 %v1519_v61 }
 0x953   : > { %v1487_v12 = vsel %vm734_vm0, %v1486_v11, 0.0 }
 0x954   : > { %1488 = vadd.xlane.f32.xlu1 %v1487_v12  ;;  %1542 = vmatpush.msrb.mxu1 %v1518_v19 }
 0x956   : > { %1543 = vmatpush.msrb.mxu1 %v1517_v20 }
 0x9c7   : > { %v1489_v13 = vpop.xlane.xlu1 %1488 }
 0x9c8   : > { %v1490_v14 = vmul.f32 %v1489_v13, %v2062_v34 }
 0x9ca   : > { %v1491_v15 = vsub.f32 %v1486_v11, %v1490_v14 }
 0x9cc   : > { %v1492_v16 = vmul.f32 %v1491_v15, %v1491_v15 }
 0x9ce   : > { %v1493_v17 = vsel %vm734_vm0, %v1492_v16, 0.0 }
 0x9cf   : > { %1494 = vadd.xlane.f32.xlu2 %v1493_v17 }
 0xa42   : > { %v1495_v24 = vpop.xlane.xlu2 %1494 }
 0xa43   : > { %v1496_v25 = vmul.f32 %v1495_v24, %v2062_v34 }
 0xa45   : > { %v1497_v27 = vadd.f32 1e-05, %v1496_v25 }
 0xa47   : > { %1797 = vrsqrt.f32 %v1497_v27  ;;  %vm1504_vm9 = vweird.f32 %v1497_v27 }
 0xa4d   : > { %v1798_v28 = vpop.eup %1797 }
 0xa4e   : > { %v1499_v29 = vmul.f32 %v1798_v28, %v1497_v27  ;;  %vm1505_vm8 = vweird.f32 %v1798_v28 }
 0xa4f   : > { %vm1506_vm10 = vmor %vm1504_vm9, %vm1505_vm8 }
 0xa50   : > { %v1500_v30 = vmul.f32 %v1798_v28, %v1499_v29 }
 0xa52   : > { %v1501_v31 = vmul.f32 0.5, %v1500_v30 }
 0xa54   : > { %v1502_v32 = vsub.f32 1.5, %v1501_v31 }
 0xa56   : > { %v1503_v33 = vmul.f32 %v1798_v28, %v1502_v32 }
 0xa58   : > { %v1507_v36 = vsel %vm1506_vm10, %v1798_v28, %v1503_v33 }
 0xa59   : > { %v1508_v37 = vmul.f32 %v1507_v36, %v1491_v15 }
 0xa5b   : > { %v1512_v39 = vmul.f32 %v1755_v35, %v1508_v37 }
 0xa5d   : > { %v1516_v40 = vadd.f32 %v1756_v38, %v1512_v39 }
 0xa5f   : > { %1721 = vmatmul.msk.f32.vlgmr.msrb.gmra.mxu1 %vm734_vm0, %v1516_v40 }
 0xadc   : > { %v1545_v45 = vpop.f32.mrf.mxu1 }
 0xadd   : > { %v1546_v47 = vadd.f32 %v1757_v44, %v1545_v45 }
 0xadf   : > { %v1548_v48 = vmax.f32 %v1546_v47, 0.0 }
 0xae1   : > { %1722 = vmatmul.msk.f32.vlgmr.msra.gmra.mxu3 %vm1561_vm11, %v1548_v48 }
 0xb64   : > { %v1582_v50 = vpop.f32.mrf.mxu3 }
 0xb65   : > { %v1583_v51 = vadd.f32 %v1758_v49, %v1582_v50 }
 0xb67   : > { %v1587_v52 = vadd.f32 %v1583_v51, %v1516_v40 }
 0xb69   : > { %v1588_v53 = vsel %vm734_vm0, %v1587_v52, 0.0 }
 0xb6a   : > { %1589 = vadd.xlane.f32.xlu0 %v1588_v53 }
 0xbdd   : > { %v1590_v54 = vpop.xlane.xlu0 %1589 }
 0xbde   : > { %v1591_v55 = vmul.f32 %v1590_v54, %v2062_v34 }
 0xbe0   : > { %v1592_v46 = vsub.f32 %v1587_v52, %v1591_v55 }
 0xbe2   : > { %v1593_v56 = vmul.f32 %v1592_v46, %v1592_v46 }
 0xbe4   : > { %v1594_v57 = vsel %vm734_vm0, %v1593_v56, 0.0 }
 0xbe5   : > { %1595 = vadd.xlane.f32.xlu1 %v1594_v57 }
 0xc58   : > { %v1596_v58 = vpop.xlane.xlu1 %1595 }
 0xc59   : > { %v1597_v59 = vmul.f32 %v1596_v58, %v2062_v34  ;;  %v1760_v34 = vld [vmem:[%s2251_s22] ss:$0 sm:$0xff] }
 0xc5b   : > { %v1598_v60 = vadd.f32 1e-05, %v1597_v59 }
 0xc5d   : > { %1799 = vrsqrt.f32 %v1598_v60  ;;  %vm1605_vm13 = vweird.f32 %v1598_v60 }
 0xc63   : > { %v1800_v62 = vpop.eup %1799 }
 0xc64   : > { %v1600_v63 = vmul.f32 %v1800_v62, %v1598_v60  ;;  %vm1606_vm12 = vweird.f32 %v1800_v62 }
 0xc65   : > { %vm1607_vm14 = vmor %vm1605_vm13, %vm1606_vm12 }
 0xc66   : > { %v1601_v0 = vmul.f32 %v1800_v62, %v1600_v63 }
 0xc68   : > { %v1602_v1 = vmul.f32 0.5, %v1601_v0 }
 0xc6a   : > { %v1603_v2 = vsub.f32 1.5, %v1602_v1 }
 0xc6c   : > { %v1604_v3 = vmul.f32 %v1800_v62, %v1603_v2 }
 0xc6e   : > { %v1608_v6 = vsel %vm1607_vm14, %v1800_v62, %v1604_v3 }
 0xc6f   : > { %v1609_v7 = vmul.f32 %v1608_v6, %v1592_v46 }
 0xc71   : > { %v1613_v8 = vmul.f32 %v1759_v5, %v1609_v7 }
 0xc73   : > { %v1617_v9 = vadd.f32 %v1760_v34, %v1613_v8 }
 0xc75   : > { %1618 = vst.msk [vmem:[%s722_s26] sm:$0xff] %vm734_vm0, %v1617_v9 }
 0xc76 PF: > { %s33_s4 = sadd.s32 1, %s1807_s4  }
 0xc77   : > { %p30_p4 = scmp.ge.s32.totalorder %s33_s4, 4  }
 0xc79   :  { %32 = sbr.rel (!%p30_p4) target bundleno = 9 (0x9), region = 145 }

// kernel: transformer_decoder.4
= control target key start
LH: loop header
LB: loop body
LE: loop exit
PB: predicated region body
PF: predicated region fallthrough
CT: control target
= control target key end

     0   :  { %s2621_s0 = inlined_call_operand.vmem [shape: f32[2,8,32], index: 0, kind: input, shape index: {}]   ;;  %s2622_s1 = inlined_call_operand.vmem [shape: f32[2,8,32], index: 1, kind: input, shape index: {}]   ;;  %s2623_s2 = inlined_call_operand.vmem [shape: f32[8,8], index: 2, kind: input, shape index: {}]   ;;  %s2624_s3 = inlined_call_operand.vmem [shape: f32[32,96], index: 3, kind: input, shape index: {}]   ;;  %s2625_s4 = inlined_call_operand.vmem [shape: f32[1,96], index: 4, kind: input, shape index: {}]   ;;  %s2626_s5 = inlined_call_operand.vmem [shape: f32[32,32], index: 5, kind: input, shape index: {}]   ;;  %s2627_s6 = inlined_call_operand.vmem [shape: f32[1,32], index: 6, kind: input, shape index: {}]   ;;  %s2628_s7 = inlined_call_operand.vmem [shape: f32[1,32], index: 7, kind: input, shape index: {}]   ;;  %s2629_s8 = inlined_call_operand.vmem [shape: f32[1,32], index: 8, kind: input, shape index: {}]   ;;  %s2630_s9 = inlined_call_operand.vmem [shape: f32[32,32], index: 9, kind: input, shape index: {}]   ;;  %s2631_s10 = inlined_call_operand.vmem [shape: f32[1,32], index: 10, kind: input, shape index: {}]   ;;  %s2632_s11 = inlined_call_operand.vmem [shape: f32[32,64], index: 11, kind: input, shape index: {}]   ;;  %s2633_s12 = inlined_call_operand.vmem [shape: f32[1,64], index: 12, kind: input, shape index: {}]   ;;  %s2634_s13 = inlined_call_operand.vmem [shape: f32[32,32], index: 13, kind: input, shape index: {}]   ;;  %s2635_s14 = inlined_call_operand.vmem [shape: f32[1,32], index: 14, kind: input, shape index: {}]   ;;  %s2636_s15 = inlined_call_operand.vmem [shape: f32[1,32], index: 15, kind: input, shape index: {}]   ;;  %s2637_s16 = inlined_call_operand.hbm [shape: f32[1,32], index: 16, kind: input, shape index: {}]   ;;  %s2638_s17 = inlined_call_operand.vmem [shape: f32[32,64], index: 17, kind: input, shape index: {}]   ;;  %s2639_s18 = inlined_call_operand.hbm [shape: f32[1,64], index: 18, kind: input, shape index: {}]   ;;  %s2640_s19 = inlined_call_operand.vmem [shape: f32[64,32], index: 19, kind: input, shape index: {}]   ;;  %s2641_s20 = inlined_call_operand.hbm [shape: f32[1,32], index: 20, kind: input, shape index: {}]   ;;  %s2642_s21 = inlined_call_operand.hbm [shape: f32[1,32], index: 21, kind: input, shape index: {}]   ;;  %s2643_s22 = inlined_call_operand.hbm [shape: f32[1,32], index: 22, kind: input, shape index: {}]   ;;  %s2644_s23 = inlined_call_operand.vmem [shape: f32[2,8,32], index: 23, kind: output, shape index: {}]  }
   0x1   :  { %2655 = sst [smem:[#allocation14_spill]] %s2621_s0 }
   0x2   :  { %2656 = sst [smem:[#allocation15_spill]] %s2622_s1 }
   0x3   :  { %2657 = sst [smem:[#allocation16_spill]] %s2623_s2 }
   0x4   :  { %2658 = sst [smem:[#allocation17_spill]] %s2624_s3 }
   0x5   :  { %2659 = sst [smem:[#allocation18_spill]] %s2625_s4 }
   0x6   :  { %2660 = sst [smem:[#allocation19_spill]] %s2626_s5 }
   0x7   :  { %2661 = sst [smem:[#allocation20_spill]] %s2627_s6 }
   0x8   :  { %2662 = sst [smem:[#allocation21_spill]] %s2628_s7 }
   0x9   :  { %2663 = sst [smem:[#allocation22_spill]] %s2637_s16 }
   0xa   :  { %2664 = sst [smem:[#allocation23_spill]] %s2639_s18 }
   0xb   :  { %2665 = sst [smem:[#allocation24_spill]] %s2642_s21 }
   0xc   :  { %28 = vsyncpa [#allocation3], 0 }
   0xd   :  { %29 = vsyncpa [#allocation5], 0 }
   0xe   :  { %30 = vsyncpa [#allocation8], 0  ;;  %s2295_s4 = smov 0  }
   0xf LB: > { %2666 = sst [smem:[#allocation13_spill]] %s2153_s4  ;;  %s2304_s5 = sadd.s32 4294967295, %s2153_s4   ;;  %s2153_s4 = sphi %s2295_s4, %s36_s4  }
  0x10   : > { %s2667_s18 = sld [smem:[#allocation23_spill]]  ;;  %p1809_p0 = scmp.ge.s32.totalorder %s2153_s4, 1 }
  0x11   : > { %p560_p1 = scmp.lt.s32.totalorder %s2153_s4, 3  ;;  %p1894_p2 = scmp.eq.s32.totalorder %s2304_s5, 0 }
  0x12   : > { %s2155_s26 = smov [#allocation4]   ;;  %s2669_s21 = sld [smem:[#allocation24_spill]] }
  0x13   : > { %p2309_p3 = pnand %p1809_p0, %p560_p1  ;;  %s631_s2 = sshll.u32 %s2155_s26, 4  ;;  %s632_s2 = int_to_ptr.vmem [resolvable:$true] %s631_s2 }
  0x14   : > { %s2670_s16 = sld [smem:[#allocation22_spill]]  ;;  %s2156_s30 = smov [#allocation7]  }
  0x15   : > { %p1878_p4 = pneg %p2309_p3  ;;  %s658_s24 = sshll.u32 %s2156_s30, 4  ;;  %s659_s24 = int_to_ptr.vmem [resolvable:$true] %s658_s24 }
  0x16   : > { %s629_s25 = sshll.u32 %s2667_s18, 4  ;;  %s2157_s26 = smov [#allocation2]   ;;  %s630_s25 = int_to_ptr.hbm [resolvable:$true] %s629_s25 }
  0x17   : > { %p2323_p5 = pnand %p1894_p2, %p1878_p4  ;;  %s616_s6 = sshll.u32 %s2157_s26, 4  ;;  %s617_s6 = int_to_ptr.vmem [resolvable:$true] %s616_s6 }
  0x18   : > { %s656_s7 = sshll.u32 %s2669_s21, 4  ;;  %s644_s29 = sshll.u32 %s2641_s20, 4  ;;  %s657_s7 = int_to_ptr.hbm [resolvable:$true] %s656_s7  ;;  %s645_s29 = int_to_ptr.hbm [resolvable:$true] %s644_s29 }
  0x19   : > { %1884 = dma.hbm_to_vmem [thread:$0]  (!%p2323_p5), %s630_s25, 16, %s632_s2, [#allocation5]  }
  0x1a   : > { %s614_s3 = sshll.u32 %s2670_s16, 4  ;;  %s668_s18 = sshll.u32 %s2643_s22, 4  ;;  %s615_s3 = int_to_ptr.hbm [resolvable:$true] %s614_s3  ;;  %s669_s18 = int_to_ptr.hbm [resolvable:$true] %s668_s18 }
  0x1b   : > { %1890 = dma.hbm_to_vmem [thread:$0]  (!%p2323_p5), %s657_s7, 16, %s659_s24, [#allocation8]  }
  0x1c   : > { %1881 = dma.hbm_to_vmem [thread:$0]  (!%p2323_p5), %s615_s3, 16, %s617_s6, [#allocation3]  }
  0x1d   : > { %s2158_s21 = smov [#allocation6]   ;;  %s2159_s25 = smov [#allocation9]  }
  0x1e   : > { %s646_s4 = sshll.u32 %s2158_s21, 4  ;;  %s670_s2 = sshll.u32 %s2159_s25, 4  ;;  %s647_s4 = int_to_ptr.vmem [resolvable:$true] %s646_s4  ;;  %s671_s2 = int_to_ptr.vmem [resolvable:$true] %s670_s2 }
  0x1f   : > { %1887 = dma.hbm_to_vmem [thread:$0]  (!%p2323_p5), %s645_s29, 16, %s647_s4, [#allocation5]  }
  0x20   : > { %1893 = dma.hbm_to_vmem [thread:$0]  (!%p2323_p5), %s669_s18, 16, %s671_s2, [#allocation8]  }
  0x21   : > { %697 = sbr.rel (%p2309_p3) target bundleno = 3219 (0xc93), region = 112 }
  0x26   : > { %2140 = dma.done.wait (%p1894_p2), [#allocation3], 16  }
  0x27   : > { %2142 = vsyncadd (%p1894_p2), [#allocation3], 4294967280 }
  0x28   : > { %2144 = dma.done.wait (%p1894_p2), [#allocation5], 32  }
  0x29   : > { %2146 = vsyncadd (%p1894_p2), [#allocation5], 4294967264 }
  0x2a   : > { %2148 = dma.done.wait (%p1894_p2), [#allocation8], 32  }
  0x2b   : > { %2150 = vsyncadd (%p1894_p2), [#allocation8], 4294967264  ;;  %p784_p6 = scmp.lt.s32.totalorder %s2304_s5, 1  ;;  %s2672_s4 = sld [smem:[#allocation17_spill]]  ;;  %vm807_vm0 = vcmask 261120   ;;  %vm834_vm1 = vcmask 64512  }
  0x2c   : > { %s2674_s26 = sld [smem:[#allocation14_spill]]  ;;  %s2652_s18 = smov 72   ;;  %vm1112_vm2 = vcmask 130048   ;;  %vm1114_vm3 = vcmask 195584   ;;  %vm1634_vm11 = vcmask 523264  }
  0x2d   : > { %s2690_s5 = smov (!%p784_p6, %s2304_s5), 1  ;;  %s2675_s2 = sld [smem:[#allocation18_spill]] }
  0x2e   : > { %s2359_s16 = sshll.u32 %s2690_s5, 3  ;;  %s2161_s21 = smov 120  }
  0x2f   : > { %s2163_s7 = smov 112   ;;  %s2654_s3 = smov 80  }
  0x30   : > { %s2648_s0 = smov 88   ;;  %s2166_s24 = smov 104  }
  0x31   : > { %s2673_s1 = smov %s2672_s4  ;;  %v802_v0 = vld [vmem:[%s2672_s4 + $0x18] sm:$0xff]  ;;  %s2653_s4 = smov 96  }
  0x32   : > { %v801_v1 = vld [vmem:[%s2673_s1 + $0x10] sm:$0xff]  ;;  %s787_s6 = scalar_lea.vmem %s2674_s26, %s2359_s16  ;;  %823 = vmatpush.msra.mxu0 %v802_v0  ;;  %v800_v2 = vld [vmem:[%s2673_s1 + $0x8] sm:$0xff]  ;;  %v799_v3 = vld [vmem:[%s2673_s1] sm:$0xff]  ;;  %s2676_s27 = sld [smem:[#allocation16_spill]] }
  0x33   : > { %v2377_v4 = vld [vmem:[%s787_s6] sm:$0xff]  ;;  %s2167_s28 = smov 64   ;;  %s2168_s5 = smov 40  }
  0x34   : > { %824 = vmatpush.msra.mxu0 %v801_v1  ;;  %v1932_v5 = vld [vmem:[%s2675_s2] ss:$0 sm:$0xff]  ;;  %s2169_s29 = smov 56   ;;  %s2170_s30 = smov 48  }
  0x35   : > { %s2650_s25 = smov 16   ;;  %s2649_s2 = smov 8  }
  0x36   : > { %825 = vmatpush.msra.mxu0 %v800_v2  ;;  %s2651_s26 = smov 24  }
  0x38   : > { %826 = vmatpush.msra.mxu0 %v799_v3  ;;  %v796_v16 = vld [vmem:[%s2676_s27] sm:$0xff]  ;;  %s2678_s27 = sld [smem:[#allocation20_spill]] }
  0x39   : > { %1825 = vmatmul.msk.f32.vlgmr.msra.gmra.mxu0 %vm807_vm0, %v2377_v4 }
  0xb6   : > { %v828_v6 = vpop.f32.mrf.mxu0 }
  0xb7   : > { %v2384_v7 = vadd.f32 %v1932_v5, %v828_v6 }
  0xb9   : > { %1034 = vrot.lane.b32.xlu2 %v2384_v7, %s2652_s18  ;;  %898 = vrot.lane.b32.xlu1 %v2384_v7, %s2161_s21 }
  0xba   : > { %832 = vrot.lane.b32.xlu0 %v2384_v7, %s2653_s4  ;;  %s2680_s4 = sld [smem:[#allocation21_spill]] }
  0xc1   : > { %965 = vrot.lane.b32.xlu2 %v2384_v7, %s2163_s7  ;;  %967 = vrot.lane.b32.xlu1 %v2384_v7, %s2654_s3 }
  0xc2   : > { %900 = vrot.lane.b32.xlu0 %v2384_v7, %s2648_s0 }
  0xca   : > { %1032 = vrot.lane.b32.xlu0 %v2384_v7, %s2166_s24 }
 0x113   : > { %v1035_v10 = vpop.permute.xlu2 %1034 }
 0x11b   : > { %v966_v13 = vpop.permute.xlu2 %965 }
 0x12b   : > { %v899_v8 = vpop.permute.xlu1 %898 }
 0x12c   : > { %v833_v9 = vpop.permute.xlu0 %832 }
 0x12d   : > { %1826 = vmatpush.xpose.msk.msra.mxu1 %vm834_vm1, %v833_v9 }
 0x130   : > { %1827 = vmatmul.msk.f32.vlgmr.msra.gmra.mxu1 %vm834_vm1, %v2384_v7 }
 0x133   : > { %v968_v11 = vpop.permute.xlu1 %967 }
 0x134   : > { %v901_v12 = vpop.permute.xlu0 %900  ;;  %1832 = vmatpush.xpose.msk.msrb.mxu1 %vm834_vm1, %v968_v11 }
 0x135   : > { %1829 = vmatpush.xpose.msk.msrb.mxu0 %vm834_vm1, %v901_v12 }
 0x138   : > { %1830 = vmatmul.msk.f32.vlgmr.msrb.gmra.mxu0 %vm834_vm1, %v899_v8  ;;  %1833 = vmatmul.msk.f32.vlgmr.msrb.gmra.mxu1 %vm834_vm1, %v966_v13 }
 0x139   : > { %1835 = vmatpush.xpose.msk.msra.mxu0 %vm834_vm1, %v1035_v10 }
 0x13c   : > { %v1033_v14 = vpop.permute.xlu0 %1032 }
 0x140   : > { %1836 = vmatmul.msk.f32.vlgmr.msra.gmra.mxu0 %vm834_vm1, %v1033_v14 }
 0x1ad   : > { %v856_v15 = vpop.f32.mrf.mxu1 }
 0x1ae   : > { %v859_v17 = vmul.f32 0.35355338, %v856_v15 }
 0x1b0   : > { %v860_v18 = vadd.f32 %v859_v17, %v796_v16 }
 0x1b2   : > { %v861_v19 = vsel %vm834_vm1, %v860_v18, -inf }
 0x1b3   : > { %862 = vmax.xlane.f32.xlu1 %v861_v19  ;;  %v1933_v19 = vld [vmem:[%s2678_s27] ss:$0 sm:$0xff] }
 0x1b5   : > { %v923_v20 = vpop.f32.mrf.mxu0  ;;  %v990_v21 = vpop.f32.mrf.mxu1 }
 0x1b6   : > { %v926_v22 = vmul.f32 0.35355338, %v923_v20  ;;  %v993_v23 = vmul.f32 0.35355338, %v990_v21 }
 0x1b8   : > { %v994_v24 = vadd.f32 %v993_v23, %v796_v16  ;;  %v927_v25 = vadd.f32 %v926_v22, %v796_v16 }
 0x1ba   : > { %v995_v26 = vsel %vm834_vm1, %v994_v24, -inf  ;;  %v928_v27 = vsel %vm834_vm1, %v927_v25, -inf }
 0x1bb   : > { %996 = vmax.xlane.f32.xlu0 %v995_v26  ;;  %929 = vmax.xlane.f32.xlu2 %v928_v27  ;;  %v1220_v26 = vld [vmem:[%s2632_s11 + $0x10] sm:$0xff]  ;;  %v1219_v27 = vld [vmem:[%s2632_s11 + $0x8] sm:$0xff] }
 0x1bd   : > { %v1057_v28 = vpop.f32.mrf.mxu0 }
 0x1be   : > { %v1060_v29 = vmul.f32 0.35355338, %v1057_v28  ;;  %v1218_v28 = vld [vmem:[%s2632_s11] sm:$0xff] }
 0x1c0   : > { %v1061_v30 = vadd.f32 %v1060_v29, %v796_v16 }
 0x1c2   : > { %v1062_v31 = vsel %vm834_vm1, %v1061_v30, -inf }
 0x1c3   : > { %1063 = vmax.xlane.f32.xlu2 %v1062_v31 }
 0x1cf   : > { %872 = vrot.lane.b32.xlu0 %v2384_v7, %s2167_s28  ;;  %s2677_s28 = sld [smem:[#allocation19_spill]] }
 0x1d5   : > { %v1119_v9 = vld [vmem:[%s2677_s28 + $0x18] sm:$0xff]  ;;  %v1118_v10 = vld [vmem:[%s2677_s28 + $0x10] sm:$0xff]  ;;  %v1117_v11 = vld [vmem:[%s2677_s28 + $0x8] sm:$0xff] }
 0x1d6   : > { %1139 = vmatpush.msra.mxu1 %v1119_v9  ;;  %v1116_v12 = vld [vmem:[%s2677_s28] sm:$0xff] }
 0x1d7   : > { %1073 = vrot.lane.b32.xlu0 %v2384_v7, %s2168_s5  ;;  %s2685_s5 = smov 16  }
 0x1d8   : > { %1140 = vmatpush.msra.mxu1 %v1118_v10 }
 0x1da   : > { %1141 = vmatpush.msra.mxu1 %v1117_v11 }
 0x1dc   : > { %1142 = vmatpush.msra.mxu1 %v1116_v12 }
 0x226   : > { %v863_v32 = vpop.xlane.xlu1 %862 }
 0x227   : > { %v864_v33 = vsub.f32 %v860_v18, %v863_v32 }
 0x229   : > { %v865_v34 = vmul.f32 1.442695, %v864_v33 }
 0x22b   : > { %1945 = vpow2.f32 %v865_v34 }
 0x22e   : > { %v997_v35 = vpop.xlane.xlu0 %996  ;;  %v930_v36 = vpop.xlane.xlu2 %929 }
 0x22f   : > { %v998_v37 = vsub.f32 %v994_v24, %v997_v35  ;;  %v931_v38 = vsub.f32 %v927_v25, %v930_v36  ;;  %v2174_v24 = vmov 32.0   ;;  %v1221_v25 = vld [vmem:[%s2632_s11 + $0x18] sm:$0xff] }
 0x230   : > { %1241 = vmatpush.msrb.mxu0 %v1221_v25 }
 0x231   : > { %v1946_v39 = vpop.eup %1945  ;;  %v999_v40 = vmul.f32 1.442695, %v998_v37  ;;  %v932_v41 = vmul.f32 1.442695, %v931_v38 }
 0x232   : > { %v867_v42 = vsel %vm834_vm1, %v1946_v39, 0.0  ;;  %1242 = vmatpush.msrb.mxu0 %v1220_v26 }
 0x233   : > { %1947 = vpow2.f32 %v999_v40  ;;  %868 = vadd.xlane.f32.xlu1 %v867_v42  ;;  %v1190_v40 = vld [vmem:[%s2630_s9 + $0x18] sm:$0xff]  ;;  %v1188_v42 = vld [vmem:[%s2630_s9 + $0x8] sm:$0xff] }
 0x234   : > { %1949 = vpow2.f32 %v932_v41  ;;  %1243 = vmatpush.msrb.mxu0 %v1219_v27  ;;  %v1189_v41 = vld [vmem:[%s2630_s9 + $0x10] sm:$0xff] }
 0x236   : > { %v1064_v43 = vpop.xlane.xlu2 %1063  ;;  %1244 = vmatpush.msrb.mxu0 %v1218_v28 }
 0x237   : > { %v1065_v44 = vsub.f32 %v1061_v30, %v1064_v43  ;;  %v1187_v43 = vld [vmem:[%s2630_s9] sm:$0xff] }
 0x239   : > { %v1948_v45 = vpop.eup %1947  ;;  %v1066_v46 = vmul.f32 1.442695, %v1065_v44  ;;  %v1936_v44 = vld [vmem:[%s2633_s12] ss:$0 sm:$0xff] }
 0x23a   : > { %v1950_v47 = vpop.eup %1949  ;;  %v1001_v48 = vsel %vm834_vm1, %v1948_v45, 0.0 }
 0x23b   : > { %1951 = vpow2.f32 %v1066_v46  ;;  %v934_v49 = vsel %vm834_vm1, %v1950_v47, 0.0  ;;  %1002 = vadd.xlane.f32.xlu1 %v1001_v48 }
 0x23c   : > { %935 = vadd.xlane.f32.xlu2 %v934_v49 }
 0x241   : > { %v1952_v50 = vpop.eup %1951  ;;  %v873_v51 = vpop.permute.xlu0 %872 }
 0x242   : > { %893 = vmatpush.msra.mxu2 %v873_v51  ;;  %v1068_v52 = vsel %vm834_vm1, %v1952_v50, 0.0 }
 0x244   : > { %1069 = vadd.xlane.f32.xlu2 %v1068_v52 }
 0x249   : > { %v1074_v1 = vpop.permute.xlu0 %1073 }
 0x254   : > { %939 = vrot.lane.b32.xlu1 %v2384_v7, %s2169_s29  ;;  %s2686_s29 = smov 8  }
 0x25c   : > { %1006 = vrot.lane.b32.xlu2 %v2384_v7, %s2170_s30  ;;  %s2687_s30 = smov 24  }
 0x2a6   : > { %v869_v53 = vpop.xlane.xlu1 %868 }
 0x2a7   : > { %1953 = vrcp.f32 %v869_v53 }
 0x2ad   : > { %v1954_v54 = vpop.eup %1953 }
 0x2ae   : > { %v871_v55 = vmul.f32 %v1954_v54, %v1946_v39  ;;  %v1003_v57 = vpop.xlane.xlu1 %1002 }
 0x2af   : > { %v936_v56 = vpop.xlane.xlu2 %935  ;;  %1955 = vrcp.f32 %v1003_v57 }
 0x2b0   : > { %1828 = vmatmul.msk.f32.vlgmr.msra.gmra.mxu2 %vm834_vm1, %v871_v55  ;;  %1957 = vrcp.f32 %v936_v56  ;;  %v1934_v56 = vld [vmem:[%s2680_s4] ss:$0 sm:$0xff] }
 0x2b5   : > { %v1956_v59 = vpop.eup %1955 }
 0x2b6   : > { %v1005_v61 = vmul.f32 %v1956_v59, %v1948_v45  ;;  %v1958_v62 = vpop.eup %1957  ;;  %v1935_v59 = vld [vmem:[%s2629_s8] ss:$0 sm:$0xff] }
 0x2b7   : > { %v1070_v58 = vpop.xlane.xlu2 %1069  ;;  %v938_v0 = vmul.f32 %v1958_v62, %v1950_v47 }
 0x2b8   : > { %1959 = vrcp.f32 %v1070_v58 }
 0x2b9   : > { %1961 = vrcp.f32 %v2174_v24 }
 0x2be   : > { %v1960_v2 = vpop.eup %1959 }
 0x2bf   : > { %v1007_v60 = vpop.permute.xlu2 %1006  ;;  %v1072_v3 = vmul.f32 %v1960_v2, %v1952_v50 }
 0x2c0   : > { %1027 = vmatpush.msra.mxu3 %v1007_v60 }
 0x2c1   : > { %1834 = vmatmul.msk.f32.vlgmr.msra.gmra.mxu3 %vm834_vm1, %v1005_v61 }
 0x2c2   : > { %1210 = vmatpush.msrb.mxu3 %v1190_v40 }
 0x2c4   : > { %1211 = vmatpush.msrb.mxu3 %v1189_v41 }
 0x2c6   : > { %v940_v63 = vpop.permute.xlu1 %939  ;;  %1212 = vmatpush.msrb.mxu3 %v1188_v42 }
 0x2c7   : > { %960 = vmatpush.msrb.mxu2 %v940_v63 }
 0x2c8   : > { %1831 = vmatmul.msk.f32.vlgmr.msrb.gmra.mxu2 %vm834_vm1, %v938_v0  ;;  %1213 = vmatpush.msrb.mxu3 %v1187_v43 }
 0x2c9   : > { %1094 = vmatpush.msra.mxu2 %v1074_v1  ;;  %v1937_v1 = vld [vmem:[%s2631_s10] ss:$0 sm:$0xff] }
 0x2d0   : > { %1837 = vmatmul.msk.f32.vlgmr.msra.gmra.mxu2 %vm834_vm1, %v1072_v3 }
 0x333   : > { %v895_v5 = vpop.f32.mrf.mxu2 }
 0x344   : > { %v1029_v6 = vpop.f32.mrf.mxu3 }
 0x345   : > { %1104 = vrot.lane.b32.xlu1 %v1029_v6, %s2650_s25 }
 0x34b   : > { %v962_v7 = vpop.f32.mrf.mxu2 }
 0x34c   : > { %1100 = vrot.lane.b32.xlu0 %v962_v7, %s2649_s2  ;;  %s2684_s2 = smov 88  }
 0x353   : > { %v1096_v8 = vpop.f32.mrf.mxu2 }
 0x354   : > { %1108 = vrot.lane.b32.xlu0 %v1096_v8, %s2651_s26  ;;  %s2679_s26 = sld [smem:[#allocation15_spill]] }
 0x35a   : > { %s791_s18 = scalar_lea.vmem %s2679_s26, %s2359_s16 }
 0x35b   : > { %v798_v29 = vld [vmem:[%s791_s18] sm:$0xff] }
 0x35c   : > { %1840 = vmatmul.msk.f32.vlgmr.msrb.gmra.mxu0 %vm807_vm0, %v798_v29 }
 0x3b7   : > { %v1105_v15 = vpop.permute.xlu1 %1104 }
 0x3be   : > { %v1101_v13 = vpop.permute.xlu0 %1100 }
 0x3bf   : > { %v1111_v14 = vsel %vm834_vm1, %v895_v5, %v1101_v13 }
 0x3c0   : > { %v1113_v17 = vsel %vm1112_vm2, %v1111_v14, %v1105_v15 }
 0x3c6   : > { %v1109_v16 = vpop.permute.xlu0 %1108 }
 0x3c7   : > { %v1115_v18 = vsel %vm1114_vm3, %v1113_v17, %v1109_v16 }
 0x3c8   : > { %1838 = vmatmul.msk.f32.vlgmr.msra.gmra.mxu1 %vm807_vm0, %v1115_v18 }
 0x3d9   : > { %v1246_v45 = vpop.f32.mrf.mxu0 }
 0x3da   : > { %v2488_v46 = vadd.f32 %v1936_v44, %v1246_v45 }
 0x3dc   : > { %1315 = vrot.lane.b32.xlu0 %v2488_v46, %s2161_s21  ;;  %1841 = vmatpush.xpose.msk.msrb.mxu2 %vm834_vm1, %v2488_v46 }
 0x3e4   : > { %1381 = vrot.lane.b32.xlu0 %v2488_v46, %s2163_s7 }
 0x3ec   : > { %1447 = vrot.lane.b32.xlu0 %v2488_v46, %s2166_s24 }
 0x445   : > { %v1144_v20 = vpop.f32.mrf.mxu1 }
 0x446   : > { %v1145_v21 = vadd.f32 %v1933_v19, %v1144_v20 }
 0x448   : > { %v1149_v22 = vadd.f32 %v1145_v21, %v2377_v4  ;;  %v1962_v4 = vpop.eup %1961 }
 0x449   : > { %v1154_v30 = vmul.f32 32.0, %v1962_v4  ;;  %vm1158_vm4 = vweird.f32 %v1962_v4 }
 0x44a   : > { %v1150_v23 = vsel %vm807_vm0, %v1149_v22, 0.0 }
 0x44b   : > { %1151 = vadd.xlane.f32.xlu2 %v1150_v23  ;;  %v1155_v31 = vsub.f32 1.0, %v1154_v30 }
 0x44d   : > { %v1156_v32 = vmul.f32 %v1962_v4, %v1155_v31 }
 0x44e   : > { %v1316_v62 = vpop.permute.xlu0 %1315 }
 0x44f   : > { %v1157_v33 = vadd.f32 %v1962_v4, %v1156_v32  ;;  %1844 = vmatpush.xpose.msk.msra.mxu3 %vm834_vm1, %v1316_v62  ;;  %v1528_v62 = vld [vmem:[%s2634_s13 + $0x10] sm:$0xff] }
 0x451   : > { %v2469_v34 = vsel %vm1158_vm4, %v1962_v4, %v1157_v33 }
 0x456   : > { %v1382_v63 = vpop.permute.xlu0 %1381 }
 0x457   : > { %1847 = vmatpush.xpose.msk.msra.mxu2 %vm834_vm1, %v1382_v63  ;;  %v1527_v63 = vld [vmem:[%s2634_s13 + $0x8] sm:$0xff] }
 0x45e   : > { %v1448_v0 = vpop.permute.xlu0 %1447 }
 0x4be   : > { %v1152_v35 = vpop.xlane.xlu2 %1151 }
 0x4bf   : > { %v1160_v36 = vmul.f32 %v2469_v34, %v1152_v35 }
 0x4c1   : > { %v1161_v37 = vsub.f32 %v1149_v22, %v1160_v36 }
 0x4c3   : > { %v1162_v38 = vmul.f32 %v1161_v37, %v1161_v37 }
 0x4c5   : > { %v1163_v39 = vsel %vm807_vm0, %v1162_v38, 0.0 }
 0x4c6   : > { %1164 = vadd.xlane.f32.xlu1 %v1163_v39 }
 0x539   : > { %v1165_v47 = vpop.xlane.xlu1 %1164 }
 0x53a   : > { %v1166_v48 = vmul.f32 %v1165_v47, %v2469_v34 }
 0x53c   : > { %v1167_v49 = vadd.f32 1e-05, %v1166_v48 }
 0x53e   : > { %1963 = vrsqrt.f32 %v1167_v49  ;;  %vm1174_vm6 = vweird.f32 %v1167_v49 }
 0x544   : > { %v1964_v50 = vpop.eup %1963 }
 0x545   : > { %v1169_v51 = vmul.f32 %v1964_v50, %v1167_v49  ;;  %vm1175_vm5 = vweird.f32 %v1964_v50 }
 0x546   : > { %vm1176_vm7 = vmor %vm1174_vm6, %vm1175_vm5 }
 0x547   : > { %v1170_v52 = vmul.f32 %v1964_v50, %v1169_v51 }
 0x549   : > { %v1171_v53 = vmul.f32 0.5, %v1170_v52 }
 0x54b   : > { %v1172_v54 = vsub.f32 1.5, %v1171_v53 }
 0x54d   : > { %v1173_v55 = vmul.f32 %v1964_v50, %v1172_v54 }
 0x54f   : > { %v1177_v57 = vsel %vm1176_vm7, %v1964_v50, %v1173_v55 }
 0x550   : > { %v1178_v58 = vmul.f32 %v1177_v57, %v1161_v37 }
 0x552   : > { %v1182_v60 = vmul.f32 %v1934_v56, %v1178_v58 }
 0x554   : > { %v2505_v61 = vadd.f32 %v1935_v59, %v1182_v60  ;;  %v1529_v60 = vld [vmem:[%s2634_s13 + $0x18] sm:$0xff] }
 0x556   : > { %1839 = vmatmul.msk.f32.vlgmr.msrb.gmra.mxu3 %vm807_vm0, %v2505_v61 }
 0x557   : > { %1850 = vmatpush.xpose.msk.msrb.mxu3 %vm834_vm1, %v1448_v0  ;;  %v1526_v0 = vld [vmem:[%s2634_s13] sm:$0xff] }
 0x5d9   : > { %v1215_v2 = vpop.f32.mrf.mxu3 }
 0x5da   : > { %v1216_v3 = vadd.f32 %v1937_v1, %v1215_v2 }
 0x5dc   : > { %1445 = vrot.lane.b32.xlu2 %v1216_v3, %s2166_s24  ;;  %1313 = vrot.lane.b32.xlu0 %v1216_v3, %s2161_s21  ;;  %s2681_s21 = smov 80   ;;  %s2683_s24 = smov 72  }
 0x5dd   : > { %1842 = vmatmul.msk.f32.vlgmr.msrb.gmra.mxu2 %vm834_vm1, %v1216_v3 }
 0x5de   : > { %1549 = vmatpush.msrb.mxu2 %v1529_v60 }
 0x5e0   : > { %1550 = vmatpush.msrb.mxu2 %v1528_v62 }
 0x5e2   : > { %1551 = vmatpush.msrb.mxu2 %v1527_v63 }
 0x5e4   : > { %1379 = vrot.lane.b32.xlu0 %v1216_v3, %s2163_s7  ;;  %s2682_s7 = smov 96   ;;  %1552 = vmatpush.msrb.mxu2 %v1526_v0 }
 0x636   : > { %v1446_v6 = vpop.permute.xlu2 %1445 }
 0x64e   : > { %v1314_v5 = vpop.permute.xlu0 %1313 }
 0x64f   : > { %1845 = vmatmul.msk.f32.vlgmr.msra.gmra.mxu3 %vm834_vm1, %v1314_v5 }
 0x656   : > { %v1380_v7 = vpop.permute.xlu0 %1379 }
 0x657   : > { %1848 = vmatmul.msk.f32.vlgmr.msra.gmra.mxu2 %vm834_vm1, %v1380_v7  ;;  %1851 = vmatmul.msk.f32.vlgmr.msrb.gmra.mxu3 %vm834_vm1, %v1446_v6 }
 0x660   : > { %v1272_v8 = vpop.f32.mrf.mxu2 }
 0x661   : > { %v1275_v9 = vmul.f32 0.35355338, %v1272_v8  ;;  %v1938_v8 = vld [vmem:[%s2635_s14] ss:$0 sm:$0xff] }
 0x663   : > { %v1276_v10 = vsel %vm834_vm1, %v1275_v9, -inf }
 0x664   : > { %1277 = vmax.xlane.f32.xlu1 %v1276_v10 }
 0x6d2   : > { %v1338_v11 = vpop.f32.mrf.mxu3 }
 0x6d3   : > { %v1341_v12 = vmul.f32 0.35355338, %v1338_v11 }
 0x6d5   : > { %v1342_v13 = vsel %vm834_vm1, %v1341_v12, -inf }
 0x6d6   : > { %1343 = vmax.xlane.f32.xlu0 %v1342_v13 }
 0x6d7   : > { %v1278_v14 = vpop.xlane.xlu1 %1277 }
 0x6d8   : > { %v1279_v15 = vsub.f32 %v1275_v9, %v1278_v14 }
 0x6da   : > { %v1280_v16 = vmul.f32 1.442695, %v1279_v15  ;;  %v1404_v17 = vpop.f32.mrf.mxu2  ;;  %v1470_v20 = vpop.f32.mrf.mxu3 }
 0x6db   : > { %v1407_v18 = vmul.f32 0.35355338, %v1404_v17  ;;  %v1473_v21 = vmul.f32 0.35355338, %v1470_v20  ;;  %v1590_v20 = vld [vmem:[%s2638_s17] sm:$0xff] }
 0x6dc   : > { %1965 = vpow2.f32 %v1280_v16 }
 0x6dd   : > { %v1408_v19 = vsel %vm834_vm1, %v1407_v18, -inf  ;;  %v1474_v24 = vsel %vm834_vm1, %v1473_v21, -inf }
 0x6de   : > { %1409 = vmax.xlane.f32.xlu1 %v1408_v19  ;;  %v1591_v19 = vld [vmem:[%s2638_s17 + $0x8] sm:$0xff] }
 0x6e2   : > { %v1966_v22 = vpop.eup %1965 }
 0x6e3   : > { %v1282_v23 = vsel %vm834_vm1, %v1966_v22, 0.0 }
 0x6e4   : > { %1283 = vadd.xlane.f32.xlu2 %v1282_v23  ;;  %v1627_v23 = vld [vmem:[%s2640_s19 + $0x28] sm:$0xff] }
 0x6e6   : > { %1475 = vmax.xlane.f32.xlu1 %v1474_v24 }
 0x6fc   : > { %1419 = vrot.lane.b32.xlu2 %v2488_v46, %s2681_s21  ;;  %s795_s21 = scalar_lea.vmem %s2644_s23, %s2359_s16 }
 0x6ff   : > { %1287 = vrot.lane.b32.xlu1 %v2488_v46, %s2682_s7 }
 0x749   : > { %v1344_v25 = vpop.xlane.xlu0 %1343 }
 0x74a   : > { %v1345_v26 = vsub.f32 %v1341_v12, %v1344_v25 }
 0x74c   : > { %v1346_v27 = vmul.f32 1.442695, %v1345_v26  ;;  %v1626_v26 = vld [vmem:[%s2640_s19 + $0x20] sm:$0xff] }
 0x74e   : > { %1967 = vpow2.f32 %v1346_v27 }
 0x751   : > { %v1410_v4 = vpop.xlane.xlu1 %1409 }
 0x752   : > { %v1411_v28 = vsub.f32 %v1407_v18, %v1410_v4  ;;  %v1593_v18 = vld [vmem:[%s2638_s17 + $0x18] sm:$0xff] }
 0x753   : > { %v1625_v4 = vld [vmem:[%s2640_s19 + $0x18] sm:$0xff] }
 0x754   : > { %v1968_v29 = vpop.eup %1967  ;;  %v1412_v30 = vmul.f32 1.442695, %v1411_v28 }
 0x755   : > { %v1348_v31 = vsel %vm834_vm1, %v1968_v29, 0.0 }
 0x756   : > { %1969 = vpow2.f32 %v1412_v30  ;;  %1349 = vadd.xlane.f32.xlu1 %v1348_v31 }
 0x757   : > { %v1284_v39 = vpop.xlane.xlu2 %1283 }
 0x759   : > { %v1476_v32 = vpop.xlane.xlu1 %1475 }
 0x75a   : > { %v1477_v33 = vsub.f32 %v1473_v21, %v1476_v32  ;;  %v1629_v21 = vld [vmem:[%s2640_s19 + $0x38] sm:$0xff] }
 0x75b   : > { %1646 = vmatpush.msra.mxu3 %v1629_v21 }
 0x75c   : > { %v1970_v35 = vpop.eup %1969  ;;  %v1478_v36 = vmul.f32 1.442695, %v1477_v33 }
 0x75d   : > { %v1414_v37 = vsel %vm834_vm1, %v1970_v35, 0.0 }
 0x75e   : > { %1971 = vpow2.f32 %v1478_v36  ;;  %1415 = vadd.xlane.f32.xlu1 %v1414_v37 }
 0x75f   : > { %1973 = vrcp.f32 %v1284_v39  ;;  %v1420_v44 = vpop.permute.xlu2 %1419 }
 0x764   : > { %v1972_v38 = vpop.eup %1971 }
 0x765   : > { %v1480_v40 = vsel %vm834_vm1, %v1972_v38, 0.0  ;;  %v1974_v41 = vpop.eup %1973 }
 0x766   : > { %1481 = vadd.xlane.f32.xlu0 %v1480_v40  ;;  %v1286_v42 = vmul.f32 %v1974_v41, %v1966_v22  ;;  %v1628_v22 = vld [vmem:[%s2640_s19 + $0x30] sm:$0xff] }
 0x767   : > { %1647 = vmatpush.msra.mxu3 %v1628_v22  ;;  %v1624_v41 = vld [vmem:[%s2640_s19 + $0x10] sm:$0xff] }
 0x769   : > { %1648 = vmatpush.msra.mxu3 %v1627_v23 }
 0x76b   : > { %1649 = vmatpush.msra.mxu3 %v1626_v26 }
 0x76d   : > { %1650 = vmatpush.msra.mxu3 %v1625_v4 }
 0x76f   : > { %1651 = vmatpush.msra.mxu3 %v1624_v41 }
 0x771   : > { %v1288_v43 = vpop.permute.xlu1 %1287 }
 0x772   : > { %1308 = vmatpush.msrb.mxu1 %v1288_v43  ;;  %v1622_v43 = vld [vmem:[%s2640_s19] sm:$0xff] }
 0x773   : > { %1843 = vmatmul.msk.f32.vlgmr.msrb.gmra.mxu1 %vm834_vm1, %v1286_v42  ;;  %v1623_v42 = vld [vmem:[%s2640_s19 + $0x8] sm:$0xff] }
 0x774   : > { %1440 = vmatpush.msra.mxu1 %v1420_v44  ;;  %1652 = vmatpush.msra.mxu3 %v1623_v42  ;;  %v1941_v44 = vld [vmem:[#allocation4] ss:$0 sm:$0xff] }
 0x776   : > { %1613 = vmatpush.msrb.mxu1 %v1593_v18  ;;  %1653 = vmatpush.msra.mxu3 %v1622_v43 }
 0x777   : > { %1485 = vrot.lane.b32.xlu1 %v2488_v46, %s2683_s24 }
 0x77a   : > { %1353 = vrot.lane.b32.xlu0 %v2488_v46, %s2684_s2 }
 0x7c9   : > { %v1350_v45 = vpop.xlane.xlu1 %1349 }
 0x7d1   : > { %v1416_v47 = vpop.xlane.xlu1 %1415 }
 0x7d2   : > { %1975 = vrcp.f32 %v1416_v47 }
 0x7d3   : > { %1977 = vrcp.f32 %v1350_v45 }
 0x7d8   : > { %v1976_v48 = vpop.eup %1975 }
 0x7d9   : > { %v1418_v49 = vmul.f32 %v1976_v48, %v1970_v35  ;;  %v1482_v50 = vpop.xlane.xlu0 %1481  ;;  %v1978_v51 = vpop.eup %1977  ;;  %v1939_v35 = vld [vmem:[%s2636_s15] ss:$0 sm:$0xff] }
 0x7da   : > { %1979 = vrcp.f32 %v1482_v50  ;;  %v1352_v52 = vmul.f32 %v1978_v51, %v1968_v29 }
 0x7db   : > { %1849 = vmatmul.msk.f32.vlgmr.msra.gmra.mxu1 %vm834_vm1, %v1418_v49  ;;  %v1942_v49 = vld [vmem:[#allocation6] ss:$0 sm:$0xff] }
 0x7e0   : > { %v1980_v55 = vpop.eup %1979 }
 0x7e1   : > { %v1484_v46 = vmul.f32 %v1980_v55, %v1972_v38  ;;  %v1940_v38 = vld [vmem:[#allocation2] ss:$0 sm:$0xff] }
 0x7e9   : > { %v1486_v54 = vpop.permute.xlu1 %1485 }
 0x7ec   : > { %v1354_v53 = vpop.permute.xlu0 %1353 }
 0x7ed   : > { %1374 = vmatpush.msra.mxu0 %v1354_v53 }
 0x7ee   : > { %1846 = vmatmul.msk.f32.vlgmr.msra.gmra.mxu0 %vm834_vm1, %v1352_v52 }
 0x7ef   : > { %1506 = vmatpush.msrb.mxu0 %v1486_v54 }
 0x7f0   : > { %v1310_v56 = vpop.f32.mrf.mxu1 }
 0x7f6   : > { %1852 = vmatmul.msk.f32.vlgmr.msrb.gmra.mxu0 %vm834_vm1, %v1484_v46 }
 0x858   : > { %v1442_v57 = vpop.f32.mrf.mxu1 }
 0x859   : > { %1516 = vrot.lane.b32.xlu1 %v1442_v57, %s2685_s5 }
 0x86b   : > { %v1376_v58 = vpop.f32.mrf.mxu0 }
 0x86c   : > { %1512 = vrot.lane.b32.xlu0 %v1376_v58, %s2686_s29 }
 0x873   : > { %v1508_v59 = vpop.f32.mrf.mxu0 }
 0x874   : > { %1520 = vrot.lane.b32.xlu0 %v1508_v59, %s2687_s30 }
 0x8cb   : > { %v1517_v3 = vpop.permute.xlu1 %1516 }
 0x8de   : > { %v1513_v1 = vpop.permute.xlu0 %1512 }
 0x8df   : > { %v1523_v2 = vsel %vm834_vm1, %v1310_v56, %v1513_v1 }
 0x8e0   : > { %v1524_v6 = vsel %vm1112_vm2, %v1523_v2, %v1517_v3 }
 0x8e6   : > { %v1521_v5 = vpop.permute.xlu0 %1520 }
 0x8e7   : > { %v1525_v7 = vsel %vm1114_vm3, %v1524_v6, %v1521_v5  ;;  %v1943_v5 = vld [vmem:[#allocation7] ss:$0 sm:$0xff] }
 0x8e8   : > { %1853 = vmatmul.msk.f32.vlgmr.msrb.gmra.mxu2 %vm807_vm0, %v1525_v7  ;;  %v1944_v7 = vld [vmem:[#allocation9] ss:$0 sm:$0xff] }
 0x96b   : > { %v1554_v9 = vpop.f32.mrf.mxu2 }
 0x96c   : > { %v1555_v10 = vadd.f32 %v1938_v8, %v1554_v9 }
 0x96e   : > { %v1559_v11 = vadd.f32 %v1555_v10, %v2505_v61  ;;  %v1592_v61 = vld [vmem:[%s2638_s17 + $0x10] sm:$0xff] }
 0x96f   : > { %1614 = vmatpush.msrb.mxu1 %v1592_v61 }
 0x970   : > { %v1560_v12 = vsel %vm807_vm0, %v1559_v11, 0.0 }
 0x971   : > { %1561 = vadd.xlane.f32.xlu1 %v1560_v12  ;;  %1615 = vmatpush.msrb.mxu1 %v1591_v19 }
 0x973   : > { %1616 = vmatpush.msrb.mxu1 %v1590_v20 }
 0x9e4   : > { %v1562_v13 = vpop.xlane.xlu1 %1561 }
 0x9e5   : > { %v1563_v14 = vmul.f32 %v1562_v13, %v2469_v34 }
 0x9e7   : > { %v1564_v15 = vsub.f32 %v1559_v11, %v1563_v14 }
 0x9e9   : > { %v1565_v16 = vmul.f32 %v1564_v15, %v1564_v15 }
 0x9eb   : > { %v1566_v17 = vsel %vm807_vm0, %v1565_v16, 0.0 }
 0x9ec   : > { %1567 = vadd.xlane.f32.xlu2 %v1566_v17 }
 0xa5f   : > { %v1568_v24 = vpop.xlane.xlu2 %1567 }
 0xa60   : > { %v1569_v25 = vmul.f32 %v1568_v24, %v2469_v34 }
 0xa62   : > { %v1570_v27 = vadd.f32 1e-05, %v1569_v25 }
 0xa64   : > { %1981 = vrsqrt.f32 %v1570_v27  ;;  %vm1577_vm9 = vweird.f32 %v1570_v27 }
 0xa6a   : > { %v1982_v28 = vpop.eup %1981 }
 0xa6b   : > { %v1572_v29 = vmul.f32 %v1982_v28, %v1570_v27  ;;  %vm1578_vm8 = vweird.f32 %v1982_v28 }
 0xa6c   : > { %vm1579_vm10 = vmor %vm1577_vm9, %vm1578_vm8 }
 0xa6d   : > { %v1573_v30 = vmul.f32 %v1982_v28, %v1572_v29 }
 0xa6f   : > { %v1574_v31 = vmul.f32 0.5, %v1573_v30 }
 0xa71   : > { %v1575_v32 = vsub.f32 1.5, %v1574_v31 }
 0xa73   : > { %v1576_v33 = vmul.f32 %v1982_v28, %v1575_v32 }
 0xa75   : > { %v1580_v36 = vsel %vm1579_vm10, %v1982_v28, %v1576_v33 }
 0xa76   : > { %v1581_v37 = vmul.f32 %v1580_v36, %v1564_v15 }
 0xa78   : > { %v1585_v39 = vmul.f32 %v1939_v35, %v1581_v37 }
 0xa7a   : > { %v1589_v40 = vadd.f32 %v1940_v38, %v1585_v39 }
 0xa7c   : > { %1854 = vmatmul.msk.f32.vlgmr.msrb.gmra.mxu1 %vm807_vm0, %v1589_v40 }
 0xaf9   : > { %v1618_v45 = vpop.f32.mrf.mxu1 }
 0xafa   : > { %v1619_v47 = vadd.f32 %v1941_v44, %v1618_v45 }
 0xafc   : > { %v1621_v48 = vmax.f32 %v1619_v47, 0.0 }
 0xafe   : > { %1855 = vmatmul.msk.f32.vlgmr.msra.gmra.mxu3 %vm1634_vm11, %v1621_v48 }
 0xb81   : > { %v1655_v50 = vpop.f32.mrf.mxu3 }
 0xb82   : > { %v1656_v51 = vadd.f32 %v1942_v49, %v1655_v50 }
 0xb84   : > { %v1660_v52 = vadd.f32 %v1656_v51, %v1589_v40 }
 0xb86   : > { %v1661_v53 = vsel %vm807_vm0, %v1660_v52, 0.0 }
 0xb87   : > { %1662 = vadd.xlane.f32.xlu0 %v1661_v53 }
 0xbfa   : > { %v1663_v54 = vpop.xlane.xlu0 %1662 }
 0xbfb   : > { %v1664_v55 = vmul.f32 %v1663_v54, %v2469_v34 }
 0xbfd   : > { %v1665_v46 = vsub.f32 %v1660_v52, %v1664_v55 }
 0xbff   : > { %v1666_v56 = vmul.f32 %v1665_v46, %v1665_v46 }
 0xc01   : > { %v1667_v57 = vsel %vm807_vm0, %v1666_v56, 0.0 }
 0xc02   : > { %1668 = vadd.xlane.f32.xlu1 %v1667_v57 }
 0xc75   : > { %v1669_v58 = vpop.xlane.xlu1 %1668 }
 0xc76   : > { %v1670_v59 = vmul.f32 %v1669_v58, %v2469_v34 }
 0xc78   : > { %v1671_v60 = vadd.f32 1e-05, %v1670_v59 }
 0xc7a   : > { %1983 = vrsqrt.f32 %v1671_v60  ;;  %vm1678_vm13 = vweird.f32 %v1671_v60 }
 0xc80   : > { %v1984_v62 = vpop.eup %1983 }
 0xc81   : > { %v1673_v63 = vmul.f32 %v1984_v62, %v1671_v60  ;;  %vm1679_vm12 = vweird.f32 %v1984_v62 }
 0xc82   : > { %vm1680_vm14 = vmor %vm1678_vm13, %vm1679_vm12 }
 0xc83   : > { %v1674_v0 = vmul.f32 %v1984_v62, %v1673_v63 }
 0xc85   : > { %v1675_v1 = vmul.f32 0.5, %v1674_v0 }
 0xc87   : > { %v1676_v2 = vsub.f32 1.5, %v1675_v1 }
 0xc89   : > { %v1677_v3 = vmul.f32 %v1984_v62, %v1676_v2 }
 0xc8b   : > { %v1681_v6 = vsel %vm1680_vm14, %v1984_v62, %v1677_v3 }
 0xc8c   : > { %v1682_v8 = vmul.f32 %v1681_v6, %v1665_v46 }
 0xc8e   : > { %v1686_v9 = vmul.f32 %v1943_v5, %v1682_v8 }
 0xc90   : > { %v1690_v34 = vadd.f32 %v1944_v7, %v1686_v9 }
 0xc92   : > { %1691 = vst.msk [vmem:[%s795_s21] sm:$0xff] %vm807_vm0, %v1690_v34 }
 0xc93 PF: > { %s2688_s7 = sld [smem:[#allocation13_spill]] }
 0xc99   : > { %s36_s4 = sadd.s32 1, %s2688_s7  }
 0xc9a   : > { %p33_p7 = scmp.ge.s32.totalorder %s36_s4, 4  }
 0xc9c   :  { %35 = sbr.rel (!%p33_p7) target bundleno = 15 (0xf), region = 166 }
 0xca1   :  { %1711 = vsyncpa [#allocation3], 1 }
 0xca2   :  { %1713 = vsyncpa [#allocation3 + $0x1], 1 }
 0xca3   :  { %1714 = vsyncpa [#allocation5], 1 }
 0xca4   :  { %1715 = vsyncpa [#allocation8], 1 }

</bundles_post_ra>
